<compile_context>
chip_gen: v5e
topology: v5e:2x2
jax: 0.10.0
libtpu: 0.0.40
codegen_flags: <defaults>
</compile_context>

<pallas_src>
import functools

import jax
import jax.numpy as jnp
import numpy as np
from jax.experimental import pallas as pl
from jax.experimental.pallas import tpu as pltpu


def _round_up(x, m):
    return ((x + m - 1) // m) * m


def _vmem_capacity_bytes():
    """Physical VMEM of the current TPU generation (fallback: 128 MiB)."""
    try:
        info = pltpu.get_tpu_info()
        for attr in ("vmem_capacity_bytes", "vmem_size_bytes"):
            cap = getattr(info, attr, None)
            if cap:
                return int(cap)
    except Exception:
        pass
    return 128 << 20


# ---------------------------------------------------------------------------
# Wrapper-side constant tables (conv weights with the zero-padding boundary mask
# baked in).  Indices are numpy constants; weight values stay traceable.
# ---------------------------------------------------------------------------

def _build_conv_matrices(weight, H, W, s_pad, ksize, pad):
    """(2, s_pad, s_pad) matrices M so that conv([avg, max]) == avg @ M[0] + max @ M[1].

    M[c, src, dst] accumulates weight[0, c, kh, kw] for every tap (kh, kw) whose source
    pixel for output position dst is the in-image pixel src; out-of-image taps and the
    lane-padding tail stay zero, so "same" zero-padding is baked in.
    """
    S = H * W
    p = np.arange(S)
    hh, ww = p // W, p % W
    rows, cols, taps = [], [], []
    for c in range(2):
        for kh in range(ksize):
            for kw in range(ksize):
                sh, sw = hh + kh - pad, ww + kw - pad
                valid = (sh >= 0) & (sh < H) & (sw >= 0) & (sw < W)
                rows.append((sh * W + sw)[valid])
                cols.append(p[valid])
                taps.append(np.full(int(valid.sum()),
                                    (c * ksize + kh) * ksize + kw, np.int32))
    rows = np.concatenate(rows)
    cols = np.concatenate(cols)
    taps = np.concatenate(taps)
    chan = taps // (ksize * ksize)
    vals = weight.astype(jnp.float32).reshape(2 * ksize * ksize)[taps]
    m = jnp.zeros((2, s_pad, s_pad), jnp.float32)
    return m.at[chan, rows, cols].add(vals)


def _build_tap_weights(weight, H, W, s_pad, ksize, pad):
    """(2*k*k, s_pad) per-tap weight vectors with the boundary mask baked in (roll path)."""
    p = jnp.arange(s_pad, dtype=jnp.int32)
    hh = p // W
    ww = p % W
    in_image = p < H * W
    w32 = weight.astype(jnp.float32)
    rows = []
    for c in range(2):
        for kh in range(ksize):
            for kw in range(ksize):
                dh, dw = kh - pad, kw - pad
                valid = (in_image
                         & (hh + dh >= 0) & (hh + dh < H)
                         & (ww + dw >= 0) & (ww + dw < W))
                rows.append(jnp.where(valid, w32[0, c, kh, kw], 0.0))
    return jnp.stack(rows, axis=0)


# ---------------------------------------------------------------------------
# Kernels
# ---------------------------------------------------------------------------

def _channel_mean_max(x_ref, n_channels):
    """Streamed channel mean/max over the leading (untiled) axis.

    Pure VALU work; live vregs stay O(nb * s_pad) regardless of C.
    """
    s = x_ref[0].astype(jnp.float32)
    m = s
    for c in range(1, n_channels):
        v = x_ref[c].astype(jnp.float32)
        s = s + v
        m = jnp.maximum(m, v)
    return s * jnp.float32(1.0 / n_channels), m


def _sa_mxu_kernel(mconv_ref, xr_ref, xd_ref, or_ref, od_ref, *, n_channels):
    """Conv realized as two MXU matmuls per plane against boundary-masked matrices."""

    def plane(x_ref):
        avg, mx = _channel_mean_max(x_ref, n_channels)
        acc = jnp.dot(avg, mconv_ref[0], precision=jax.lax.Precision.HIGHEST,
                      preferred_element_type=jnp.float32)
        acc = acc + jnp.dot(mx, mconv_ref[1], precision=jax.lax.Precision.HIGHEST,
                            preferred_element_type=jnp.float32)
        return jax.nn.sigmoid(acc)

    or_ref[...] = plane(xr_ref).astype(or_ref.dtype)
    od_ref[...] = plane(xd_ref).astype(od_ref.dtype)


def _sa_roll_kernel(tapw_ref, xr_ref, xd_ref, or_ref, od_ref, *,
                    ksize, pad, width, n_channels):
    """Fallback for large spatial planes: per-tap lane rolls x masked weight vectors."""
    s_pad = or_ref.shape[-1]

    def plane(x_ref):
        avg, mx = _channel_mean_max(x_ref, n_channels)
        acc = jnp.zeros(avg.shape, jnp.float32)
        # 2-in / 1-out "same" conv unrolled over the 2*k*k taps: each tap is a lane
        # roll (XLU slot) of the flattened plane times a boundary-masked weight row.
        for ci, pln in enumerate((avg, mx)):
            for kh in range(ksize):
                for kw in range(ksize):
                    dh, dw = kh - pad, kw - pad
                    shift = (-(dh * width + dw)) % s_pad
                    shifted = pln if shift == 0 else pltpu.roll(pln, shift, axis=1)
                    idx = (ci * ksize + kh) * ksize + kw
                    acc = acc + shifted * tapw_ref[pl.ds(idx, 1), :]
        return jax.nn.sigmoid(acc)

    or_ref[...] = plane(xr_ref).astype(or_ref.dtype)
    od_ref[...] = plane(xd_ref).astype(od_ref.dtype)


# ---------------------------------------------------------------------------
# Wrapper
# ---------------------------------------------------------------------------

def spatial_attention(x_r, x_d, weight, *, kernel_size=7, conv_impl="auto"):
    assert kernel_size in (3, 7), "kernel size must be 3 or 7"
    pad = 3 if kernel_size == 7 else 1
    N, C, H, W = x_r.shape
    assert x_d.shape == x_r.shape
    assert weight.shape == (1, 2, kernel_size, kernel_size)

    S = H * W
    s_pad = _round_up(S, 128)          # lane-dense last dim
    b_pad = _round_up(N, 8)            # sublane-dense batch rows
    itemsize = jnp.dtype(x_r.dtype).itemsize

    if conv_impl == "auto":
        conv_impl = "mxu" if 2 * s_pad * s_pad * 4 <= (4 << 20) else "roll"
    assert conv_impl in ("mxu", "roll")

    if conv_impl == "mxu":
        conv_tbl = _build_conv_matrices(weight, H, W, s_pad, kernel_size, pad)
        conv_spec = pl.BlockSpec((2, s_pad, s_pad), lambda n: (0, 0, 0))
        kernel = functools.partial(_sa_mxu_kernel, n_channels=C)
    else:
        conv_tbl = _build_tap_weights(weight, H, W, s_pad, kernel_size, pad)
        n_taps = 2 * kernel_size * kernel_size
        conv_spec = pl.BlockSpec((n_taps, s_pad), lambda n: (0, 0))
        kernel = functools.partial(_sa_roll_kernel, ksize=kernel_size, pad=pad,
                                   width=W, n_channels=C)
    fixed_bytes = 2 * int(np.prod(conv_tbl.shape)) * 4   # resident table (count 2 buffers)

    # ---- generation-aware block sizing / grid / VMEM limit ----
    vmem_cap = _vmem_capacity_bytes()
    per_row = (2 * 2 * C * s_pad * itemsize      # r+d input blocks, double-buffered
               + 2 * 2 * s_pad * itemsize        # r+d output blocks, double-buffered
               + 8 * s_pad * 4)                  # f32 compute temporaries
    budget = int(0.35 * vmem_cap)
    avail = budget - fixed_bytes - (4 << 20)
    nb = max(8, min(b_pad, (max(avail, 0) // per_row) // 8 * 8))
    if b_pad >= 16:                              # >=2 grid steps: DMA pipelining + v7x 2-TC sharding
        nb = min(nb, max(8, ((b_pad // 2) // 8) * 8))
    while b_pad % nb:                            # b_pad is a multiple of 8, so this terminates at 8
        nb -= 8
    grid = (b_pad // nb,)

    need = nb * per_row + fixed_bytes + (4 << 20)
    vmem_limit = int(min(max(need, 16 << 20), int(0.45 * vmem_cap)))
    if need > vmem_limit:                        # minimal block above the soft cap: grant it anyway
        vmem_limit = int(min(need, int(0.9 * vmem_cap)))

    # ---- input prep: free contiguous reshape + (C, N, S) transpose + pad; NO r/d concat ----
    def prep(x):
        x = jnp.transpose(x.reshape(N, C, S), (1, 0, 2))
        if b_pad != N or s_pad != S:
            x = jnp.pad(x, ((0, 0), (0, b_pad - N), (0, s_pad - S)))
        return x

    x_r_t = prep(x_r)
    x_d_t = prep(x_d)

    in_block = pl.BlockSpec((C, nb, s_pad), lambda n: (0, n, 0))
    out_block = pl.BlockSpec((nb, s_pad), lambda n: (n, 0))

    out_r, out_d = pl.pallas_call(
        kernel,
        out_shape=(jax.ShapeDtypeStruct((b_pad, s_pad), x_r.dtype),
                   jax.ShapeDtypeStruct((b_pad, s_pad), x_d.dtype)),
        grid_spec=pltpu.PrefetchScalarGridSpec(
            num_scalar_prefetch=0,
            grid=grid,
            in_specs=[conv_spec, in_block, in_block],
            out_specs=[out_block, out_block],
        ),
        compiler_params=pltpu.CompilerParams(
            dimension_semantics=("parallel",),   # batch blocks independent (v7x: 2 TCs)
            vmem_limit_bytes=vmem_limit,
        ),
    )(conv_tbl, x_r_t, x_d_t)

    out_r = out_r[:N, :S].reshape(N, 1, H, W)
    out_d = out_d[:N, :S].reshape(N, 1, H, W)
    return out_r, out_d


# ---------------------------------------------------------------------------
# Pure-JAX reference (matches the PyTorch SpatialAttention forward)
# ---------------------------------------------------------------------------

def _reference(x_r, x_d, weight, *, kernel_size):
    pad = 3 if kernel_size == 7 else 1

    def one(x):
        avg = jnp.mean(x, axis=1, keepdims=True)
        mx = jnp.max(x, axis=1, keepdims=True)
        feat = jnp.concatenate([avg, mx], axis=1)
        out = jax.lax.conv_general_dilated(
            feat, weight, window_strides=(1, 1),
            padding=((pad, pad), (pad, pad)),
            dimension_numbers=("NCHW", "OIHW", "NCHW"),
            precision=jax.lax.Precision.HIGHEST)
        return jax.nn.sigmoid(out)

    return one(x_r), one(x_d)


if __name__ == "__main__":
    key = jax.random.PRNGKey(0)
    k1, k2, k3 = jax.random.split(key, 3)

    N, C, H, W = 2, 4, 16, 16
    kernel_size = 7

    x_r = jax.random.normal(k1, (N, C, H, W), jnp.float32)
    x_d = jax.random.normal(k2, (N, C, H, W), jnp.float32)

    # Conv2d(2, 1, 7, bias=False) weight: (out=1, in=2, 7, 7), deterministic init.
    fan_in = 2 * kernel_size * kernel_size
    weight = jax.random.uniform(
        k3, (1, 2, kernel_size, kernel_size), jnp.float32,
        minval=-1.0, maxval=1.0) / jnp.sqrt(jnp.float32(fan_in))

    ref_r, ref_d = _reference(x_r, x_d, weight, kernel_size=kernel_size)

    # Primary (auto -> MXU) path.
    out_r, out_d = spatial_attention(x_r, x_d, weight, kernel_size=kernel_size)
    jax.block_until_ready((out_r, out_d))
    np.testing.assert_allclose(np.asarray(out_r), np.asarray(ref_r), atol=5e-4, rtol=5e-4)
    np.testing.assert_allclose(np.asarray(out_d), np.asarray(ref_d), atol=5e-4, rtol=5e-4)

    # Fallback (roll) path for large spatial planes — validate it too.
    out_r2, out_d2 = spatial_attention(x_r, x_d, weight, kernel_size=kernel_size,
                                       conv_impl="roll")
    jax.block_until_ready((out_r2, out_d2))
    np.testing.assert_allclose(np.asarray(out_r2), np.asarray(ref_r), atol=1e-5, rtol=1e-5)
    np.testing.assert_allclose(np.asarray(out_d2), np.asarray(ref_d), atol=1e-5, rtol=1e-5)

    print("KERNEL_OK")
</pallas_src>

<mosaic_0001>
module attributes {stable_mosaic.version = 11 : i64} {
  func.func @_sa_mxu_kernel(%arg0: i32, %arg1: memref<2x256x256xf32, #tpu.memory_space<vmem>>, %arg2: memref<4x8x256xf32, #tpu.memory_space<vmem>>, %arg3: memref<4x8x256xf32, #tpu.memory_space<vmem>>, %arg4: memref<8x256xf32, #tpu.memory_space<vmem>>, %arg5: memref<8x256xf32, #tpu.memory_space<vmem>>) attributes {dimension_semantics = [#tpu.dimension_semantics<parallel>], iteration_bounds = array<i64: 1>, scalar_prefetch = 0 : i64, scratch_operands = 0 : i64, tpu.core_type = #tpu.core_type<tc>, window_params = [{pipeline_mode = #tpu.pipeline_mode<synchronous>, transform_indices = @transform_0, window_bounds = array<i64: 2, 256, 256>}, {transform_indices = @transform_1, window_bounds = array<i64: 4, 8, 256>}, {transform_indices = @transform_2, window_bounds = array<i64: 4, 8, 256>}, {transform_indices = @transform_3, window_bounds = array<i64: 8, 256>}, {transform_indices = @transform_4, window_bounds = array<i64: 8, 256>}]} {
    %c0 = arith.constant 0 : index
    %c0_0 = arith.constant 0 : index
    %c0_1 = arith.constant 0 : index
    %0 = vector.load %arg2[%c0, %c0_0, %c0_1] : memref<4x8x256xf32, #tpu.memory_space<vmem>>, vector<1x8x256xf32>
    %1 = vector.shape_cast %0 : vector<1x8x256xf32> to vector<8x256xf32>
    %c1 = arith.constant 1 : index
    %c0_2 = arith.constant 0 : index
    %c0_3 = arith.constant 0 : index
    %2 = vector.load %arg2[%c1, %c0_2, %c0_3] : memref<4x8x256xf32, #tpu.memory_space<vmem>>, vector<1x8x256xf32>
    %3 = vector.shape_cast %2 : vector<1x8x256xf32> to vector<8x256xf32>
    %4 = arith.addf %1, %3 : vector<8x256xf32>
    %5 = arith.maximumf %1, %3 : vector<8x256xf32>
    %c2 = arith.constant 2 : index
    %c0_4 = arith.constant 0 : index
    %c0_5 = arith.constant 0 : index
    %6 = vector.load %arg2[%c2, %c0_4, %c0_5] : memref<4x8x256xf32, #tpu.memory_space<vmem>>, vector<1x8x256xf32>
    %7 = vector.shape_cast %6 : vector<1x8x256xf32> to vector<8x256xf32>
    %8 = arith.addf %4, %7 : vector<8x256xf32>
    %9 = arith.maximumf %5, %7 : vector<8x256xf32>
    %c3 = arith.constant 3 : index
    %c0_6 = arith.constant 0 : index
    %c0_7 = arith.constant 0 : index
    %10 = vector.load %arg2[%c3, %c0_6, %c0_7] : memref<4x8x256xf32, #tpu.memory_space<vmem>>, vector<1x8x256xf32>
    %11 = vector.shape_cast %10 : vector<1x8x256xf32> to vector<8x256xf32>
    %12 = arith.addf %8, %11 : vector<8x256xf32>
    %13 = arith.maximumf %9, %11 : vector<8x256xf32>
    %cst = arith.constant 2.500000e-01 : f32
    %14 = vector.broadcast %cst : f32 to vector<8x256xf32>
    %15 = arith.mulf %12, %14 : vector<8x256xf32>
    %c0_8 = arith.constant 0 : index
    %c0_9 = arith.constant 0 : index
    %c0_10 = arith.constant 0 : index
    %16 = vector.load %arg1[%c0_8, %c0_9, %c0_10] : memref<2x256x256xf32, #tpu.memory_space<vmem>>, vector<1x256x256xf32>
    %17 = vector.shape_cast %16 : vector<1x256x256xf32> to vector<256x256xf32>
    %cst_11 = arith.constant dense<0.000000e+00> : vector<8x256xf32>
    %18 = tpu.matmul %15, %17, %cst_11 {dimension_numbers = #tpu.dot_dimension_numbers<[1], [0], [0], [1], [0, 0, 1, 1], [], []>, precision = #tpu.contract_precision<fp32>} : vector<8x256xf32>, vector<256x256xf32>, vector<8x256xf32> -> vector<8x256xf32>
    %c1_12 = arith.constant 1 : index
    %c0_13 = arith.constant 0 : index
    %c0_14 = arith.constant 0 : index
    %19 = vector.load %arg1[%c1_12, %c0_13, %c0_14] : memref<2x256x256xf32, #tpu.memory_space<vmem>>, vector<1x256x256xf32>
    %20 = vector.shape_cast %19 : vector<1x256x256xf32> to vector<256x256xf32>
    %cst_15 = arith.constant dense<0.000000e+00> : vector<8x256xf32>
    %21 = tpu.matmul %13, %20, %cst_15 {dimension_numbers = #tpu.dot_dimension_numbers<[1], [0], [0], [1], [0, 0, 1, 1], [], []>, precision = #tpu.contract_precision<fp32>} : vector<8x256xf32>, vector<256x256xf32>, vector<8x256xf32> -> vector<8x256xf32>
    %22 = arith.addf %18, %21 : vector<8x256xf32>
    %23 = arith.negf %22 : vector<8x256xf32>
    %24 = math.exp %23 : vector<8x256xf32>
    %cst_16 = arith.constant 1.000000e+00 : f32
    %25 = vector.broadcast %cst_16 : f32 to vector<8x256xf32>
    %26 = arith.addf %25, %24 : vector<8x256xf32>
    %27 = arith.divf %25, %26 : vector<8x256xf32>
    %c0_17 = arith.constant 0 : index
    %c0_18 = arith.constant 0 : index
    %28 = vector.load %arg4[%c0_17, %c0_18] : memref<8x256xf32, #tpu.memory_space<vmem>>, vector<8x256xf32>
    tpu.vector_store %arg4[%c0_17, %c0_18], %27 {strides = array<i32>} : memref<8x256xf32, #tpu.memory_space<vmem>>, vector<8x256xf32>,
    %c0_19 = arith.constant 0 : index
    %c0_20 = arith.constant 0 : index
    %c0_21 = arith.constant 0 : index
    %29 = vector.load %arg3[%c0_19, %c0_20, %c0_21] : memref<4x8x256xf32, #tpu.memory_space<vmem>>, vector<1x8x256xf32>
    %30 = vector.shape_cast %29 : vector<1x8x256xf32> to vector<8x256xf32>
    %c1_22 = arith.constant 1 : index
    %c0_23 = arith.constant 0 : index
    %c0_24 = arith.constant 0 : index
    %31 = vector.load %arg3[%c1_22, %c0_23, %c0_24] : memref<4x8x256xf32, #tpu.memory_space<vmem>>, vector<1x8x256xf32>
    %32 = vector.shape_cast %31 : vector<1x8x256xf32> to vector<8x256xf32>
    %33 = arith.addf %30, %32 : vector<8x256xf32>
    %34 = arith.maximumf %30, %32 : vector<8x256xf32>
    %c2_25 = arith.constant 2 : index
    %c0_26 = arith.constant 0 : index
    %c0_27 = arith.constant 0 : index
    %35 = vector.load %arg3[%c2_25, %c0_26, %c0_27] : memref<4x8x256xf32, #tpu.memory_space<vmem>>, vector<1x8x256xf32>
    %36 = vector.shape_cast %35 : vector<1x8x256xf32> to vector<8x256xf32>
    %37 = arith.addf %33, %36 : vector<8x256xf32>
    %38 = arith.maximumf %34, %36 : vector<8x256xf32>
    %c3_28 = arith.constant 3 : index
    %c0_29 = arith.constant 0 : index
    %c0_30 = arith.constant 0 : index
    %39 = vector.load %arg3[%c3_28, %c0_29, %c0_30] : memref<4x8x256xf32, #tpu.memory_space<vmem>>, vector<1x8x256xf32>
    %40 = vector.shape_cast %39 : vector<1x8x256xf32> to vector<8x256xf32>
    %41 = arith.addf %37, %40 : vector<8x256xf32>
    %42 = arith.maximumf %38, %40 : vector<8x256xf32>
    %cst_31 = arith.constant 2.500000e-01 : f32
    %43 = vector.broadcast %cst_31 : f32 to vector<8x256xf32>
    %44 = arith.mulf %41, %43 : vector<8x256xf32>
    %c0_32 = arith.constant 0 : index
    %c0_33 = arith.constant 0 : index
    %c0_34 = arith.constant 0 : index
    %45 = vector.load %arg1[%c0_32, %c0_33, %c0_34] : memref<2x256x256xf32, #tpu.memory_space<vmem>>, vector<1x256x256xf32>
    %46 = vector.shape_cast %45 : vector<1x256x256xf32> to vector<256x256xf32>
    %cst_35 = arith.constant dense<0.000000e+00> : vector<8x256xf32>
    %47 = tpu.matmul %44, %46, %cst_35 {dimension_numbers = #tpu.dot_dimension_numbers<[1], [0], [0], [1], [0, 0, 1, 1], [], []>, precision = #tpu.contract_precision<fp32>} : vector<8x256xf32>, vector<256x256xf32>, vector<8x256xf32> -> vector<8x256xf32>
    %c1_36 = arith.constant 1 : index
    %c0_37 = arith.constant 0 : index
    %c0_38 = arith.constant 0 : index
    %48 = vector.load %arg1[%c1_36, %c0_37, %c0_38] : memref<2x256x256xf32, #tpu.memory_space<vmem>>, vector<1x256x256xf32>
    %49 = vector.shape_cast %48 : vector<1x256x256xf32> to vector<256x256xf32>
    %cst_39 = arith.constant dense<0.000000e+00> : vector<8x256xf32>
    %50 = tpu.matmul %42, %49, %cst_39 {dimension_numbers = #tpu.dot_dimension_numbers<[1], [0], [0], [1], [0, 0, 1, 1], [], []>, precision = #tpu.contract_precision<fp32>} : vector<8x256xf32>, vector<256x256xf32>, vector<8x256xf32> -> vector<8x256xf32>
    %51 = arith.addf %47, %50 : vector<8x256xf32>
    %52 = arith.negf %51 : vector<8x256xf32>
    %53 = math.exp %52 : vector<8x256xf32>
    %cst_40 = arith.constant 1.000000e+00 : f32
    %54 = vector.broadcast %cst_40 : f32 to vector<8x256xf32>
    %55 = arith.addf %54, %53 : vector<8x256xf32>
    %56 = arith.divf %54, %55 : vector<8x256xf32>
    %c0_41 = arith.constant 0 : index
    %c0_42 = arith.constant 0 : index
    %57 = vector.load %arg5[%c0_41, %c0_42] : memref<8x256xf32, #tpu.memory_space<vmem>>, vector<8x256xf32>
    tpu.vector_store %arg5[%c0_41, %c0_42], %56 {strides = array<i32>} : memref<8x256xf32, #tpu.memory_space<vmem>>, vector<8x256xf32>,
    return
  }
  func.func @transform_0(%arg0: i32) -> (i32, i32, i32) {
    %c0_i32 = arith.constant 0 : i32
    %c0_i32_0 = arith.constant 0 : i32
    %c0_i32_1 = arith.constant 0 : i32
    %c0_i32_2 = arith.constant 0 : i32
    return %c0_i32, %c0_i32_0, %c0_i32_1 : i32, i32, i32
  }
  func.func @transform_1(%arg0: i32) -> (i32, i32, i32) {
    %c0_i32 = arith.constant 0 : i32
    %c0_i32_0 = arith.constant 0 : i32
    %c0_i32_1 = arith.constant 0 : i32
    return %c0_i32, %arg0, %c0_i32_0 : i32, i32, i32
  }
  func.func @transform_2(%arg0: i32) -> (i32, i32, i32) {
    %c0_i32 = arith.constant 0 : i32
    %c0_i32_0 = arith.constant 0 : i32
    %c0_i32_1 = arith.constant 0 : i32
    return %c0_i32, %arg0, %c0_i32_0 : i32, i32, i32
  }
  func.func @transform_3(%arg0: i32) -> (i32, i32) {
    %c0_i32 = arith.constant 0 : i32
    %c0_i32_0 = arith.constant 0 : i32
    return %arg0, %c0_i32 : i32, i32
  }
  func.func @transform_4(%arg0: i32) -> (i32, i32) {
    %c0_i32 = arith.constant 0 : i32
    %c0_i32_0 = arith.constant 0 : i32
    return %arg0, %c0_i32 : i32, i32
  }
}

</mosaic_0001>

<bundles_post_ra>
// kernel: tpu_custom_call.1
= control target key start
LH: loop header
LB: loop body
LE: loop exit
PB: predicated region body
PF: predicated region fallthrough
CT: control target
= control target key end

     0   :  { %10 = vsyncpa [#allocation3], 0  ;;  %s10288_s0 = inlined_call_operand.hbm [shape: f32[2,256,256], index: 0, kind: input, shape index: {}]   ;;  %s10289_s1 = inlined_call_operand.hbm [shape: f32[4,8,256], index: 1, kind: input, shape index: {}]   ;;  %s10290_s2 = inlined_call_operand.hbm [shape: f32[4,8,256], index: 2, kind: input, shape index: {}]   ;;  %s10291_s3 = inlined_call_operand.hbm [shape: f32[8,256], index: 3, kind: output, shape index: {0}]   ;;  %s10292_s4 = inlined_call_operand.hbm [shape: f32[8,256], index: 4, kind: output, shape index: {1}]  }
   0x1   :  { %11 = vsyncpa [#allocation6], 0 }
   0x2   :  { %12 = vsyncpa [#allocation4], 0 }
   0x3   :  { %13 = vsyncpa [#allocation10], 0  ;;  %s31_s17 = sshll.u32 %s10289_s1, 4  ;;  %s6105_s18 = smov [#allocation5]   ;;  %s32_s17 = int_to_ptr.hbm [resolvable:$true] %s31_s17 }
   0x4   :  { %s33_s19 = sshll.u32 %s6105_s18, 4  ;;  %s18_s22 = sshll.u32 %s10288_s0, 4  ;;  %s34_s19 = int_to_ptr.vmem [resolvable:$true] %s33_s19  ;;  %s19_s22 = int_to_ptr.hbm [resolvable:$true] %s18_s22 }
   0x5   :  { %s6106_s23 = smov 256   ;;  %s6107_s24 = smov 16  }
   0x6   :  { %39 = dma.hbm_to_vmem [thread:$0]  %s32_s17, 1024, %s34_s19, [#allocation6], %s6106_s23, %s6106_s23, %s6107_s24  }
   0x7   :  { %s6108_s25 = smov [#allocation2]   ;;  %s44_s29 = sshll.u32 %s10290_s2, 4  ;;  %s45_s29 = int_to_ptr.hbm [resolvable:$true] %s44_s29 }
   0x8   :  { %s20_s26 = sshll.u32 %s6108_s25, 4  ;;  %s6109_s1 = smov [#allocation7]   ;;  %s21_s26 = int_to_ptr.vmem [resolvable:$true] %s20_s26 }
   0x9   :  { %26 = dma.hbm_to_vmem [thread:$0]  %s19_s22, 16384, %s21_s26, [#allocation3], %s6106_s23, %s6106_s23, %s6107_s24  }
   0xa   :  { %s46_s30 = sshll.u32 %s6109_s1, 4  ;;  %s47_s30 = int_to_ptr.vmem [resolvable:$true] %s46_s30 }
   0xb   :  { %52 = dma.hbm_to_vmem [thread:$0]  %s45_s29, 1024, %s47_s30, [#allocation6], %s6106_s23, %s6106_s23, %s6107_s24  }
   0xc   :  { %6097 = dma.done.wait [#allocation3], 16384  }
   0xd   :  { %6098 = vsyncadd [#allocation3], 4294950912 }
   0xe   :  { %6099 = dma.done.wait [#allocation6], 2048  }
   0xf   :  { %6100 = vsyncadd [#allocation6], 4294965248  ;;  %v185_v0 = vld [vmem:[#allocation2 + $0x2f0] sm:$0xff]  ;;  %v183_v1 = vld [vmem:[#allocation2 + $0x2e0] sm:$0xff]  ;;  %s5915_s5 = sshll.u32 %s10291_s3, 4  ;;  %s6110_s6 = smov [#allocation8]   ;;  %s5916_s5 = int_to_ptr.hbm [resolvable:$true] %s5915_s5 }
  0x10   :  { %v181_v2 = vld [vmem:[#allocation2 + $0x2d0] sm:$0xff]  ;;  %v6146_v3 = vand.u32 4294901760, %v185_v0  ;;  %v6148_v4 = vand.u32 4294901760, %v183_v1  ;;  %v179_v6 = vld [vmem:[#allocation2 + $0x2c0] sm:$0xff]  ;;  %s5913_s7 = sshll.u32 %s6110_s6, 4  ;;  %s6111_s3 = smov [#allocation9]   ;;  %s5914_s7 = int_to_ptr.vmem [resolvable:$true] %s5913_s7 }
  0x11   :  { %v6150_v5 = vand.u32 4294901760, %v181_v2  ;;  %v177_v7 = vld [vmem:[#allocation2 + $0x2b0] sm:$0xff]  ;;  %v175_v8 = vld [vmem:[#allocation2 + $0x2a0] sm:$0xff]  ;;  %v6152_v9 = vand.u32 4294901760, %v179_v6  ;;  %s5924_s8 = sshll.u32 %s6111_s3, 4  ;;  %s5926_s11 = sshll.u32 %s10292_s4, 4  ;;  %s5925_s8 = int_to_ptr.vmem [resolvable:$true] %s5924_s8  ;;  %s5927_s11 = int_to_ptr.hbm [resolvable:$true] %s5926_s11 }
  0x12   :  { %v6154_v10 = vand.u32 4294901760, %v177_v7  ;;  %v6156_v11 = vand.u32 4294901760, %v175_v8  ;;  %v173_v12 = vld [vmem:[#allocation2 + $0x290] sm:$0xff]  ;;  %v171_v13 = vld [vmem:[#allocation2 + $0x280] sm:$0xff]  ;;  %220 = vmatpush.msra.mxu0 %v6146_v3  ;;  %v6160_v14 = vsub.f32 %v185_v0, %v6146_v3  ;;  %v6163_v15 = vsub.f32 %v183_v1, %v6148_v4  ;;  %416 = vmatpush.msra.mxu3 %v6146_v3 }
  0x13   :  { %v6167_v16 = vsub.f32 %v181_v2, %v6150_v5  ;;  %v6169_v17 = vand.u32 4294901760, %v173_v12  ;;  %v169_v18 = vld [vmem:[#allocation2 + $0x270] sm:$0xff]  ;;  %v6172_v19 = vsub.f32 %v179_v6, %v6152_v9  ;;  %v6185_v25 = vand.u32 4294901760, %v171_v13  ;;  %v167_v26 = vld [vmem:[#allocation2 + $0x260] sm:$0xff] }
  0x14   :  { %v6175_v20 = vsub.f32 %v177_v7, %v6154_v10  ;;  %v6178_v21 = vsub.f32 %v175_v8, %v6156_v11  ;;  %222 = vmatpush.msra.mxu0 %v6148_v4  ;;  %363 = vmatpush.msra.mxu2 %v6160_v14  ;;  %v10308_v22 = vand.u32 4294901760, %v6160_v14  ;;  %v10307_v23 = vand.u32 4294901760, %v6163_v15  ;;  %v165_v36 = vld [vmem:[#allocation2 + $0x250] sm:$0xff]  ;;  %v163_v42 = vld [vmem:[#allocation2 + $0x240] sm:$0xff] }
  0x15   :  { %v10305_v24 = vand.u32 4294901760, %v6167_v16  ;;  %418 = vmatpush.msra.mxu3 %v6148_v4  ;;  %v10304_v27 = vand.u32 4294901760, %v6172_v19  ;;  %v6189_v28 = vand.u32 4294901760, %v169_v18  ;;  %v6192_v29 = vsub.f32 %v173_v12, %v6169_v17  ;;  %v161_v48 = vld [vmem:[#allocation2 + $0x230] sm:$0xff]  ;;  %v159_v54 = vld [vmem:[#allocation2 + $0x220] sm:$0xff] }
  0x16   :  { %224 = vmatpush.msra.mxu0 %v6150_v5  ;;  %366 = vmatpush.msra.mxu2 %v6163_v15  ;;  %v263_v30 = vsub.f32 %v6160_v14, %v10308_v22  ;;  %v269_v31 = vsub.f32 %v6163_v15, %v10307_v23  ;;  %v10302_v33 = vand.u32 4294901760, %v6175_v20  ;;  %v6207_v34 = vand.u32 4294901760, %v167_v26  ;;  %v217_v59 = vld [vmem:[#allocation2 + $0x3f0] sm:$0xff]  ;;  %v155_v2 = vld [vmem:[#allocation2 + $0x200] sm:$0xff] }
  0x17   :  { %v275_v32 = vsub.f32 %v6167_v16, %v10305_v24  ;;  %420 = vmatpush.msra.mxu3 %v6150_v5  ;;  %v10300_v35 = vand.u32 4294901760, %v6178_v21  ;;  %v281_v39 = vsub.f32 %v6172_v19, %v10304_v27  ;;  %v6216_v40 = vsub.f32 %v171_v13, %v6185_v25  ;;  %v157_v61 = vld [vmem:[#allocation2 + $0x210] sm:$0xff]  ;;  %v215_v6 = vld [vmem:[#allocation2 + $0x3e0] sm:$0xff] }
  0x18   :  { %226 = vmatpush.msra.mxu0 %v6152_v9  ;;  %v264_v37 = vand.u32 4294901760, %v263_v30  ;;  %369 = vmatpush.msra.mxu2 %v6167_v16  ;;  %v270_v38 = vand.u32 4294901760, %v269_v31  ;;  %v10299_v41 = vand.u32 4294901760, %v6192_v29  ;;  %v287_v44 = vsub.f32 %v6175_v20, %v10302_v33  ;;  %v213_v30 = vld [vmem:[#allocation2 + $0x3d0] sm:$0xff]  ;;  %v199_v23 = vld [vmem:[#allocation2 + $0x360] sm:$0xff] }
  0x19   :  { %422 = vmatpush.msra.mxu3 %v6152_v9  ;;  %v276_v43 = vand.u32 4294901760, %v275_v32  ;;  %v6224_v45 = vand.u32 4294901760, %v165_v36  ;;  %v6227_v46 = vsub.f32 %v169_v18, %v6189_v28  ;;  %v293_v47 = vsub.f32 %v6178_v21, %v10300_v35  ;;  %v201_v24 = vld [vmem:[#allocation2 + $0x370] sm:$0xff] }
  0x1a   :  { %228 = vmatpush.msra.mxu0 %v6154_v10  ;;  %265 = vmatpush.msra.mxu1 %v264_v37  ;;  %v282_v49 = vand.u32 4294901760, %v281_v39  ;;  %v6235_v50 = vand.u32 4294901760, %v163_v42  ;;  %v10298_v51 = vand.u32 4294901760, %v6216_v40  ;;  %v6239_v52 = vsub.f32 %v167_v26, %v6207_v34  ;;  %v68_v22 = vld [vmem:[#allocation5 + $0x10] sm:$0xff] }
  0x1b   :  { %372 = vmatpush.msra.mxu2 %v6172_v19  ;;  %424 = vmatpush.msra.mxu3 %v6154_v10  ;;  %v299_v53 = vsub.f32 %v6192_v29, %v10299_v41  ;;  %v288_v55 = vand.u32 4294901760, %v287_v44  ;;  %v6247_v56 = vand.u32 4294901760, %v161_v48  ;;  %v10296_v57 = vand.u32 4294901760, %v6227_v46  ;;  %v211_v44 = vld [vmem:[#allocation2 + $0x3c0] sm:$0xff] }
  0x1c   :  { %230 = vmatpush.msra.mxu0 %v6156_v11  ;;  %271 = vmatpush.msra.mxu1 %v270_v38  ;;  %v6251_v58 = vsub.f32 %v165_v36, %v6224_v45  ;;  %v294_v60 = vand.u32 4294901760, %v293_v47  ;;  %v305_v62 = vsub.f32 %v6216_v40, %v10298_v51  ;;  %v6259_v63 = vand.u32 4294901760, %v159_v54  ;;  %v203_v41 = vld [vmem:[#allocation2 + $0x380] sm:$0xff] }
  0x1d   :  { %375 = vmatpush.msra.mxu2 %v6175_v20  ;;  %426 = vmatpush.msra.mxu3 %v6156_v11  ;;  %10487 = vst [vmem:[#allocation15_spill] sm:$0xff] %v6247_v56  ;;  %v10295_v0 = vand.u32 4294901760, %v6239_v52  ;;  %v6263_v1 = vsub.f32 %v163_v42, %v6235_v50  ;;  %v300_v7 = vand.u32 4294901760, %v299_v53  ;;  %v6267_v8 = vand.u32 4294901760, %v217_v59 }
  0x1e   :  { %232 = vmatpush.msra.mxu0 %v6169_v17  ;;  %277 = vmatpush.msra.mxu1 %v276_v43  ;;  %10488 = vst [vmem:[#allocation16_spill] sm:$0xff] %v6259_v63  ;;  %v311_v12 = vsub.f32 %v6227_v46, %v10296_v57  ;;  %v6273_v13 = vand.u32 4294901760, %v157_v61  ;;  %v10294_v18 = vand.u32 4294901760, %v6251_v58  ;;  %v6277_v26 = vsub.f32 %v161_v48, %v6247_v56 }
  0x1f   :  { %378 = vmatpush.msra.mxu2 %v6178_v21  ;;  %428 = vmatpush.msra.mxu3 %v6169_v17  ;;  %v6281_v31 = vand.u32 4294901760, %v155_v2  ;;  %v6283_v32 = vand.u32 4294901760, %v215_v6  ;;  %v306_v36 = vand.u32 4294901760, %v305_v62  ;;  %v317_v37 = vsub.f32 %v6239_v52, %v10295_v0  ;;  %v205_v0 = vld [vmem:[#allocation2 + $0x390] sm:$0xff] }
  0x20   :  { %234 = vmatpush.msra.mxu0 %v6185_v25  ;;  %283 = vmatpush.msra.mxu1 %v282_v49  ;;  %10489 = vst [vmem:[#allocation17_spill] sm:$0xff] %v6273_v13  ;;  %v10293_v38 = vand.u32 4294901760, %v6263_v1  ;;  %v6291_v39 = vsub.f32 %v159_v54, %v6259_v63  ;;  %v6296_v42 = vsub.f32 %v217_v59, %v6267_v8  ;;  %v6298_v43 = vand.u32 4294901760, %v213_v30  ;;  %v209_v59 = vld [vmem:[#allocation2 + $0x3b0] sm:$0xff] }
  0x21   :  { %381 = vmatpush.msra.mxu2 %v6192_v29  ;;  %430 = vmatpush.msra.mxu3 %v6185_v25  ;;  %10490 = vst [vmem:[#allocation18_spill] sm:$0xff] %v6281_v31  ;;  %v312_v47 = vand.u32 4294901760, %v311_v12  ;;  %v323_v48 = vsub.f32 %v6251_v58, %v10294_v18  ;;  %v10297_v49 = vand.u32 4294901760, %v6277_v26  ;;  %v6306_v53 = vsub.f32 %v157_v61, %v6273_v13  ;;  %v207_v12 = vld [vmem:[#allocation2 + $0x3a0] sm:$0xff] }
  0x22   :  { %236 = vmatpush.msra.mxu0 %v6189_v28  ;;  %289 = vmatpush.msra.mxu1 %v288_v55  ;;  %10491 = vst [vmem:[#allocation19_spill] sm:$0xff] %v6296_v42  ;;  %v6311_v54 = vsub.f32 %v155_v2, %v6281_v31  ;;  %v6314_v55 = vsub.f32 %v215_v6, %v6283_v32  ;;  %v10301_v62 = vand.u32 4294901760, %v6291_v39  ;;  %v10303_v2 = vand.u32 4294901760, %v6296_v42 }
  0x23   :  { %384 = vmatpush.msra.mxu2 %v6216_v40  ;;  %432 = vmatpush.msra.mxu3 %v6189_v28  ;;  %v329_v61 = vsub.f32 %v6263_v1, %v10293_v38  ;;  %v6327_v6 = vsub.f32 %v213_v30, %v6298_v43  ;;  %v10306_v38 = vand.u32 4294901760, %v6306_v53  ;;  %v6334_v18 = vand.u32 4294901760, %v209_v59 }
  0x24   :  { %238 = vmatpush.msra.mxu0 %v6207_v34  ;;  %295 = vmatpush.msra.mxu1 %v294_v60  ;;  %10492 = vst [vmem:[#allocation20_spill] sm:$0xff] %v6314_v55  ;;  %v318_v60 = vand.u32 4294901760, %v317_v37  ;;  %v335_v37 = vsub.f32 %v6277_v26, %v10297_v49  ;;  %v10311_v30 = vand.u32 4294901760, %v6311_v54  ;;  %v10309_v57 = vand.u32 4294901760, %v6314_v55 }
  0x25   :  { %387 = vmatpush.msra.mxu2 %v6227_v46  ;;  %434 = vmatpush.msra.mxu3 %v6207_v34  ;;  %10493 = vst [vmem:[#allocation21_spill] sm:$0xff] %v6327_v6  ;;  %v6347_v51 = vand.u32 4294901760, %v207_v12  ;;  %v604_v35 = vsub.f32 %v6296_v42, %v10303_v2  ;;  %v6362_v33 = vsub.f32 %v209_v59, %v6334_v18  ;;  %v6369_v27 = vand.u32 4294901760, %v203_v41  ;;  %v195_v42 = vld [vmem:[#allocation2 + $0x340] sm:$0xff] }
  0x26   :  { %240 = vmatpush.msra.mxu0 %v6224_v45  ;;  %301 = vmatpush.msra.mxu1 %v300_v7  ;;  %v6321_v7 = vand.u32 4294901760, %v211_v44  ;;  %v610_v2 = vsub.f32 %v6314_v55, %v10309_v57  ;;  %v353_v59 = vsub.f32 %v6311_v54, %v10311_v30  ;;  %v10494_v57 = vand.u32 4294901760, %v6160_v14 }
  0x27   :  { %390 = vmatpush.msra.mxu2 %v6239_v52  ;;  %436 = vmatpush.msra.mxu3 %v6224_v45  ;;  %v10496_v55 = vand.u32 4294901760, %v6163_v15 }
  0x28   :  { %242 = vmatpush.msra.mxu0 %v6235_v50  ;;  %307 = vmatpush.msra.mxu1 %v306_v36  ;;  %v324_v36 = vand.u32 4294901760, %v323_v48  ;;  %v341_v48 = vsub.f32 %v6291_v39, %v10301_v62  ;;  %v6345_v49 = vsub.f32 %v211_v44, %v6321_v7  ;;  %v336_v44 = vand.u32 4294901760, %v335_v37 }
  0x29   :  { %393 = vmatpush.msra.mxu2 %v6251_v58  ;;  %438 = vmatpush.msra.mxu3 %v6235_v50  ;;  %v347_v62 = vsub.f32 %v6306_v53, %v10306_v38  ;;  %v6377_v38 = vsub.f32 %v207_v12, %v6347_v51  ;;  %v354_v12 = vand.u32 4294901760, %v353_v59 }
  0x2a   :  { %244 = vmatpush.msra.mxu0 %v6247_v56  ;;  %313 = vmatpush.msra.mxu1 %v312_v47  ;;  %v330_v47 = vand.u32 4294901760, %v329_v61  ;;  %v6355_v61 = vand.u32 4294901760, %v205_v0 }
  0x2b   :  { %396 = vmatpush.msra.mxu2 %v6263_v1  ;;  %440 = vmatpush.msra.mxu3 %v6247_v56  ;;  %v348_v37 = vand.u32 4294901760, %v347_v62  ;;  %v197_v62 = vld [vmem:[#allocation2 + $0x350] sm:$0xff]  ;;  %v10323_v15 = vand.u32 4294901760, %v6377_v38 }
  0x2c   :  { %246 = vmatpush.msra.mxu0 %v6259_v63  ;;  %319 = vmatpush.msra.mxu1 %v318_v60  ;;  %v65_v60 = vld [vmem:[#allocation5] sm:$0xff]  ;;  %v6386_v30 = vsub.f32 %v205_v0, %v6355_v61  ;;  %v6398_v0 = vand.u32 4294901760, %v199_v23 }
  0x2d   :  { %399 = vmatpush.msra.mxu2 %v6277_v26  ;;  %442 = vmatpush.msra.mxu3 %v6259_v63  ;;  %v6390_v63 = vand.u32 4294901760, %v201_v24  ;;  %v70_v14 = vadd.f32 %v68_v22, %v65_v60 }
  0x2e   :  { %248 = vmatpush.msra.mxu0 %v6273_v13  ;;  %325 = vmatpush.msra.mxu1 %v324_v36  ;;  %v342_v36 = vand.u32 4294901760, %v341_v48  ;;  %v10321_v56 = vand.u32 4294901760, %v6386_v30 }
  0x2f   :  { %402 = vmatpush.msra.mxu2 %v6291_v39  ;;  %444 = vmatpush.msra.mxu3 %v6273_v13  ;;  %v605_v13 = vand.u32 4294901760, %v604_v35  ;;  %v611_v35 = vand.u32 4294901760, %v610_v2  ;;  %v10498_v2 = vand.u32 4294901760, %v6167_v16  ;;  %v6413_v59 = vsub.f32 %v201_v24, %v6390_v63 }
  0x30   :  { %250 = vmatpush.msra.mxu0 %v6281_v31  ;;  %331 = vmatpush.msra.mxu1 %v330_v47  ;;  %v10495_v47 = vand.u32 4294901760, %v6327_v6  ;;  %v634_v24 = vsub.f32 %v6377_v38, %v10323_v15  ;;  %v189_v15 = vld [vmem:[#allocation2 + $0x310] sm:$0xff] }
  0x31   :  { %405 = vmatpush.msra.mxu2 %v6306_v53  ;;  %446 = vmatpush.msra.mxu3 %v6281_v31  ;;  %v10497_v31 = vand.u32 4294901760, %v6345_v49 }
  0x32   :  { %457 = vmatpush.msrb.mxu0 %v10494_v57  ;;  %v616_v48 = vsub.f32 %v6327_v6, %v10495_v47  ;;  %337 = vmatpush.msra.mxu1 %v336_v44  ;;  %v75_v57 = vld [vmem:[#allocation5 + $0x20] sm:$0xff]  ;;  %v6396_v47 = vsub.f32 %v203_v41, %v6369_v27  ;;  %v72_v44 = vmax.f32 %v65_v60, %v68_v22  ;;  %v82_v60 = vld [vmem:[#allocation5 + $0x30] sm:$0xff] }
  0x33   :  { %408 = vmatpush.msra.mxu2 %v6311_v54  ;;  %v622_v6 = vsub.f32 %v6345_v49, %v10497_v31  ;;  %606 = vmatpush.msrb.mxu3 %v605_v13  ;;  %v10501_v13 = vand.u32 4294901760, %v6172_v19  ;;  %v10502_v19 = vand.u32 4294901760, %v6175_v20  ;;  %v10503_v20 = vand.u32 4294901760, %v6178_v21 }
  0x34   :  { %461 = vmatpush.msrb.mxu0 %v10496_v55  ;;  %343 = vmatpush.msra.mxu1 %v342_v36  ;;  %v77_v55 = vadd.f32 %v75_v57, %v70_v14  ;;  %v617_v41 = vand.u32 4294901760, %v616_v48  ;;  %v79_v22 = vmax.f32 %v72_v44, %v75_v57  ;;  %v10499_v36 = vand.u32 4294901760, %v6362_v33  ;;  %v193_v57 = vld [vmem:[#allocation2 + $0x330] sm:$0xff] }
  0x35   :  { %561 = vmatpush.msrb.mxu2 %v6267_v8  ;;  %v6415_v14 = vand.u32 4294901760, %v197_v62  ;;  %612 = vmatpush.msrb.mxu3 %v611_v35  ;;  %v10322_v48 = vand.u32 4294901760, %v6396_v47  ;;  %v623_v44 = vand.u32 4294901760, %v622_v6  ;;  %v69_v35 = vld [vmem:[#allocation5 + $0x18] sm:$0xff] }
  0x36   :  { %465 = vmatpush.msrb.mxu0 %v10498_v2  ;;  %349 = vmatpush.msra.mxu1 %v348_v37  ;;  %v628_v31 = vsub.f32 %v6362_v33, %v10499_v36  ;;  %v6417_v16 = vadd.f32 %v82_v60, %v77_v55  ;;  %v6423_v37 = vsub.f32 %v199_v23, %v6398_v0  ;;  %v6429_v55 = vand.u32 4294901760, %v195_v42 }
  0x37   :  { %563 = vmatpush.msrb.mxu2 %v6283_v32  ;;  %v86_v2 = vmax.f32 %v79_v22, %v82_v60  ;;  %v640_v23 = vsub.f32 %v6386_v30, %v10321_v56  ;;  %618 = vmatpush.msrb.mxu3 %v617_v41  ;;  %v10324_v36 = vand.u32 4294901760, %v6413_v59  ;;  %v6442_v22 = vand.u32 4294901760, %v193_v57  ;;  %v191_v41 = vld [vmem:[#allocation2 + $0x320] sm:$0xff] }
  0x38   :  { %10500 = vst [vmem:[#allocation22_spill] sm:$0xff] %v6417_v16  ;;  %469 = vmatpush.msrb.mxu0 %v10501_v13  ;;  %355 = vmatpush.msra.mxu1 %v354_v12  ;;  %v66_v12 = vld [vmem:[#allocation5 + $0x8] sm:$0xff]  ;;  %v629_v6 = vand.u32 4294901760, %v628_v31  ;;  %v6440_v13 = vsub.f32 %v197_v62, %v6415_v14  ;;  %v635_v62 = vand.u32 4294901760, %v634_v24  ;;  %v6465_v24 = vand.u32 4294901760, %v191_v41 }
  0x39   :  { %565 = vmatpush.msrb.mxu2 %v6298_v43  ;;  %v71_v31 = vadd.f32 %v69_v35, %v66_v12  ;;  %624 = vmatpush.msrb.mxu3 %v623_v44  ;;  %v6455_v56 = vand.u32 4294901760, %v86_v2  ;;  %v73_v21 = vmax.f32 %v66_v12, %v69_v35  ;;  %v6468_v12 = vsub.f32 %v193_v57, %v6442_v22 }
  0x3a   :  { %473 = vmatpush.msrb.mxu0 %v10502_v19  ;;  %524 = vmatpush.msrb.mxu1 %v6146_v3  ;;  %v646_v3 = vsub.f32 %v6396_v47, %v10322_v48  ;;  %v6453_v19 = vsub.f32 %v195_v42, %v6429_v55  ;;  %v641_v48 = vand.u32 4294901760, %v640_v23  ;;  %v652_v42 = vsub.f32 %v6413_v59, %v10324_v36 }
  0x3b   :  { %567 = vmatpush.msrb.mxu2 %v6321_v7  ;;  %10504 = vst [vmem:[#allocation23_spill] sm:$0xff] %v6455_v56  ;;  %630 = vmatpush.msrb.mxu3 %v629_v6  ;;  %v663_v44 = vand.u32 4294901760, %v6440_v13  ;;  %v10507_v35 = vand.u32 4294901760, %v6423_v37  ;;  %v6481_v57 = vsub.f32 %v86_v2, %v6455_v56  ;;  %v6483_v36 = vand.u32 4294901760, %v189_v15 }
  0x3c   :  { %477 = vmatpush.msrb.mxu0 %v10503_v20  ;;  %526 = vmatpush.msrb.mxu1 %v6148_v4  ;;  %v76_v20 = vld [vmem:[#allocation5 + $0x28] sm:$0xff]  ;;  %v10505_v4 = vand.u32 4294901760, %v6192_v29  ;;  %v83_v29 = vld [vmem:[#allocation5 + $0x38] sm:$0xff]  ;;  %v647_v23 = vand.u32 4294901760, %v646_v3  ;;  %v653_v3 = vand.u32 4294901760, %v652_v42  ;;  %v675_v2 = vand.u32 4294901760, %v6468_v12 }
  0x3d   :  { %569 = vmatpush.msrb.mxu2 %v6334_v18  ;;  %v78_v60 = vadd.f32 %v76_v20, %v71_v31  ;;  %v658_v6 = vsub.f32 %v6423_v37, %v10507_v35  ;;  %636 = vmatpush.msrb.mxu3 %v635_v62  ;;  %v6494_v62 = vsub.f32 %v191_v41, %v6465_v24  ;;  %v10512_v42 = vand.u32 4294901760, %v6251_v58 }
  0x3e   :  { %481 = vmatpush.msrb.mxu0 %v10505_v4  ;;  %528 = vmatpush.msrb.mxu1 %v6150_v5  ;;  %v10506_v5 = vand.u32 4294901760, %v6216_v40  ;;  %v669_v4 = vand.u32 4294901760, %v6453_v19  ;;  %v187_v40 = vld [vmem:[#allocation2 + $0x300] sm:$0xff]  ;;  %v6509_v41 = vsub.f32 %v189_v15, %v6483_v36 }
  0x3f   :  { %571 = vmatpush.msrb.mxu2 %v6347_v51  ;;  %v6476_v31 = vadd.f32 %v83_v29, %v78_v60  ;;  %642 = vmatpush.msrb.mxu3 %v641_v48  ;;  %v664_v60 = vsub.f32 %v6440_v13, %v663_v44  ;;  %v681_v35 = vand.u32 4294901760, %v6494_v62 }
  0x40   :  { %485 = vmatpush.msrb.mxu0 %v10506_v5  ;;  %530 = vmatpush.msrb.mxu1 %v6152_v9  ;;  %v80_v5 = vmax.f32 %v73_v21, %v76_v20  ;;  %v10509_v9 = vand.u32 4294901760, %v6227_v46  ;;  %v10510_v21 = vand.u32 4294901760, %v6239_v52  ;;  %v659_v46 = vand.u32 4294901760, %v658_v6 }
  0x41   :  { %10508 = vst [vmem:[#allocation24_spill] sm:$0xff] %v6476_v31  ;;  %573 = vmatpush.msrb.mxu2 %v6355_v61  ;;  %648 = vmatpush.msrb.mxu3 %v647_v23  ;;  %v670_v48 = vsub.f32 %v6453_v19, %v669_v4  ;;  %v6506_v20 = vand.u32 4294901760, %v6481_v57  ;;  %v676_v23 = vsub.f32 %v6468_v12, %v675_v2  ;;  %v10513_v6 = vand.u32 4294901760, %v6263_v1 }
  0x42   :  { %489 = vmatpush.msrb.mxu0 %v10509_v9  ;;  %532 = vmatpush.msrb.mxu1 %v6154_v10  ;;  %v6499_v10 = vand.u32 4294901760, %v187_v40  ;;  %v87_v52 = vmax.f32 %v80_v5, %v83_v29  ;;  %v687_v29 = vand.u32 4294901760, %v6509_v41  ;;  %v10515_v9 = vand.u32 4294901760, %v6277_v26 }
  0x43   :  { %575 = vmatpush.msrb.mxu2 %v6369_v27  ;;  %10511 = vst [vmem:[#allocation25_spill] sm:$0xff] %v6506_v20  ;;  %654 = vmatpush.msrb.mxu3 %v653_v3  ;;  %v254_v15 = vsub.f32 %v6481_v57, %v6506_v20  ;;  %v682_v1 = vsub.f32 %v6494_v62, %v681_v35 }
  0x44   :  { %493 = vmatpush.msrb.mxu0 %v10510_v21  ;;  %534 = vmatpush.msrb.mxu1 %v6156_v11  ;;  %v665_v11 = vand.u32 4294901760, %v664_v60  ;;  %v6523_v58 = vsub.f32 %v187_v40, %v6499_v10  ;;  %v6529_v5 = vand.u32 4294901760, %v87_v52  ;;  %v10516_v40 = vand.u32 4294901760, %v6291_v39 }
  0x45   :  { %577 = vmatpush.msrb.mxu2 %v6390_v63  ;;  %660 = vmatpush.msrb.mxu3 %v659_v46  ;;  %v6543_v26 = vand.u32 4294901760, %v254_v15  ;;  %v10518_v21 = vand.u32 4294901760, %v6306_v53  ;;  %v10519_v39 = vand.u32 4294901760, %v6311_v54  ;;  %v10524_v54 = vld [vmem:[#allocation16_spill] sm:$0xff] }
  0x46   :  { %497 = vmatpush.msrb.mxu0 %v10512_v42  ;;  %536 = vmatpush.msrb.mxu1 %v6169_v17  ;;  %v671_v17 = vand.u32 4294901760, %v670_v48  ;;  %10514 = vst [vmem:[#allocation26_spill] sm:$0xff] %v6529_v5  ;;  %v693_v3 = vand.u32 4294901760, %v6523_v58  ;;  %v6549_v60 = vsub.f32 %v87_v52, %v6529_v5  ;;  %v10521_v48 = vld [vmem:[#allocation19_spill] sm:$0xff] }
  0x47   :  { %579 = vmatpush.msrb.mxu2 %v6398_v0  ;;  %666 = vmatpush.msrb.mxu3 %v665_v11  ;;  %v10522_v52 = vld [vmem:[#allocation15_spill] sm:$0xff] }
  0x48   :  { %501 = vmatpush.msrb.mxu0 %v10513_v6  ;;  %538 = vmatpush.msrb.mxu1 %v6185_v25  ;;  %v677_v25 = vand.u32 4294901760, %v676_v23  ;;  %10517 = vst [vmem:[#allocation27_spill] sm:$0xff] %v6549_v60  ;;  %v694_v46 = vsub.f32 %v6523_v58, %v693_v3  ;;  %v10525_v23 = vld [vmem:[#allocation21_spill] sm:$0xff]  ;;  %v10526_v6 = vand.u32 4294901760, %v10521_v48 }
  0x49   :  { %581 = vmatpush.msrb.mxu2 %v6415_v14  ;;  %672 = vmatpush.msrb.mxu3 %v671_v17  ;;  %v10527_v17 = vld [vmem:[#allocation17_spill] sm:$0xff] }
  0x4a   :  { %505 = vmatpush.msrb.mxu0 %v10515_v9  ;;  %540 = vmatpush.msrb.mxu1 %v6189_v28  ;;  %v688_v28 = vsub.f32 %v6509_v41, %v687_v29  ;;  %v695_v42 = vand.u32 4294901760, %v694_v46 }
  0x4b   :  { %583 = vmatpush.msrb.mxu2 %v6429_v55  ;;  %678 = vmatpush.msrb.mxu3 %v677_v25  ;;  %v10530_v25 = vld [vmem:[#allocation18_spill] sm:$0xff] }
  0x4c   :  { %509 = vmatpush.msrb.mxu0 %v10516_v40  ;;  %542 = vmatpush.msrb.mxu1 %v6207_v34  ;;  %v683_v34 = vand.u32 4294901760, %v682_v1  ;;  %v689_v53 = vand.u32 4294901760, %v688_v28  ;;  %v10531_v1 = vand.u32 4294901760, %v10525_v23  ;;  %v10532_v40 = vand.u32 4294901760, %v6345_v49  ;;  %v170_v28 = vld [vmem:[#allocation2 + $0x278] sm:$0xff] }
  0x4d   :  { %585 = vmatpush.msrb.mxu2 %v6442_v22  ;;  %256 = vmatmul.f32.vlgmr.msra.gmra.mxu0 %v6543_v26 }
  0x4e   :  { %513 = vmatpush.msrb.mxu0 %v10518_v21  ;;  %544 = vmatpush.msrb.mxu1 %v6224_v45  ;;  %v6564_v45 = vand.u32 4294901760, %v6549_v60 }
  0x4f   :  { %587 = vmatpush.msrb.mxu2 %v6465_v24  ;;  %684 = vmatpush.msrb.mxu3 %v683_v34  ;;  %v168_v34 = vld [vmem:[#allocation2 + $0x268] sm:$0xff] }
  0x50   :  { %517 = vmatpush.msrb.mxu0 %v10519_v39  ;;  %546 = vmatpush.msrb.mxu1 %v6235_v50  ;;  %10520 = vst [vmem:[#allocation28_spill] sm:$0xff] %v6564_v45  ;;  %v10523_v50 = vld [vmem:[#allocation20_spill] sm:$0xff]  ;;  %v595_v11 = vsub.f32 %v6549_v60, %v6564_v45  ;;  %v6711_v39 = vand.u32 4294901760, %v170_v28 }
  0x51   :  { %589 = vmatpush.msrb.mxu2 %v6483_v36  ;;  %690 = vmatpush.msrb.mxu3 %v689_v53  ;;  %v10528_v15 = vand.u32 4294901760, %v10523_v50 }
  0x52   :  { %704 = vmatpush.msra.mxu0 %v10521_v48  ;;  %548 = vmatpush.msrb.mxu1 %v10522_v52  ;;  %v6583_v9 = vand.u32 4294901760, %v595_v11 }
  0x53   :  { %411 = vmatmul.f32.vlgmr.msra.gmra.mxu2 %v6481_v57  ;;  %450 = vmatmul.f32.vlgmr.msra.gmra.mxu3 %v6506_v20 }
  0x54   :  { %707 = vmatpush.msra.mxu0 %v10523_v50  ;;  %550 = vmatpush.msrb.mxu1 %v10524_v54  ;;  %10529 = vst [vmem:[#allocation19_spill] sm:$0xff] %v6583_v9  ;;  %v166_v50 = vld [vmem:[#allocation2 + $0x258] sm:$0xff] }
  0x55   :  { %591 = vmatpush.msrb.mxu2 %v6499_v10  ;;  %696 = vmatpush.msrb.mxu3 %v695_v42 }
  0x56   :  { %710 = vmatpush.msra.mxu0 %v10525_v23  ;;  %552 = vmatpush.msrb.mxu1 %v10527_v17 }
  0x57   :  { %798 = vmatpush.msra.mxu2 %v10526_v6  ;;  %357 = vmatmul.f32.vlgmr.msra.gmra.mxu1 %v6455_v56  ;;  %v6738_v6 = vsub.f32 %v170_v28, %v6711_v39 }
  0x58   :  { %713 = vmatpush.msra.mxu0 %v6345_v49  ;;  %865 = vmatpush.msra.mxu3 %v6267_v8  ;;  %v10538_v49 = vand.u32 4294901760, %v6423_v37 }
  0x59   :  { %802 = vmatpush.msra.mxu2 %v10528_v15  ;;  %554 = vmatpush.msrb.mxu1 %v10530_v25  ;;  %v6744_v25 = vand.u32 4294901760, %v166_v50 }
  0x5a   :  { %716 = vmatpush.msra.mxu0 %v6362_v33  ;;  %867 = vmatpush.msra.mxu3 %v6283_v32 }
  0x5b   :  { %757 = vmatpush.msra.mxu1 %v6267_v8  ;;  %806 = vmatpush.msra.mxu2 %v10531_v1  ;;  %v10533_v8 = vand.u32 4294901760, %v6362_v33  ;;  %v10535_v33 = vand.u32 4294901760, %v6386_v30 }
  0x5c   :  { %597 = vmatmul.f32.vlgmr.msrb.gmra.mxu2 %v6583_v9  ;;  %719 = vmatpush.msra.mxu0 %v6377_v38 }
  0x5d   :  { %759 = vmatpush.msra.mxu1 %v6283_v32  ;;  %810 = vmatpush.msra.mxu2 %v10532_v40  ;;  %v10534_v32 = vand.u32 4294901760, %v6377_v38  ;;  %v186_v38 = vld [vmem:[#allocation2 + $0x2f8] sm:$0xff] }
  0x5e   :  { %869 = vmatpush.msra.mxu3 %v6298_v43  ;;  %519 = vmatmul.f32.vlgmr.msrb.gmra.mxu0 %v6455_v56 }
  0x5f   :  { %698 = vmatmul.f32.vlgmr.msrb.gmra.mxu3 %v6529_v5  ;;  %722 = vmatpush.msra.mxu0 %v6386_v30  ;;  %v182_v30 = vld [vmem:[#allocation2 + $0x2d8] sm:$0xff] }
  0x60   :  { %761 = vmatpush.msra.mxu1 %v6298_v43  ;;  %814 = vmatpush.msra.mxu2 %v10533_v8  ;;  %v10536_v43 = vand.u32 4294901760, %v6396_v47  ;;  %v162_v8 = vld [vmem:[#allocation2 + $0x238] sm:$0xff] }
  0x61   :  { %871 = vmatpush.msra.mxu3 %v6321_v7  ;;  %556 = vmatmul.f32.vlgmr.msrb.gmra.mxu1 %v6455_v56 }
  0x62   :  { %725 = vmatpush.msra.mxu0 %v6396_v47  ;;  %763 = vmatpush.msra.mxu1 %v6321_v7  ;;  %v6631_v7 = vand.u32 4294901760, %v186_v38  ;;  %v6645_v47 = vand.u32 4294901760, %v182_v30 }
  0x63   :  { %818 = vmatpush.msra.mxu2 %v10534_v32  ;;  %873 = vmatpush.msra.mxu3 %v6334_v18 }
  0x64   :  { %728 = vmatpush.msra.mxu0 %v6413_v59  ;;  %765 = vmatpush.msra.mxu1 %v6334_v18  ;;  %v10537_v18 = vand.u32 4294901760, %v6413_v59  ;;  %v178_v59 = vld [vmem:[#allocation2 + $0x2b8] sm:$0xff] }
  0x65   :  { %822 = vmatpush.msra.mxu2 %v10535_v33  ;;  %875 = vmatpush.msra.mxu3 %v6347_v51 }
  0x66   :  { %731 = vmatpush.msra.mxu0 %v6423_v37  ;;  %767 = vmatpush.msra.mxu1 %v6347_v51  ;;  %v184_v51 = vld [vmem:[#allocation2 + $0x2e8] sm:$0xff] }
  0x67   :  { %826 = vmatpush.msra.mxu2 %v10536_v43  ;;  %877 = vmatpush.msra.mxu3 %v6355_v61 }
  0x68   :  { %734 = vmatpush.msra.mxu0 %v6440_v13  ;;  %769 = vmatpush.msra.mxu1 %v6355_v61  ;;  %v6638_v61 = vand.u32 4294901760, %v184_v51  ;;  %v176_v13 = vld [vmem:[#allocation2 + $0x2a8] sm:$0xff] }
  0x69   :  { %830 = vmatpush.msra.mxu2 %v10537_v18  ;;  %879 = vmatpush.msra.mxu3 %v6369_v27  ;;  %v10325_v18 = vand.u32 4294901760, %v6738_v6 }
  0x6a   :  { %737 = vmatpush.msra.mxu0 %v6453_v19  ;;  %771 = vmatpush.msra.mxu1 %v6369_v27  ;;  %v180_v27 = vld [vmem:[#allocation2 + $0x2c8] sm:$0xff]  ;;  %v6658_v37 = vsub.f32 %v184_v51, %v6638_v61 }
  0x6b   :  { %834 = vmatpush.msra.mxu2 %v10538_v49  ;;  %881 = vmatpush.msra.mxu3 %v6390_v63  ;;  %v160_v51 = vld [vmem:[#allocation2 + $0x228] sm:$0xff] }
  0x6c   :  { %740 = vmatpush.msra.mxu0 %v6468_v12  ;;  %773 = vmatpush.msra.mxu1 %v6390_v63  ;;  %v6648_v63 = vsub.f32 %v186_v38, %v6631_v7  ;;  %v174_v12 = vld [vmem:[#allocation2 + $0x298] sm:$0xff]  ;;  %v6778_v28 = vand.u32 4294901760, %v160_v51 }
  0x6d   :  { %838 = vmatpush.msra.mxu2 %v663_v44  ;;  %883 = vmatpush.msra.mxu3 %v6398_v0  ;;  %v6669_v44 = vsub.f32 %v182_v30, %v6645_v47 }
  0x6e   :  { %743 = vmatpush.msra.mxu0 %v6494_v62  ;;  %775 = vmatpush.msra.mxu1 %v6398_v0  ;;  %v6655_v0 = vand.u32 4294901760, %v180_v27  ;;  %v10337_v19 = vand.u32 4294901760, %v6648_v63  ;;  %v172_v62 = vld [vmem:[#allocation2 + $0x288] sm:$0xff] }
  0x6f   :  { %842 = vmatpush.msra.mxu2 %v669_v4  ;;  %885 = vmatpush.msra.mxu3 %v6415_v14  ;;  %v10335_v4 = vand.u32 4294901760, %v6658_v37 }
  0x70   :  { %746 = vmatpush.msra.mxu0 %v6509_v41  ;;  %777 = vmatpush.msra.mxu1 %v6415_v14  ;;  %v6665_v14 = vand.u32 4294901760, %v178_v59  ;;  %v6690_v41 = vand.u32 4294901760, %v174_v12 }
  0x71   :  { %846 = vmatpush.msra.mxu2 %v675_v2  ;;  %887 = vmatpush.msra.mxu3 %v6429_v55  ;;  %v6680_v2 = vsub.f32 %v180_v27, %v6655_v0  ;;  %v6766_v27 = vand.u32 4294901760, %v162_v8 }
  0x72   :  { %749 = vmatpush.msra.mxu0 %v6523_v58  ;;  %779 = vmatpush.msra.mxu1 %v6429_v55  ;;  %v6676_v55 = vand.u32 4294901760, %v176_v13  ;;  %v6703_v58 = vand.u32 4294901760, %v172_v62  ;;  %v6720_v52 = vsub.f32 %v174_v12, %v6690_v41  ;;  %v158_v12 = vld [vmem:[#allocation2 + $0x218] sm:$0xff] }
  0x73   :  { %850 = vmatpush.msra.mxu2 %v681_v35  ;;  %889 = vmatpush.msra.mxu3 %v6442_v22  ;;  %v10334_v35 = vand.u32 4294901760, %v6669_v44 }
  0x74   :  { %752 = vmatmul.f32.vlgmr.msra.gmra.mxu0 %v6549_v60  ;;  %781 = vmatpush.msra.mxu1 %v6442_v22  ;;  %v945_v22 = vsub.f32 %v6648_v63, %v10337_v19  ;;  %v6707_v21 = vsub.f32 %v176_v13, %v6676_v55  ;;  %v6733_v23 = vsub.f32 %v172_v62, %v6703_v58  ;;  %v10328_v1 = vand.u32 4294901760, %v6720_v52 }
  0x75   :  { %902 = vmatpush.msrb.mxu0 %v6631_v7  ;;  %854 = vmatpush.msra.mxu2 %v687_v29  ;;  %v6694_v29 = vsub.f32 %v178_v59, %v6665_v14  ;;  %v957_v53 = vsub.f32 %v6669_v44, %v10334_v35  ;;  %v6769_v59 = vsub.f32 %v166_v50, %v6744_v25 }
  0x76   :  { %891 = vmatpush.msra.mxu3 %v6465_v24  ;;  %783 = vmatpush.msra.mxu1 %v6465_v24  ;;  %v951_v24 = vsub.f32 %v6658_v37, %v10335_v4  ;;  %v946_v46 = vand.u32 4294901760, %v945_v22  ;;  %v10330_v11 = vand.u32 4294901760, %v6707_v21  ;;  %v10327_v38 = vand.u32 4294901760, %v6733_v23 }
  0x77   :  { %904 = vmatpush.msrb.mxu0 %v6638_v61  ;;  %858 = vmatpush.msra.mxu2 %v693_v3  ;;  %v10332_v3 = vand.u32 4294901760, %v6680_v2  ;;  %v10331_v48 = vand.u32 4294901760, %v6694_v29  ;;  %v958_v17 = vand.u32 4294901760, %v957_v53  ;;  %v981_v30 = vsub.f32 %v6720_v52, %v10328_v1  ;;  %v156_v53 = vld [vmem:[#allocation2 + $0x208] sm:$0xff] }
  0x78   :  { %893 = vmatpush.msra.mxu3 %v6483_v36  ;;  %860 = vmatmul.f32.vlgmr.msra.gmra.mxu2 %v6529_v5  ;;  %v952_v54 = vand.u32 4294901760, %v951_v24  ;;  %v975_v33 = vsub.f32 %v6707_v21, %v10330_v11  ;;  %v987_v22 = vsub.f32 %v6733_v23, %v10327_v38  ;;  %v212_v1 = vld [vmem:[#allocation2 + $0x3c8] sm:$0xff] }
  0x79   :  { %906 = vmatpush.msrb.mxu0 %v6645_v47  ;;  %1045 = vmatpush.msrb.mxu2 %v6648_v63  ;;  %v963_v42 = vsub.f32 %v6680_v2, %v10332_v3  ;;  %v969_v15 = vsub.f32 %v6694_v29, %v10331_v48  ;;  %v982_v50 = vand.u32 4294901760, %v981_v30  ;;  %v6807_v30 = vsub.f32 %v160_v51, %v6778_v28  ;;  %v210_v3 = vld [vmem:[#allocation2 + $0x3b8] sm:$0xff] }
  0x7a   :  { %785 = vmatpush.msra.mxu1 %v6483_v36  ;;  %895 = vmatpush.msra.mxu3 %v6499_v10  ;;  %v6724_v36 = vand.u32 4294901760, %v168_v34  ;;  %v976_v62 = vand.u32 4294901760, %v975_v33  ;;  %v988_v33 = vand.u32 4294901760, %v987_v22  ;;  %v6851_v4 = vand.u32 4294901760, %v210_v3 }
  0x7b   :  { %897 = vmatmul.f32.vlgmr.msra.gmra.mxu3 %v6529_v5  ;;  %908 = vmatpush.msrb.mxu0 %v6655_v0  ;;  %v964_v32 = vand.u32 4294901760, %v963_v42  ;;  %v970_v49 = vand.u32 4294901760, %v969_v15  ;;  %v10329_v42 = vand.u32 4294901760, %v6769_v59  ;;  %v10543_v5 = vand.u32 4294901760, %v6648_v63 }
  0x7c   :  { %1048 = vmatpush.msrb.mxu2 %v6658_v37  ;;  %1098 = vmatpush.msrb.mxu3 %v6631_v7  ;;  %v6750_v40 = vsub.f32 %v168_v34, %v6724_v36  ;;  %v218_v34 = vld [vmem:[#allocation2 + $0x3f8] sm:$0xff] }
  0x7d   :  { %787 = vmatpush.msra.mxu1 %v6499_v10  ;;  %910 = vmatpush.msrb.mxu0 %v6665_v14  ;;  %v164_v10 = vld [vmem:[#allocation2 + $0x248] sm:$0xff]  ;;  %v6800_v15 = vand.u32 4294901760, %v218_v34 }
  0x7e   :  { %791 = vmatmul.f32.vlgmr.msra.gmra.mxu1 %v6564_v45  ;;  %1051 = vmatpush.msrb.mxu2 %v6669_v44  ;;  %v6756_v43 = vand.u32 4294901760, %v164_v10  ;;  %v10326_v13 = vand.u32 4294901760, %v6750_v40 }
  0x7f   :  { %947 = vmatpush.msrb.mxu1 %v946_v46  ;;  %1100 = vmatpush.msrb.mxu3 %v6638_v61  ;;  %v993_v46 = vsub.f32 %v6738_v6, %v10325_v18 }
  0x80   :  { %912 = vmatpush.msrb.mxu0 %v6676_v55  ;;  %1054 = vmatpush.msrb.mxu2 %v6680_v2  ;;  %v6781_v24 = vsub.f32 %v164_v10, %v6756_v43  ;;  %v6793_v10 = vsub.f32 %v162_v8, %v6766_v27 }
  0x81   :  { %953 = vmatpush.msrb.mxu1 %v952_v54  ;;  %1102 = vmatpush.msrb.mxu3 %v6645_v47  ;;  %v6789_v54 = vand.u32 4294901760, %v158_v12  ;;  %v994_v18 = vand.u32 4294901760, %v993_v46 }
  0x82   :  { %914 = vmatpush.msrb.mxu0 %v6690_v41  ;;  %1057 = vmatpush.msrb.mxu2 %v6694_v29  ;;  %v10333_v8 = vand.u32 4294901760, %v6781_v24  ;;  %v10336_v22 = vand.u32 4294901760, %v6793_v10 }
  0x83   :  { %959 = vmatpush.msrb.mxu1 %v958_v17  ;;  %1104 = vmatpush.msrb.mxu3 %v6655_v0  ;;  %v999_v17 = vsub.f32 %v6750_v40, %v10326_v13  ;;  %v214_v13 = vld [vmem:[#allocation2 + $0x3d8] sm:$0xff]  ;;  %v6817_v38 = vsub.f32 %v158_v12, %v6789_v54  ;;  %v10338_v12 = vand.u32 4294901760, %v6807_v30 }
  0x84   :  { %916 = vmatpush.msrb.mxu0 %v6703_v58  ;;  %1060 = vmatpush.msrb.mxu2 %v6707_v21  ;;  %v6834_v48 = vand.u32 4294901760, %v214_v13 }
  0x85   :  { %965 = vmatpush.msrb.mxu1 %v964_v32  ;;  %1106 = vmatpush.msrb.mxu3 %v6665_v14  ;;  %v216_v32 = vld [vmem:[#allocation2 + $0x3e8] sm:$0xff]  ;;  %v1000_v46 = vand.u32 4294901760, %v999_v17 }
  0x86   :  { %918 = vmatpush.msrb.mxu0 %v6711_v39  ;;  %1063 = vmatpush.msrb.mxu2 %v6720_v52  ;;  %v6819_v51 = vand.u32 4294901760, %v216_v32  ;;  %v6859_v19 = vsub.f32 %v214_v13, %v6834_v48 }
  0x87   :  { %971 = vmatpush.msrb.mxu1 %v970_v49  ;;  %1108 = vmatpush.msrb.mxu3 %v6676_v55  ;;  %v6803_v49 = vand.u32 4294901760, %v156_v53 }
  0x88   :  { %920 = vmatpush.msrb.mxu0 %v6724_v36  ;;  %1066 = vmatpush.msrb.mxu2 %v6733_v23  ;;  %10540 = vst [vmem:[#allocation20_spill] sm:$0xff] %v6819_v51 }
  0x89   :  { %977 = vmatpush.msrb.mxu1 %v976_v62  ;;  %1110 = vmatpush.msrb.mxu3 %v6690_v41  ;;  %10539 = vst [vmem:[#allocation15_spill] sm:$0xff] %v6803_v49  ;;  %v1005_v62 = vsub.f32 %v6769_v59, %v10329_v42  ;;  %v1011_v42 = vsub.f32 %v6781_v24, %v10333_v8 }
  0x8a   :  { %922 = vmatpush.msrb.mxu0 %v6744_v25  ;;  %1069 = vmatpush.msrb.mxu2 %v6738_v6  ;;  %v6832_v11 = vsub.f32 %v156_v53, %v6803_v49  ;;  %v10339_v53 = vand.u32 4294901760, %v6817_v38  ;;  %v6846_v8 = vsub.f32 %v216_v32, %v6819_v51 }
  0x8b   :  { %983 = vmatpush.msrb.mxu1 %v982_v50  ;;  %1112 = vmatpush.msrb.mxu3 %v6703_v58  ;;  %v6824_v50 = vsub.f32 %v218_v34, %v6800_v15  ;;  %v6838_v34 = vand.u32 4294901760, %v212_v1  ;;  %v1006_v17 = vand.u32 4294901760, %v1005_v62  ;;  %v1012_v62 = vand.u32 4294901760, %v1011_v42 }
  0x8c   :  { %924 = vmatpush.msrb.mxu0 %v6756_v43  ;;  %1072 = vmatpush.msrb.mxu2 %v6750_v40  ;;  %v10542_v32 = vand.u32 4294901760, %v6832_v11 }
  0x8d   :  { %989 = vmatpush.msrb.mxu1 %v988_v33  ;;  %1114 = vmatpush.msrb.mxu3 %v6711_v39  ;;  %v1017_v33 = vsub.f32 %v6793_v10, %v10336_v22  ;;  %v1023_v22 = vsub.f32 %v6807_v30, %v10338_v12  ;;  %v6864_v35 = vsub.f32 %v212_v1, %v6838_v34  ;;  %v10541_v1 = vand.u32 4294901760, %v6824_v50 }
  0x8e   :  { %926 = vmatpush.msrb.mxu0 %v6766_v27  ;;  %1075 = vmatpush.msrb.mxu2 %v6769_v59  ;;  %v1029_v12 = vsub.f32 %v6817_v38, %v10339_v53  ;;  %v1035_v45 = vsub.f32 %v6832_v11, %v10542_v32 }
  0x8f   :  { %995 = vmatpush.msrb.mxu1 %v994_v18  ;;  %1116 = vmatpush.msrb.mxu3 %v6724_v36  ;;  %v208_v18 = vld [vmem:[#allocation2 + $0x3a8] sm:$0xff]  ;;  %v1018_v42 = vand.u32 4294901760, %v1017_v33  ;;  %v1286_v31 = vsub.f32 %v6824_v50, %v10541_v1  ;;  %v1024_v53 = vand.u32 4294901760, %v1023_v22  ;;  %v202_v1 = vld [vmem:[#allocation2 + $0x378] sm:$0xff] }
  0x90   :  { %928 = vmatpush.msrb.mxu0 %v6778_v28  ;;  %1078 = vmatpush.msrb.mxu2 %v6781_v24  ;;  %v6871_v13 = vand.u32 4294901760, %v208_v18  ;;  %v204_v33 = vld [vmem:[#allocation2 + $0x388] sm:$0xff]  ;;  %v1030_v22 = vand.u32 4294901760, %v1029_v12  ;;  %v1036_v12 = vand.u32 4294901760, %v1035_v45  ;;  %v6912_v20 = vand.u32 4294901760, %v202_v1 }
  0x91   :  { %1001 = vmatpush.msrb.mxu1 %v1000_v46  ;;  %1118 = vmatpush.msrb.mxu3 %v6744_v25  ;;  %v206_v46 = vld [vmem:[#allocation2 + $0x398] sm:$0xff]  ;;  %v6899_v9 = vand.u32 4294901760, %v204_v33  ;;  %v1287_v63 = vand.u32 4294901760, %v1286_v31  ;;  %v10548_v31 = vand.u32 4294901760, %v6864_v35 }
  0x92   :  { %930 = vmatpush.msrb.mxu0 %v6789_v54  ;;  %1081 = vmatpush.msrb.mxu2 %v6793_v10  ;;  %v6886_v60 = vand.u32 4294901760, %v206_v46  ;;  %v6897_v16 = vsub.f32 %v208_v18, %v6871_v13 }
  0x93   :  { %1007 = vmatpush.msrb.mxu1 %v1006_v17  ;;  %1120 = vmatpush.msrb.mxu3 %v6756_v43  ;;  %v6879_v17 = vsub.f32 %v210_v3, %v6851_v4  ;;  %v200_v3 = vld [vmem:[#allocation2 + $0x368] sm:$0xff] }
  0x94   :  { %932 = vmatpush.msrb.mxu0 %v6803_v49  ;;  %1084 = vmatpush.msrb.mxu2 %v6807_v30  ;;  %v6910_v56 = vsub.f32 %v206_v46, %v6886_v60  ;;  %v6923_v46 = vsub.f32 %v204_v33, %v6899_v9  ;;  %v6935_v33 = vsub.f32 %v202_v1, %v6912_v20 }
  0x95   :  { %1013 = vmatpush.msrb.mxu1 %v1012_v62  ;;  %1122 = vmatpush.msrb.mxu3 %v6766_v27  ;;  %v10544_v62 = vand.u32 4294901760, %v6846_v8 }
  0x96   :  { %1139 = vmatpush.msra.mxu0 %v10543_v5  ;;  %1087 = vmatpush.msrb.mxu2 %v6817_v38  ;;  %v10545_v5 = vand.u32 4294901760, %v6658_v37  ;;  %v10547_v37 = vand.u32 4294901760, %v6669_v44  ;;  %v10549_v44 = vand.u32 4294901760, %v6680_v2  ;;  %v10551_v2 = vand.u32 4294901760, %v6694_v29 }
  0x97   :  { %1019 = vmatpush.msrb.mxu1 %v1018_v42  ;;  %1124 = vmatpush.msrb.mxu3 %v6778_v28  ;;  %v1292_v32 = vsub.f32 %v6846_v8, %v10544_v62  ;;  %v10546_v62 = vand.u32 4294901760, %v6859_v19  ;;  %v6925_v42 = vand.u32 4294901760, %v200_v3  ;;  %v10553_v29 = vand.u32 4294901760, %v6707_v21 }
  0x98   :  { %1143 = vmatpush.msra.mxu0 %v10545_v5  ;;  %1090 = vmatpush.msrb.mxu2 %v6832_v11  ;;  %v198_v5 = vld [vmem:[#allocation2 + $0x358] sm:$0xff]  ;;  %v10554_v21 = vand.u32 4294901760, %v6720_v52 }
  0x99   :  { %1025 = vmatpush.msrb.mxu1 %v1024_v53  ;;  %1126 = vmatpush.msrb.mxu3 %v6789_v54  ;;  %v1298_v18 = vsub.f32 %v6859_v19, %v10546_v62  ;;  %v1304_v53 = vsub.f32 %v6864_v35, %v10548_v31  ;;  %v1293_v45 = vand.u32 4294901760, %v1292_v32  ;;  %v10351_v62 = vand.u32 4294901760, %v6910_v56 }
  0x9a   :  { %1147 = vmatpush.msra.mxu0 %v10547_v37  ;;  %1243 = vmatpush.msra.mxu2 %v6800_v15  ;;  %v10550_v37 = vand.u32 4294901760, %v6879_v17  ;;  %v6948_v1 = vsub.f32 %v200_v3, %v6925_v42 }
  0x9b   :  { %1031 = vmatpush.msrb.mxu1 %v1030_v22  ;;  %1128 = vmatpush.msrb.mxu3 %v6803_v49  ;;  %v196_v22 = vld [vmem:[#allocation2 + $0x348] sm:$0xff]  ;;  %v1299_v32 = vand.u32 4294901760, %v1298_v18  ;;  %v6937_v49 = vand.u32 4294901760, %v198_v5  ;;  %v1327_v18 = vand.u32 4294901760, %v6923_v46 }
  0x9c   :  { %1151 = vmatpush.msra.mxu0 %v10549_v44  ;;  %1245 = vmatpush.msra.mxu2 %v6819_v51  ;;  %v1310_v31 = vsub.f32 %v6879_v17, %v10550_v37  ;;  %v1305_v44 = vand.u32 4294901760, %v1304_v53  ;;  %v194_v51 = vld [vmem:[#allocation2 + $0x338] sm:$0xff]  ;;  %v6950_v37 = vand.u32 4294901760, %v196_v22  ;;  %v1322_v53 = vsub.f32 %v6910_v56, %v10351_v62 }
  0x9d   :  { %1288 = vmatpush.msra.mxu3 %v1287_v63  ;;  %1037 = vmatpush.msrb.mxu1 %v1036_v12  ;;  %v10552_v63 = vand.u32 4294901760, %v6897_v16  ;;  %v6961_v3 = vsub.f32 %v198_v5, %v6937_v49  ;;  %v10555_v62 = vand.u32 4294901760, %v6733_v23  ;;  %v10556_v23 = vand.u32 4294901760, %v6738_v6 }
  0x9e   :  { %1155 = vmatpush.msra.mxu0 %v10551_v2  ;;  %1247 = vmatpush.msra.mxu2 %v6834_v48  ;;  %v6963_v2 = vand.u32 4294901760, %v194_v51  ;;  %v6974_v5 = vsub.f32 %v196_v22, %v6950_v37  ;;  %v1323_v52 = vand.u32 4294901760, %v1322_v53 }
  0x9f   :  { %1206 = vmatpush.msra.mxu1 %v6631_v7  ;;  %1294 = vmatpush.msra.mxu3 %v1293_v45  ;;  %v1316_v12 = vsub.f32 %v6897_v16, %v10552_v63  ;;  %v1311_v7 = vand.u32 4294901760, %v1310_v31  ;;  %v1333_v45 = vand.u32 4294901760, %v6935_v33  ;;  %v192_v63 = vld [vmem:[#allocation2 + $0x328] sm:$0xff]  ;;  %v1328_v31 = vsub.f32 %v6923_v46, %v1327_v18 }
  0xa0   :  { %1159 = vmatpush.msra.mxu0 %v10553_v29  ;;  %1249 = vmatpush.msra.mxu2 %v6838_v34  ;;  %v190_v29 = vld [vmem:[#allocation2 + $0x318] sm:$0xff]  ;;  %v6987_v22 = vsub.f32 %v194_v51, %v6963_v2  ;;  %v10557_v51 = vand.u32 4294901760, %v6750_v40  ;;  %v10558_v40 = vand.u32 4294901760, %v6769_v59 }
  0xa1   :  { %1208 = vmatpush.msra.mxu1 %v6638_v61  ;;  %1300 = vmatpush.msra.mxu3 %v1299_v32  ;;  %v1317_v61 = vand.u32 4294901760, %v1316_v12  ;;  %v1339_v32 = vand.u32 4294901760, %v6948_v1  ;;  %v1345_v12 = vand.u32 4294901760, %v6961_v3 }
  0xa2   :  { %1163 = vmatpush.msra.mxu0 %v10554_v21  ;;  %1251 = vmatpush.msra.mxu2 %v6851_v4  ;;  %v1351_v21 = vand.u32 4294901760, %v6974_v5 }
  0xa3   :  { %1210 = vmatpush.msra.mxu1 %v6645_v47  ;;  %1306 = vmatpush.msra.mxu3 %v1305_v44  ;;  %v6979_v47 = vand.u32 4294901760, %v192_v63  ;;  %v1334_v44 = vsub.f32 %v6935_v33, %v1333_v45  ;;  %v1340_v53 = vsub.f32 %v6948_v1, %v1339_v32 }
  0xa4   :  { %1167 = vmatpush.msra.mxu0 %v10555_v62  ;;  %1253 = vmatpush.msra.mxu2 %v6871_v13  ;;  %v188_v62 = vld [vmem:[#allocation2 + $0x308] sm:$0xff] }
  0xa5   :  { %1212 = vmatpush.msra.mxu1 %v6655_v0  ;;  %1312 = vmatpush.msra.mxu3 %v1311_v7  ;;  %v6992_v0 = vand.u32 4294901760, %v190_v29  ;;  %v1329_v7 = vand.u32 4294901760, %v1328_v31  ;;  %v1335_v6 = vand.u32 4294901760, %v1334_v44  ;;  %v1357_v31 = vand.u32 4294901760, %v6987_v22 }
  0xa6   :  { %1171 = vmatpush.msra.mxu0 %v10556_v23  ;;  %1255 = vmatpush.msra.mxu2 %v6886_v60  ;;  %v7010_v23 = vand.u32 4294901760, %v188_v62  ;;  %v10559_v44 = vand.u32 4294901760, %v6781_v24 }
  0xa7   :  { %1214 = vmatpush.msra.mxu1 %v6665_v14  ;;  %1318 = vmatpush.msra.mxu3 %v1317_v61  ;;  %v7003_v14 = vsub.f32 %v192_v63, %v6979_v47  ;;  %v1346_v61 = vsub.f32 %v6961_v3, %v1345_v12  ;;  %v1341_v63 = vand.u32 4294901760, %v1340_v53  ;;  %v10560_v53 = vand.u32 4294901760, %v6793_v10 }
  0xa8   :  { %1175 = vmatpush.msra.mxu0 %v10557_v51  ;;  %1257 = vmatpush.msra.mxu2 %v6899_v9  ;;  %v10561_v51 = vand.u32 4294901760, %v6807_v30 }
  0xa9   :  { %1216 = vmatpush.msra.mxu1 %v6676_v55  ;;  %1324 = vmatpush.msra.mxu3 %v1323_v52  ;;  %v7016_v55 = vsub.f32 %v190_v29, %v6992_v0  ;;  %v1352_v52 = vsub.f32 %v6974_v5, %v1351_v21  ;;  %v1363_v59 = vand.u32 4294901760, %v7003_v14  ;;  %v1358_v29 = vsub.f32 %v6987_v22, %v1357_v31 }
  0xaa   :  { %1179 = vmatpush.msra.mxu0 %v10558_v40  ;;  %1259 = vmatpush.msra.mxu2 %v6912_v20  ;;  %v10571_v40 = vld [vmem:[#allocation19_spill] sm:$0xff] }
  0xab   :  { %1218 = vmatpush.msra.mxu1 %v6690_v41  ;;  %1330 = vmatpush.msra.mxu3 %v1329_v7  ;;  %v1347_v41 = vand.u32 4294901760, %v1346_v61  ;;  %v7031_v7 = vsub.f32 %v188_v62, %v7010_v23  ;;  %v1353_v24 = vand.u32 4294901760, %v1352_v52  ;;  %v1364_v62 = vsub.f32 %v7003_v14, %v1363_v59 }
  0xac   :  { %1183 = vmatpush.msra.mxu0 %v10559_v44  ;;  %1261 = vmatpush.msra.mxu2 %v6925_v42  ;;  %v1359_v10 = vand.u32 4294901760, %v1358_v29 }
  0xad   :  { %1220 = vmatpush.msra.mxu1 %v6703_v58  ;;  %1336 = vmatpush.msra.mxu3 %v1335_v6  ;;  %v1369_v58 = vand.u32 4294901760, %v7016_v55  ;;  %v10562_v6 = vand.u32 4294901760, %v6817_v38  ;;  %v1365_v61 = vand.u32 4294901760, %v1364_v62 }
  0xae   :  { %1187 = vmatpush.msra.mxu0 %v10560_v53  ;;  %1263 = vmatpush.msra.mxu2 %v6937_v49 }
  0xaf   :  { %1222 = vmatpush.msra.mxu1 %v6711_v39  ;;  %1342 = vmatpush.msra.mxu3 %v1341_v63  ;;  %v1375_v39 = vand.u32 4294901760, %v7031_v7  ;;  %v1370_v30 = vsub.f32 %v7016_v55, %v1369_v58  ;;  %v10573_v63 = vld [vmem:[#allocation26_spill] sm:$0xff] }
  0xb0   :  { %1191 = vmatpush.msra.mxu0 %v10561_v51  ;;  %1265 = vmatpush.msra.mxu2 %v6950_v37 }
  0xb1   :  { %1224 = vmatpush.msra.mxu1 %v6724_v36  ;;  %1348 = vmatpush.msra.mxu3 %v1347_v41  ;;  %v10563_v36 = vand.u32 4294901760, %v6832_v11  ;;  %v1371_v38 = vand.u32 4294901760, %v1370_v30  ;;  %v10579_v30 = vld [vmem:[#allocation28_spill] sm:$0xff] }
  0xb2   :  { %1195 = vmatpush.msra.mxu0 %v10562_v6  ;;  %1267 = vmatpush.msra.mxu2 %v6963_v2 }
  0xb3   :  { %1226 = vmatpush.msra.mxu1 %v6744_v25  ;;  %1354 = vmatpush.msra.mxu3 %v1353_v24  ;;  %v1376_v25 = vsub.f32 %v7031_v7, %v1375_v39 }
  0xb4   :  { %1199 = vmatpush.msra.mxu0 %v10563_v36  ;;  %1269 = vmatpush.msra.mxu2 %v6979_v47  ;;  %v98_v36 = vld [vmem:[#allocation2 + $0x40] sm:$0xff] }
  0xb5   :  { %1228 = vmatpush.msra.mxu1 %v6756_v43  ;;  %1360 = vmatpush.msra.mxu3 %v1359_v10  ;;  %v1377_v11 = vand.u32 4294901760, %v1376_v25  ;;  %v10564_v43 = vld [vmem:[#allocation25_spill] sm:$0xff] }
  0xb6   :  { %938 = vmatmul.f32.vlgmr.msrb.gmra.mxu0 %v6543_v26  ;;  %1271 = vmatpush.msra.mxu2 %v6992_v0  ;;  %v10565_v26 = vand.u32 4294901760, %v6824_v50 }
  0xb7   :  { %1230 = vmatpush.msra.mxu1 %v6766_v27  ;;  %1386 = vmatpush.msrb.mxu0 %v6824_v50  ;;  %v10566_v27 = vld [vmem:[#allocation23_spill] sm:$0xff]  ;;  %v10569_v50 = vand.u32 4294901760, %v6859_v19 }
  0xb8   :  { %1366 = vmatpush.msra.mxu3 %v1365_v61  ;;  %1093 = vmatmul.f32.vlgmr.msrb.gmra.mxu2 %v6481_v57  ;;  %v10567_v57 = vand.u32 4294901760, %v6846_v8 }
  0xb9   :  { %1389 = vmatpush.msrb.mxu0 %v6846_v8  ;;  %1232 = vmatpush.msra.mxu1 %v6778_v28  ;;  %v10568_v28 = vld [vmem:[#allocation15_spill] sm:$0xff]  ;;  %v10572_v8 = vand.u32 4294901760, %v6864_v35 }
  0xba   :  { %1273 = vmatpush.msra.mxu2 %v7010_v23  ;;  %1372 = vmatpush.msra.mxu3 %v1371_v38 }
  0xbb   :  { %1132 = vmatmul.f32.vlgmr.msrb.gmra.mxu3 %v10564_v43  ;;  %1392 = vmatpush.msrb.mxu0 %v6859_v19  ;;  %v10574_v19 = vand.u32 4294901760, %v6879_v17 }
  0xbc   :  { %1480 = vmatpush.msrb.mxu2 %v10565_v26  ;;  %1234 = vmatpush.msra.mxu1 %v6789_v54  ;;  %v10570_v54 = vld [vmem:[#allocation20_spill] sm:$0xff]  ;;  %v96_v26 = vld [vmem:[#allocation2 + $0x30] sm:$0xff] }
  0xbd   :  { %1378 = vmatpush.msra.mxu3 %v1377_v11  ;;  %1039 = vmatmul.f32.vlgmr.msrb.gmra.mxu1 %v10566_v27 }
  0xbe   :  { %1395 = vmatpush.msrb.mxu0 %v6864_v35  ;;  %1484 = vmatpush.msrb.mxu2 %v10567_v57  ;;  %v10575_v35 = vand.u32 4294901760, %v6897_v16  ;;  %v7246_v57 = vand.u32 4294901760, %v98_v36 }
  0xbf   :  { %1547 = vmatpush.msrb.mxu3 %v6800_v15  ;;  %1236 = vmatpush.msra.mxu1 %v10568_v28 }
  0xc0   :  { %1398 = vmatpush.msrb.mxu0 %v6879_v17  ;;  %1488 = vmatpush.msrb.mxu2 %v10569_v50 }
  0xc1   :  { %1439 = vmatpush.msrb.mxu1 %v6800_v15  ;;  %1549 = vmatpush.msrb.mxu3 %v10570_v54 }
  0xc2   :  { %1279 = vmatmul.f32.vlgmr.msra.gmra.mxu2 %v10571_v40  ;;  %1401 = vmatpush.msrb.mxu0 %v6897_v16  ;;  %v120_v16 = vld [vmem:[#allocation2 + $0xf0] sm:$0xff] }
  0xc3   :  { %1441 = vmatpush.msrb.mxu1 %v10570_v54  ;;  %1492 = vmatpush.msrb.mxu2 %v10572_v8  ;;  %v94_v8 = vld [vmem:[#allocation2 + $0x20] sm:$0xff] }
  0xc4   :  { %1551 = vmatpush.msrb.mxu3 %v6834_v48  ;;  %1201 = vmatmul.f32.vlgmr.msra.gmra.mxu0 %v10566_v27 }
  0xc5   :  { %1380 = vmatmul.f32.vlgmr.msra.gmra.mxu3 %v10573_v63  ;;  %1404 = vmatpush.msrb.mxu0 %v6910_v56 }
  0xc6   :  { %1443 = vmatpush.msrb.mxu1 %v6834_v48  ;;  %1496 = vmatpush.msrb.mxu2 %v10574_v19  ;;  %v10576_v48 = vand.u32 4294901760, %v6910_v56  ;;  %v118_v56 = vld [vmem:[#allocation2 + $0xe0] sm:$0xff]  ;;  %v7260_v19 = vand.u32 4294901760, %v96_v26 }
  0xc7   :  { %1553 = vmatpush.msrb.mxu3 %v6838_v34  ;;  %1238 = vmatmul.f32.vlgmr.msra.gmra.mxu1 %v10566_v27  ;;  %v7130_v15 = vand.u32 4294901760, %v118_v56 }
  0xc8   :  { %1407 = vmatpush.msrb.mxu0 %v6923_v46  ;;  %1445 = vmatpush.msrb.mxu1 %v6838_v34  ;;  %v110_v46 = vld [vmem:[#allocation2 + $0xa0] sm:$0xff] }
  0xc9   :  { %1500 = vmatpush.msrb.mxu2 %v10575_v35  ;;  %1555 = vmatpush.msrb.mxu3 %v6851_v4 }
  0xca   :  { %1410 = vmatpush.msrb.mxu0 %v6935_v33  ;;  %1447 = vmatpush.msrb.mxu1 %v6851_v4  ;;  %v7123_v4 = vand.u32 4294901760, %v120_v16 }
  0xcb   :  { %1504 = vmatpush.msrb.mxu2 %v10576_v48  ;;  %1557 = vmatpush.msrb.mxu3 %v6871_v13 }
  0xcc   :  { %1413 = vmatpush.msrb.mxu0 %v6948_v1  ;;  %1449 = vmatpush.msrb.mxu1 %v6871_v13  ;;  %v112_v13 = vld [vmem:[#allocation2 + $0xb0] sm:$0xff]  ;;  %v10577_v1 = vld [vmem:[#allocation27_spill] sm:$0xff] }
  0xcd   :  { %1508 = vmatpush.msrb.mxu2 %v1327_v18  ;;  %1559 = vmatpush.msrb.mxu3 %v6886_v60  ;;  %v7154_v33 = vand.u32 4294901760, %v112_v13 }
  0xce   :  { %1416 = vmatpush.msrb.mxu0 %v6961_v3  ;;  %1451 = vmatpush.msrb.mxu1 %v6886_v60  ;;  %v116_v60 = vld [vmem:[#allocation2 + $0xd0] sm:$0xff] }
  0xcf   :  { %1512 = vmatpush.msrb.mxu2 %v1333_v45  ;;  %1561 = vmatpush.msrb.mxu3 %v6899_v9  ;;  %v7137_v34 = vand.u32 4294901760, %v116_v60  ;;  %v7165_v45 = vand.u32 4294901760, %v110_v46  ;;  %v108_v3 = vld [vmem:[#allocation2 + $0x90] sm:$0xff] }
  0xd0   :  { %1419 = vmatpush.msrb.mxu0 %v6974_v5  ;;  %1453 = vmatpush.msrb.mxu1 %v6899_v9  ;;  %v114_v9 = vld [vmem:[#allocation2 + $0xc0] sm:$0xff]  ;;  %v7177_v5 = vsub.f32 %v112_v13, %v7154_v33  ;;  %v7276_v13 = vsub.f32 %v98_v36, %v7246_v57 }
  0xd1   :  { %1516 = vmatpush.msrb.mxu2 %v1339_v32  ;;  %1563 = vmatpush.msrb.mxu3 %v6912_v20  ;;  %v7147_v17 = vand.u32 4294901760, %v114_v9  ;;  %v7161_v18 = vsub.f32 %v116_v60, %v7137_v34  ;;  %v7272_v60 = vand.u32 4294901760, %v94_v8 }
  0xd2   :  { %1422 = vmatpush.msrb.mxu0 %v6987_v22  ;;  %1455 = vmatpush.msrb.mxu1 %v6912_v20  ;;  %v7140_v20 = vsub.f32 %v120_v16, %v7123_v4  ;;  %v7185_v22 = vand.u32 4294901760, %v108_v3  ;;  %v10362_v44 = vand.u32 4294901760, %v7177_v5 }
  0xd3   :  { %1520 = vmatpush.msrb.mxu2 %v1345_v12  ;;  %1565 = vmatpush.msrb.mxu3 %v6925_v42  ;;  %v7172_v32 = vsub.f32 %v114_v9, %v7147_v17 }
  0xd4   :  { %1425 = vmatpush.msrb.mxu0 %v7003_v14  ;;  %1457 = vmatpush.msrb.mxu1 %v6925_v42  ;;  %v7150_v42 = vsub.f32 %v118_v56, %v7130_v15  ;;  %v104_v14 = vld [vmem:[#allocation2 + $0x70] sm:$0xff]  ;;  %v7212_v53 = vsub.f32 %v108_v3, %v7185_v22 }
  0xd5   :  { %1524 = vmatpush.msrb.mxu2 %v1351_v21  ;;  %1567 = vmatpush.msrb.mxu3 %v6937_v49  ;;  %v10365_v21 = vand.u32 4294901760, %v7161_v18  ;;  %v10363_v52 = vand.u32 4294901760, %v7172_v32 }
  0xd6   :  { %1428 = vmatpush.msrb.mxu0 %v7016_v55  ;;  %1459 = vmatpush.msrb.mxu1 %v6937_v49  ;;  %v1626_v49 = vand.u32 4294901760, %v7140_v20  ;;  %v10359_v38 = vand.u32 4294901760, %v7212_v53 }
  0xd7   :  { %1528 = vmatpush.msrb.mxu2 %v1357_v31  ;;  %1569 = vmatpush.msrb.mxu3 %v6950_v37  ;;  %v1639_v29 = vsub.f32 %v7161_v18, %v10365_v21  ;;  %v1645_v51 = vsub.f32 %v7172_v32, %v10363_v52  ;;  %v136_v21 = vld [vmem:[#allocation2 + $0x170] sm:$0xff] }
  0xd8   :  { %1431 = vmatpush.msrb.mxu0 %v7031_v7  ;;  %1461 = vmatpush.msrb.mxu1 %v6950_v37  ;;  %v1632_v37 = vand.u32 4294901760, %v7150_v42  ;;  %v1627_v12 = vsub.f32 %v7140_v20, %v1626_v49  ;;  %v7209_v7 = vand.u32 4294901760, %v104_v14 }
  0xd9   :  { %1532 = vmatpush.msrb.mxu2 %v1363_v59  ;;  %1571 = vmatpush.msrb.mxu3 %v6963_v2  ;;  %v102_v59 = vld [vmem:[#allocation2 + $0x60] sm:$0xff]  ;;  %v1640_v61 = vand.u32 4294901760, %v1639_v29  ;;  %v1646_v27 = vand.u32 4294901760, %v1645_v51  ;;  %v7301_v51 = vsub.f32 %v94_v8, %v7272_v60 }
  0xda   :  { %1434 = vmatmul.f32.vlgmr.msrb.gmra.mxu0 %v10577_v1  ;;  %1463 = vmatpush.msrb.mxu1 %v6963_v2  ;;  %v106_v2 = vld [vmem:[#allocation2 + $0x80] sm:$0xff]  ;;  %v1633_v31 = vsub.f32 %v7150_v42, %v1632_v37  ;;  %v1628_v41 = vand.u32 4294901760, %v1627_v12  ;;  %v7222_v62 = vand.u32 4294901760, %v102_v59  ;;  %v7238_v11 = vsub.f32 %v104_v14, %v7209_v7 }
  0xdb   :  { %1584 = vmatpush.msra.mxu0 %v7123_v4  ;;  %1536 = vmatpush.msrb.mxu2 %v1369_v58  ;;  %v7198_v55 = vand.u32 4294901760, %v106_v2  ;;  %v100_v58 = vld [vmem:[#allocation2 + $0x50] sm:$0xff]  ;;  %v7289_v14 = vsub.f32 %v96_v26, %v7260_v19 }
  0xdc   :  { %1573 = vmatpush.msrb.mxu3 %v6979_v47  ;;  %1465 = vmatpush.msrb.mxu1 %v6979_v47  ;;  %v7191_v47 = vsub.f32 %v110_v46, %v7165_v45  ;;  %v1634_v24 = vand.u32 4294901760, %v1633_v31  ;;  %v7234_v25 = vand.u32 4294901760, %v100_v58  ;;  %v7250_v50 = vsub.f32 %v102_v59, %v7222_v62  ;;  %v92_v46 = vld [vmem:[#allocation2 + $0x10] sm:$0xff] }
  0xdd   :  { %1586 = vmatpush.msra.mxu0 %v7130_v15  ;;  %1540 = vmatpush.msrb.mxu2 %v1375_v39  ;;  %v7225_v10 = vsub.f32 %v106_v2, %v7198_v55  ;;  %v10578_v39 = vld [vmem:[#allocation22_spill] sm:$0xff]  ;;  %v10356_v35 = vand.u32 4294901760, %v7238_v11  ;;  %v152_v31 = vld [vmem:[#allocation2 + $0x1f0] sm:$0xff]  ;;  %v7293_v59 = vand.u32 4294901760, %v92_v46 }
  0xde   :  { %1575 = vmatpush.msrb.mxu3 %v6992_v0  ;;  %1542 = vmatmul.f32.vlgmr.msrb.gmra.mxu2 %v10573_v63  ;;  %v88_v6 = vmul.f32 0.25, %v10578_v39  ;;  %v7264_v48 = vsub.f32 %v100_v58, %v7234_v25  ;;  %v10355_v9 = vand.u32 4294901760, %v7250_v50 }
  0xdf   :  { %1588 = vmatpush.msra.mxu0 %v7137_v34  ;;  %1727 = vmatpush.msra.mxu2 %v7140_v20  ;;  %v10357_v28 = vand.u32 4294901760, %v7225_v10  ;;  %v1675_v2 = vsub.f32 %v7238_v11, %v10356_v35  ;;  %v7320_v26 = vsub.f32 %v92_v46, %v7293_v59 }
  0xe0   :  { %1467 = vmatpush.msrb.mxu1 %v6992_v0  ;;  %1577 = vmatpush.msrb.mxu3 %v7010_v23  ;;  %v10360_v0 = vand.u32 4294901760, %v7191_v47  ;;  %v7252_v54 = vand.u32 4294901760, %v88_v6  ;;  %v10353_v12 = vand.u32 4294901760, %v7264_v48  ;;  %v1681_v58 = vsub.f32 %v7250_v50, %v10355_v9 }
  0xe1   :  { %1579 = vmatmul.f32.vlgmr.msrb.gmra.mxu3 %v10573_v63  ;;  %1590 = vmatpush.msra.mxu0 %v7147_v17  ;;  %v1663_v63 = vsub.f32 %v7212_v53, %v10359_v38  ;;  %v1669_v56 = vsub.f32 %v7225_v10, %v10357_v28 }
  0xe2   :  { %1730 = vmatpush.msra.mxu2 %v7150_v42  ;;  %1780 = vmatpush.msra.mxu3 %v7123_v4  ;;  %v1657_v43 = vsub.f32 %v7191_v47, %v10360_v0  ;;  %v7281_v1 = vsub.f32 %v88_v6, %v7252_v54  ;;  %v7308_v6 = vand.u32 4294901760, %v152_v31  ;;  %v1687_v36 = vsub.f32 %v7264_v48, %v10353_v12  ;;  %v144_v12 = vld [vmem:[#allocation2 + $0x1b0] sm:$0xff] }
  0xe3   :  { %1469 = vmatpush.msrb.mxu1 %v7010_v23  ;;  %1592 = vmatpush.msra.mxu0 %v7154_v33  ;;  %v1651_v23 = vsub.f32 %v7177_v5, %v10362_v44  ;;  %v1664_v3 = vand.u32 4294901760, %v1663_v63  ;;  %v1670_v29 = vand.u32 4294901760, %v1669_v56  ;;  %v10358_v63 = vand.u32 4294901760, %v7301_v51  ;;  %v146_v56 = vld [vmem:[#allocation2 + $0x1c0] sm:$0xff] }
  0xe4   :  { %1473 = vmatmul.f32.vlgmr.msrb.gmra.mxu1 %v10579_v30  ;;  %1733 = vmatpush.msra.mxu2 %v7161_v18  ;;  %v1658_v16 = vand.u32 4294901760, %v1657_v43  ;;  %10580 = vst [vmem:[#allocation16_spill] sm:$0xff] %v7281_v1  ;;  %v7306_v39 = vand.u32 4294901760, %v7281_v1  ;;  %v150_v30 = vld [vmem:[#allocation2 + $0x1e0] sm:$0xff]  ;;  %v10354_v43 = vand.u32 4294901760, %v7289_v14  ;;  %v7362_v28 = vand.u32 4294901760, %v144_v12 }
  0xe5   :  { %1629 = vmatpush.msra.mxu1 %v1628_v41  ;;  %1782 = vmatpush.msra.mxu3 %v7130_v15  ;;  %v1652_v40 = vand.u32 4294901760, %v1651_v23  ;;  %v90_v41 = vld [vmem:[#allocation2] sm:$0xff]  ;;  %v1676_v23 = vand.u32 4294901760, %v1675_v2  ;;  %v1688_v2 = vand.u32 4294901760, %v1687_v36  ;;  %v10584_v42 = vand.u32 4294901760, %v7161_v18 }
  0xe6   :  { %1594 = vmatpush.msra.mxu0 %v7165_v45  ;;  %1736 = vmatpush.msra.mxu2 %v7172_v32  ;;  %10581 = vst [vmem:[#allocation21_spill] sm:$0xff] %v7306_v39  ;;  %v1618_v46 = vsub.f32 %v7281_v1, %v7306_v39  ;;  %v138_v44 = vld [vmem:[#allocation2 + $0x180] sm:$0xff] }
  0xe7   :  { %1635 = vmatpush.msra.mxu1 %v1634_v24  ;;  %1784 = vmatpush.msra.mxu3 %v7137_v34  ;;  %v10352_v24 = vand.u32 4294901760, %v7276_v13 }
  0xe8   :  { %1596 = vmatpush.msra.mxu0 %v7185_v22  ;;  %1739 = vmatpush.msra.mxu2 %v7177_v5  ;;  %v7359_v9 = vand.u32 4294901760, %v1618_v46 }
  0xe9   :  { %1641 = vmatpush.msra.mxu1 %v1640_v61  ;;  %1786 = vmatpush.msra.mxu3 %v7147_v17  ;;  %v7314_v61 = vand.u32 4294901760, %v90_v41  ;;  %v1693_v8 = vsub.f32 %v7276_v13, %v10352_v24 }
  0xea   :  { %1598 = vmatpush.msra.mxu0 %v7198_v55  ;;  %1742 = vmatpush.msra.mxu2 %v7191_v47  ;;  %10583 = vst [vmem:[#allocation18_spill] sm:$0xff] %v7359_v9 }
  0xeb   :  { %1647 = vmatpush.msra.mxu1 %v1646_v27  ;;  %1788 = vmatpush.msra.mxu3 %v7154_v33  ;;  %v148_v27 = vld [vmem:[#allocation2 + $0x1d0] sm:$0xff]  ;;  %v1694_v36 = vand.u32 4294901760, %v1693_v8 }
  0xec   :  { %1600 = vmatpush.msra.mxu0 %v7209_v7  ;;  %1745 = vmatpush.msra.mxu2 %v7212_v53  ;;  %v7343_v24 = vand.u32 4294901760, %v148_v27 }
  0xed   :  { %1653 = vmatpush.msra.mxu1 %v1652_v40  ;;  %1790 = vmatpush.msra.mxu3 %v7165_v45  ;;  %v1682_v40 = vand.u32 4294901760, %v1681_v58  ;;  %v7341_v58 = vsub.f32 %v90_v41, %v7314_v61  ;;  %v1705_v41 = vsub.f32 %v7301_v51, %v10358_v63 }
  0xee   :  { %1602 = vmatpush.msra.mxu0 %v7222_v62  ;;  %1748 = vmatpush.msra.mxu2 %v7225_v10 }
  0xef   :  { %1659 = vmatpush.msra.mxu1 %v1658_v16  ;;  %1792 = vmatpush.msra.mxu3 %v7185_v22  ;;  %v7327_v16 = vand.u32 4294901760, %v150_v30  ;;  %v10366_v63 = vand.u32 4294901760, %v7341_v58 }
  0xf0   :  { %1604 = vmatpush.msra.mxu0 %v7234_v25  ;;  %1751 = vmatpush.msra.mxu2 %v7238_v11 }
  0xf1   :  { %1665 = vmatpush.msra.mxu1 %v1664_v3  ;;  %1794 = vmatpush.msra.mxu3 %v7198_v55  ;;  %v7334_v3 = vsub.f32 %v152_v31, %v7308_v6  ;;  %v10361_v31 = vand.u32 4294901760, %v7320_v26 }
  0xf2   :  { %1606 = vmatpush.msra.mxu0 %v7246_v57  ;;  %1754 = vmatpush.msra.mxu2 %v7250_v50 }
  0xf3   :  { %1671 = vmatpush.msra.mxu1 %v1670_v29  ;;  %1796 = vmatpush.msra.mxu3 %v7209_v7  ;;  %v1699_v29 = vsub.f32 %v7289_v14, %v10354_v43  ;;  %v7355_v43 = vsub.f32 %v150_v30, %v7327_v16  ;;  %v10364_v35 = vand.u32 4294901760, %v7334_v3  ;;  %v7367_v30 = vsub.f32 %v148_v27, %v7343_v24 }
  0xf4   :  { %1608 = vmatpush.msra.mxu0 %v7260_v19  ;;  %1757 = vmatpush.msra.mxu2 %v7264_v48  ;;  %v1711_v46 = vsub.f32 %v7320_v26, %v10361_v31 }
  0xf5   :  { %1677 = vmatpush.msra.mxu1 %v1676_v23  ;;  %1798 = vmatpush.msra.mxu3 %v7222_v62  ;;  %v7348_v23 = vand.u32 4294901760, %v146_v56  ;;  %v1700_v8 = vand.u32 4294901760, %v1699_v29  ;;  %v1706_v29 = vand.u32 4294901760, %v1705_v41  ;;  %v10367_v0 = vand.u32 4294901760, %v7355_v43 }
  0xf6   :  { %1610 = vmatpush.msra.mxu0 %v7272_v60  ;;  %1760 = vmatpush.msra.mxu2 %v7276_v13  ;;  %v1968_v31 = vsub.f32 %v7334_v3, %v10364_v35  ;;  %v10368_v41 = vand.u32 4294901760, %v7367_v30  ;;  %v1712_v35 = vand.u32 4294901760, %v1711_v46 }
  0xf7   :  { %10582 = vst [vmem:[#allocation17_spill] sm:$0xff] %v7348_v23  ;;  %1683 = vmatpush.msra.mxu1 %v1682_v40  ;;  %1800 = vmatpush.msra.mxu3 %v7234_v25  ;;  %v142_v40 = vld [vmem:[#allocation2 + $0x1a0] sm:$0xff]  ;;  %v7375_v38 = vsub.f32 %v146_v56, %v7348_v23  ;;  %v7387_v56 = vsub.f32 %v144_v12, %v7362_v28 }
  0xf8   :  { %1612 = vmatpush.msra.mxu0 %v7293_v59  ;;  %1763 = vmatpush.msra.mxu2 %v7289_v14  ;;  %v7379_v27 = vand.u32 4294901760, %v142_v40  ;;  %v1974_v20 = vsub.f32 %v7355_v43, %v10367_v0  ;;  %v1969_v46 = vand.u32 4294901760, %v1968_v31  ;;  %v134_v12 = vld [vmem:[#allocation2 + $0x160] sm:$0xff]  ;;  %v7422_v0 = vand.u32 4294901760, %v136_v21 }
  0xf9   :  { %1689 = vmatpush.msra.mxu1 %v1688_v2  ;;  %1802 = vmatpush.msra.mxu3 %v7246_v57  ;;  %v140_v2 = vld [vmem:[#allocation2 + $0x190] sm:$0xff]  ;;  %v10585_v31 = vand.u32 4294901760, %v7375_v38 }
  0xfa   :  { %1614 = vmatpush.msra.mxu0 %v7314_v61  ;;  %1766 = vmatpush.msra.mxu2 %v7301_v51  ;;  %v7395_v52 = vand.u32 4294901760, %v140_v2 }
  0xfb   :  { %1695 = vmatpush.msra.mxu1 %v1694_v36  ;;  %1804 = vmatpush.msra.mxu3 %v7260_v19  ;;  %v1717_v36 = vsub.f32 %v7341_v58, %v10366_v63  ;;  %v1986_v18 = vsub.f32 %v7375_v38, %v10585_v31  ;;  %v1975_v63 = vand.u32 4294901760, %v1974_v20 }
  0xfc   :  { %1620 = vmatmul.f32.vlgmr.msra.gmra.mxu0 %v7359_v9  ;;  %1769 = vmatpush.msra.mxu2 %v7320_v26  ;;  %v130_v9 = vld [vmem:[#allocation2 + $0x140] sm:$0xff] }
  0xfd   :  { %1821 = vmatpush.msrb.mxu0 %v1626_v49  ;;  %1701 = vmatpush.msra.mxu1 %v1700_v8  ;;  %v7406_v49 = vsub.f32 %v142_v40, %v7379_v27  ;;  %v7408_v8 = vand.u32 4294901760, %v138_v44  ;;  %v1980_v40 = vsub.f32 %v7367_v30, %v10368_v41 }
  0xfe   :  { %1806 = vmatpush.msra.mxu3 %v7272_v60  ;;  %1772 = vmatpush.msra.mxu2 %v7341_v58 }
  0xff   :  { %1825 = vmatpush.msrb.mxu0 %v1632_v37  ;;  %1707 = vmatpush.msra.mxu1 %v1706_v29  ;;  %v1718_v37 = vand.u32 4294901760, %v1717_v36  ;;  %v7420_v29 = vsub.f32 %v140_v2, %v7395_v52  ;;  %v10586_v36 = vand.u32 4294901760, %v7172_v32  ;;  %v7433_v2 = vsub.f32 %v138_v44, %v7408_v8 }
 0x100   :  { %1808 = vmatpush.msra.mxu3 %v7293_v59  ;;  %1775 = vmatmul.f32.vlgmr.msra.gmra.mxu2 %v7281_v1  ;;  %v7435_v1 = vand.u32 4294901760, %v134_v12  ;;  %v10588_v32 = vand.u32 4294901760, %v7177_v5  ;;  %v1981_v20 = vand.u32 4294901760, %v1980_v40  ;;  %v7445_v44 = vsub.f32 %v136_v21, %v7422_v0  ;;  %v126_v40 = vld [vmem:[#allocation2 + $0x120] sm:$0xff] }
 0x101   :  { %1829 = vmatpush.msrb.mxu0 %v10584_v42  ;;  %1925 = vmatpush.msrb.mxu2 %v7308_v6  ;;  %v132_v42 = vld [vmem:[#allocation2 + $0x150] sm:$0xff]  ;;  %v10589_v5 = vand.u32 4294901760, %v7406_v49 }
 0x102   :  { %1713 = vmatpush.msra.mxu1 %v1712_v35  ;;  %1810 = vmatpush.msra.mxu3 %v7314_v61  ;;  %v10587_v35 = vand.u32 4294901760, %v7387_v56  ;;  %v7447_v41 = vand.u32 4294901760, %v132_v42  ;;  %v7457_v21 = vsub.f32 %v134_v12, %v7435_v1 }
 0x103   :  { %1814 = vmatmul.f32.vlgmr.msra.gmra.mxu3 %v7306_v39  ;;  %1833 = vmatpush.msrb.mxu0 %v10586_v36  ;;  %v10374_v36 = vand.u32 4294901760, %v7420_v29  ;;  %v128_v39 = vld [vmem:[#allocation2 + $0x130] sm:$0xff] }
 0x104   :  { %1927 = vmatpush.msrb.mxu2 %v7327_v16  ;;  %1970 = vmatpush.msrb.mxu3 %v1969_v46  ;;  %v1992_v31 = vsub.f32 %v7387_v56, %v10587_v35  ;;  %v1987_v46 = vand.u32 4294901760, %v1986_v18  ;;  %v7459_v35 = vand.u32 4294901760, %v130_v9  ;;  %v7470_v12 = vsub.f32 %v132_v42, %v7447_v41 }
 0x105   :  { %1719 = vmatpush.msra.mxu1 %v1718_v37  ;;  %1837 = vmatpush.msrb.mxu0 %v10588_v32  ;;  %v1998_v37 = vsub.f32 %v7406_v49, %v10589_v5  ;;  %v10590_v32 = vand.u32 4294901760, %v7191_v47  ;;  %v7472_v5 = vand.u32 4294901760, %v128_v39  ;;  %v10591_v47 = vld [vmem:[#allocation24_spill] sm:$0xff]  ;;  %v2021_v42 = vand.u32 4294901760, %v7457_v21 }
 0x106   :  { %1721 = vmatmul.f32.vlgmr.msra.gmra.mxu1 %v7252_v54  ;;  %1929 = vmatpush.msrb.mxu2 %v7343_v24  ;;  %v1993_v18 = vand.u32 4294901760, %v1992_v31  ;;  %v10593_v31 = vand.u32 4294901760, %v7433_v2 }
 0x107   :  { %1888 = vmatpush.msrb.mxu1 %v7123_v4  ;;  %1976 = vmatpush.msrb.mxu3 %v1975_v63  ;;  %v2004_v4 = vsub.f32 %v7420_v29, %v10374_v36  ;;  %v7484_v36 = vsub.f32 %v130_v9, %v7459_v35  ;;  %v124_v63 = vld [vmem:[#allocation2 + $0x110] sm:$0xff]  ;;  %v7497_v9 = vsub.f32 %v128_v39, %v7472_v5 }
 0x108   :  { %1841 = vmatpush.msrb.mxu0 %v10590_v32  ;;  %1931 = vmatpush.msrb.mxu2 %v7348_v23  ;;  %v89_v32 = vmul.f32 0.25, %v10591_v47  ;;  %v10592_v23 = vand.u32 4294901760, %v7212_v53  ;;  %v10594_v47 = vand.u32 4294901760, %v7225_v10  ;;  %v7489_v53 = vand.u32 4294901760, %v126_v40 }
 0x109   :  { %1890 = vmatpush.msrb.mxu1 %v7130_v15  ;;  %1982 = vmatpush.msrb.mxu3 %v1981_v20  ;;  %v1999_v15 = vand.u32 4294901760, %v1998_v37  ;;  %v2010_v20 = vsub.f32 %v7433_v2, %v10593_v31  ;;  %v2027_v37 = vand.u32 4294901760, %v7470_v12  ;;  %v122_v31 = vld [vmem:[#allocation2 + $0x100] sm:$0xff]  ;;  %v2033_v39 = vand.u32 4294901760, %v7484_v36 }
 0x10a   :  { %1845 = vmatpush.msrb.mxu0 %v10592_v23  ;;  %1933 = vmatpush.msrb.mxu2 %v7362_v28  ;;  %v10595_v23 = vand.u32 4294901760, %v7445_v44  ;;  %v7499_v10 = vand.u32 4294901760, %v89_v32 }
 0x10b   :  { %1892 = vmatpush.msrb.mxu1 %v7137_v34  ;;  %1988 = vmatpush.msrb.mxu3 %v1987_v46  ;;  %v2005_v34 = vand.u32 4294901760, %v2004_v4  ;;  %v2022_v4 = vsub.f32 %v7457_v21, %v2021_v42 }
 0x10c   :  { %1849 = vmatpush.msrb.mxu0 %v10594_v47  ;;  %1935 = vmatpush.msrb.mxu2 %v7379_v27  ;;  %v2016_v46 = vsub.f32 %v7445_v44, %v10595_v23  ;;  %10596 = vst [vmem:[#allocation25_spill] sm:$0xff] %v7499_v10  ;;  %v10597_v47 = vand.u32 4294901760, %v7238_v11  ;;  %v10598_v23 = vand.u32 4294901760, %v7250_v50  ;;  %v7515_v11 = vsub.f32 %v126_v40, %v7489_v53 }
 0x10d   :  { %1894 = vmatpush.msrb.mxu1 %v7147_v17  ;;  %1994 = vmatpush.msrb.mxu3 %v1993_v18  ;;  %v7504_v17 = vand.u32 4294901760, %v124_v63  ;;  %v2011_v18 = vand.u32 4294901760, %v2010_v20  ;;  %v2039_v20 = vand.u32 4294901760, %v7497_v9  ;;  %v10599_v50 = vand.u32 4294901760, %v7264_v48 }
 0x10e   :  { %1853 = vmatpush.msrb.mxu0 %v10597_v47  ;;  %1937 = vmatpush.msrb.mxu2 %v7395_v52  ;;  %v7517_v47 = vand.u32 4294901760, %v122_v31  ;;  %v2045_v48 = vand.u32 4294901760, %v7515_v11 }
 0x10f   :  { %1896 = vmatpush.msrb.mxu1 %v7154_v33  ;;  %2000 = vmatpush.msrb.mxu3 %v1999_v15  ;;  %v2017_v33 = vand.u32 4294901760, %v2016_v46  ;;  %v2028_v15 = vsub.f32 %v7470_v12, %v2027_v37  ;;  %v7528_v40 = vsub.f32 %v124_v63, %v7504_v17  ;;  %v10601_v46 = vand.u32 4294901760, %v7276_v13 }
 0x110   :  { %1857 = vmatpush.msrb.mxu0 %v10598_v23  ;;  %1939 = vmatpush.msrb.mxu2 %v7408_v8  ;;  %v7531_v23 = vsub.f32 %v89_v32, %v7499_v10  ;;  %v7542_v63 = vsub.f32 %v122_v31, %v7517_v47  ;;  %v2040_v32 = vsub.f32 %v7497_v9, %v2039_v20  ;;  %v10604_v31 = vand.u32 4294901760, %v7301_v51 }
 0x111   :  { %1898 = vmatpush.msrb.mxu1 %v7165_v45  ;;  %2006 = vmatpush.msrb.mxu3 %v2005_v34  ;;  %v2023_v45 = vand.u32 4294901760, %v2022_v4  ;;  %v2034_v34 = vsub.f32 %v7484_v36, %v2033_v39  ;;  %v2051_v13 = vand.u32 4294901760, %v7528_v40 }
 0x112   :  { %1861 = vmatpush.msrb.mxu0 %v10599_v50  ;;  %1941 = vmatpush.msrb.mxu2 %v7422_v0  ;;  %10600 = vst [vmem:[#allocation23_spill] sm:$0xff] %v7531_v23  ;;  %v7553_v4 = vand.u32 4294901760, %v7531_v23  ;;  %v10605_v50 = vand.u32 4294901760, %v7320_v26 }
 0x113   :  { %1900 = vmatpush.msrb.mxu1 %v7185_v22  ;;  %2012 = vmatpush.msrb.mxu3 %v2011_v18  ;;  %v2029_v22 = vand.u32 4294901760, %v2028_v15  ;;  %v10602_v18 = vand.u32 4294901760, %v7289_v14  ;;  %v2046_v14 = vsub.f32 %v7515_v11, %v2045_v48  ;;  %v2041_v15 = vand.u32 4294901760, %v2040_v32  ;;  %v7591_v32 = vpop.f32.mrf.mxu2 }
 0x114   :  { %1865 = vmatpush.msrb.mxu0 %v10601_v46  ;;  %1943 = vmatpush.msrb.mxu2 %v7435_v1  ;;  %10603 = vst [vmem:[#allocation15_spill] sm:$0xff] %v7553_v4  ;;  %v1959_v51 = vsub.f32 %v7531_v23, %v7553_v4 }
 0x115   :  { %1902 = vmatpush.msrb.mxu1 %v7198_v55  ;;  %2018 = vmatpush.msrb.mxu3 %v2017_v33  ;;  %v2035_v55 = vand.u32 4294901760, %v2034_v34  ;;  %v2057_v33 = vand.u32 4294901760, %v7542_v63  ;;  %v7579_v34 = vpop.f32.mrf.mxu0  ;;  %10609 = vst [vmem:[#allocation26_spill] sm:$0xff] %v7591_v32  ;;  %v139_v32 = vld [vmem:[#allocation2 + $0x188] sm:$0xff] }
 0x116   :  { %1869 = vmatpush.msrb.mxu0 %v10602_v18  ;;  %1945 = vmatpush.msrb.mxu2 %v7447_v41  ;;  %v7584_v46 = vand.u32 4294901760, %v1959_v51  ;;  %v10612_v18 = vand.u32 4294901760, %v7355_v43 }
 0x117   :  { %1904 = vmatpush.msrb.mxu1 %v7209_v7  ;;  %2024 = vmatpush.msrb.mxu3 %v2023_v45  ;;  %v2052_v7 = vsub.f32 %v7528_v40, %v2051_v13  ;;  %v10606_v45 = vand.u32 4294901760, %v7341_v58  ;;  %v2058_v26 = vsub.f32 %v7542_v63, %v2057_v33  ;;  %v7588_v58 = vpop.f32.mrf.mxu1 }
 0x118   :  { %1873 = vmatpush.msrb.mxu0 %v10604_v31  ;;  %1947 = vmatpush.msrb.mxu2 %v7459_v35  ;;  %10607 = vst [vmem:[#allocation20_spill] sm:$0xff] %v7584_v46 }
 0x119   :  { %1906 = vmatpush.msrb.mxu1 %v7222_v62  ;;  %2030 = vmatpush.msrb.mxu3 %v2029_v22  ;;  %v2047_v62 = vand.u32 4294901760, %v2046_v14  ;;  %10608 = vst [vmem:[#allocation19_spill] sm:$0xff] %v7588_v58  ;;  %v2059_v22 = vand.u32 4294901760, %v2058_v26  ;;  %v121_v14 = vld [vmem:[#allocation2 + $0xf8] sm:$0xff]  ;;  %v7940_v58 = vand.u32 4294901760, %v139_v32 }
 0x11a   :  { %1877 = vmatpush.msrb.mxu0 %v10605_v50  ;;  %1949 = vmatpush.msrb.mxu2 %v7472_v5 }
 0x11b   :  { %1908 = vmatpush.msrb.mxu1 %v7234_v25  ;;  %2036 = vmatpush.msrb.mxu3 %v2035_v55  ;;  %v2053_v25 = vand.u32 4294901760, %v2052_v7  ;;  %v7621_v55 = vpop.f32.mrf.mxu2  ;;  %v111_v7 = vld [vmem:[#allocation2 + $0xa8] sm:$0xff] }
 0x11c   :  { %1881 = vmatpush.msrb.mxu0 %v10606_v45  ;;  %1951 = vmatpush.msrb.mxu2 %v7489_v53  ;;  %10617 = vst [vmem:[#allocation24_spill] sm:$0xff] %v7621_v55 }
 0x11d   :  { %1910 = vmatpush.msrb.mxu1 %v7246_v57  ;;  %2042 = vmatpush.msrb.mxu3 %v2041_v15  ;;  %v10610_v57 = vand.u32 4294901760, %v7334_v3 }
 0x11e   :  { %1883 = vmatmul.f32.vlgmr.msrb.gmra.mxu0 %v7252_v54  ;;  %1953 = vmatpush.msrb.mxu2 %v7504_v17 }
 0x11f   :  { %2068 = vmatpush.msra.mxu0 %v7334_v3  ;;  %1912 = vmatpush.msrb.mxu1 %v7260_v19  ;;  %v7599_v19 = vpop.f32.mrf.mxu3  ;;  %v7616_v3 = vpop.f32.mrf.mxu1 }
 0x120   :  { %2048 = vmatpush.msrb.mxu3 %v2047_v62  ;;  %1955 = vmatpush.msrb.mxu2 %v7517_v47  ;;  %10611 = vst [vmem:[#allocation27_spill] sm:$0xff] %v7599_v19  ;;  %v109_v62 = vld [vmem:[#allocation2 + $0x98] sm:$0xff] }
 0x121   :  { %2071 = vmatpush.msra.mxu0 %v7355_v43  ;;  %1914 = vmatpush.msrb.mxu1 %v7272_v60  ;;  %v7607_v60 = vpop.f32.mrf.mxu0  ;;  %10615 = vst [vmem:[#allocation28_spill] sm:$0xff] %v7616_v3  ;;  %v10616_v43 = vand.u32 4294901760, %v7375_v38 }
 0x122   :  { %2054 = vmatpush.msrb.mxu3 %v2053_v25  ;;  %1961 = vmatmul.f32.vlgmr.msrb.gmra.mxu2 %v7584_v46  ;;  %10613 = vst [vmem:[#allocation22_spill] sm:$0xff] %v7607_v60  ;;  %v10634_v60 = vld [vmem:[#allocation18_spill] sm:$0xff] }
 0x123   :  { %2074 = vmatpush.msra.mxu0 %v7367_v30  ;;  %2162 = vmatpush.msra.mxu2 %v10610_v57 }
 0x124   :  { %1916 = vmatpush.msrb.mxu1 %v7293_v59  ;;  %2060 = vmatpush.msrb.mxu3 %v2059_v22  ;;  %v10614_v59 = vand.u32 4294901760, %v7367_v30  ;;  %v107_v22 = vld [vmem:[#allocation2 + $0x88] sm:$0xff] }
 0x125   :  { %2062 = vmatmul.f32.vlgmr.msrb.gmra.mxu3 %v7499_v10  ;;  %2077 = vmatpush.msra.mxu0 %v7375_v38  ;;  %v10621_v38 = vand.u32 4294901760, %v7406_v49 }
 0x126   :  { %2166 = vmatpush.msra.mxu2 %v10612_v18  ;;  %2229 = vmatpush.msra.mxu3 %v7308_v6 }
 0x127   :  { %1918 = vmatpush.msrb.mxu1 %v7314_v61  ;;  %2080 = vmatpush.msra.mxu0 %v7387_v56  ;;  %v10618_v61 = vand.u32 4294901760, %v7387_v56  ;;  %v7630_v30 = vpop.f32.mrf.mxu3  ;;  %v10625_v56 = vand.u32 4294901760, %v7433_v2 }
 0x128   :  { %1920 = vmatmul.f32.vlgmr.msrb.gmra.mxu1 %v7252_v54  ;;  %2170 = vmatpush.msra.mxu2 %v10614_v59  ;;  %v105_v59 = vld [vmem:[#allocation2 + $0x78] sm:$0xff] }
 0x129   :  { %2121 = vmatpush.msra.mxu1 %v7308_v6  ;;  %2231 = vmatpush.msra.mxu3 %v7327_v16  ;;  %v10619_v6 = vld [vmem:[#allocation17_spill] sm:$0xff]  ;;  %v7635_v31 = vpop.f32.mrf.mxu0 }
 0x12a   :  { %2083 = vmatpush.msra.mxu0 %v7406_v49  ;;  %2174 = vmatpush.msra.mxu2 %v10616_v43  ;;  %10620 = vst [vmem:[#allocation17_spill] sm:$0xff] %v7630_v30  ;;  %v7649_v49 = vpop.f32.mrf.mxu2 }
 0x12b   :  { %2123 = vmatpush.msra.mxu1 %v7327_v16  ;;  %2233 = vmatpush.msra.mxu3 %v7343_v24  ;;  %10622 = vst [vmem:[#allocation29_spill] sm:$0xff] %v7635_v31  ;;  %v10623_v16 = vand.u32 4294901760, %v7420_v29  ;;  %v143_v31 = vld [vmem:[#allocation2 + $0x1a8] sm:$0xff] }
 0x12c   :  { %2086 = vmatpush.msra.mxu0 %v7420_v29  ;;  %2178 = vmatpush.msra.mxu2 %v10618_v61  ;;  %10626 = vst [vmem:[#allocation31_spill] sm:$0xff] %v7649_v49  ;;  %v119_v29 = vld [vmem:[#allocation2 + $0xe8] sm:$0xff]  ;;  %v7911_v3 = vand.u32 4294901760, %v143_v31 }
 0x12d   :  { %2125 = vmatpush.msra.mxu1 %v7343_v24  ;;  %2235 = vmatpush.msra.mxu3 %v10619_v6  ;;  %v7644_v24 = vpop.f32.mrf.mxu1  ;;  %v147_v49 = vld [vmem:[#allocation2 + $0x1c8] sm:$0xff] }
 0x12e   :  { %2089 = vmatpush.msra.mxu0 %v7433_v2  ;;  %2182 = vmatpush.msra.mxu2 %v10621_v38  ;;  %10624 = vst [vmem:[#allocation30_spill] sm:$0xff] %v7644_v24 }
 0x12f   :  { %2127 = vmatpush.msra.mxu1 %v10619_v6  ;;  %2237 = vmatpush.msra.mxu3 %v7362_v28  ;;  %v7658_v15 = vpop.f32.mrf.mxu3 }
 0x130   :  { %2092 = vmatpush.msra.mxu0 %v7445_v44  ;;  %2186 = vmatpush.msra.mxu2 %v10623_v16  ;;  %10628 = vst [vmem:[#allocation32_spill] sm:$0xff] %v7658_v15 }
 0x131   :  { %2129 = vmatpush.msra.mxu1 %v7362_v28  ;;  %2239 = vmatpush.msra.mxu3 %v7379_v27  ;;  %v10627_v28 = vand.u32 4294901760, %v7445_v44  ;;  %v117_v44 = vld [vmem:[#allocation2 + $0xd8] sm:$0xff] }
 0x132   :  { %2095 = vmatpush.msra.mxu0 %v7457_v21  ;;  %2190 = vmatpush.msra.mxu2 %v10625_v56  ;;  %v115_v21 = vld [vmem:[#allocation2 + $0xc8] sm:$0xff] }
 0x133   :  { %2131 = vmatpush.msra.mxu1 %v7379_v27  ;;  %2241 = vmatpush.msra.mxu3 %v7395_v52  ;;  %v7663_v27 = vand.u32 4294901760, %v121_v14  ;;  %v939_v2 = vpop.f32.mrf.mxu0  ;;  %v103_v56 = vld [vmem:[#allocation2 + $0x68] sm:$0xff] }
 0x134   :  { %2098 = vmatpush.msra.mxu0 %v7470_v12  ;;  %2194 = vmatpush.msra.mxu2 %v10627_v28  ;;  %v7682_v12 = vand.u32 4294901760, %v117_v44  ;;  %v7751_v28 = vand.u32 4294901760, %v105_v59 }
 0x135   :  { %2133 = vmatpush.msra.mxu1 %v7395_v52  ;;  %2243 = vmatpush.msra.mxu3 %v7408_v8  ;;  %v7670_v52 = vand.u32 4294901760, %v119_v29 }
 0x136   :  { %2101 = vmatpush.msra.mxu0 %v7484_v36  ;;  %2198 = vmatpush.msra.mxu2 %v2021_v42 }
 0x137   :  { %2135 = vmatpush.msra.mxu1 %v7408_v8  ;;  %2245 = vmatpush.msra.mxu3 %v7422_v0  ;;  %v7678_v8 = vsub.f32 %v121_v14, %v7663_v27  ;;  %v7688_v36 = vsub.f32 %v119_v29, %v7670_v52 }
 0x138   :  { %2104 = vmatpush.msra.mxu0 %v7497_v9  ;;  %2202 = vmatpush.msra.mxu2 %v2027_v37 }
 0x139   :  { %2137 = vmatpush.msra.mxu1 %v7422_v0  ;;  %2247 = vmatpush.msra.mxu3 %v7435_v1  ;;  %v113_v0 = vld [vmem:[#allocation2 + $0xb8] sm:$0xff]  ;;  %v10384_v9 = vand.u32 4294901760, %v7678_v8 }
 0x13a   :  { %2107 = vmatpush.msra.mxu0 %v7515_v11  ;;  %2206 = vmatpush.msra.mxu2 %v2033_v39  ;;  %v1040_v42 = vpop.f32.mrf.mxu1  ;;  %v7697_v51 = vand.u32 4294901760, %v113_v0  ;;  %v7708_v11 = vand.u32 4294901760, %v111_v7 }
 0x13b   :  { %2139 = vmatpush.msra.mxu1 %v7435_v1  ;;  %2249 = vmatpush.msra.mxu3 %v7447_v41  ;;  %v1041_v37 = vadd.f32 %v1040_v42, %v939_v2  ;;  %v1094_v50 = vpop.f32.mrf.mxu2  ;;  %v7692_v1 = vand.u32 4294901760, %v115_v21  ;;  %v101_v42 = vld [vmem:[#allocation2 + $0x58] sm:$0xff] }
 0x13c   :  { %2110 = vmatpush.msra.mxu0 %v7528_v40  ;;  %2210 = vmatpush.msra.mxu2 %v2039_v20  ;;  %v2309_v40 = vsub.f32 %v7678_v8, %v10384_v9 }
 0x13d   :  { %2141 = vmatpush.msra.mxu1 %v7447_v41  ;;  %2251 = vmatpush.msra.mxu3 %v7459_v35  ;;  %v1095_v39 = vadd.f32 %v1094_v50, %v1041_v37  ;;  %v7703_v41 = vsub.f32 %v117_v44, %v7682_v12 }
 0x13e   :  { %2113 = vmatpush.msra.mxu0 %v7542_v63  ;;  %2214 = vmatpush.msra.mxu2 %v2045_v48  ;;  %v1133_v20 = vpop.f32.mrf.mxu3  ;;  %v10383_v48 = vand.u32 4294901760, %v7688_v36  ;;  %v2310_v38 = vand.u32 4294901760, %v2309_v40 }
 0x13f   :  { %2143 = vmatpush.msra.mxu1 %v7459_v35  ;;  %2253 = vmatpush.msra.mxu3 %v7472_v5  ;;  %v1134_v45 = vadd.f32 %v1133_v20, %v1095_v39  ;;  %v7714_v35 = vsub.f32 %v115_v21, %v7692_v1  ;;  %v10381_v57 = vand.u32 4294901760, %v7703_v41 }
 0x140   :  { %2116 = vmatmul.f32.vlgmr.msra.gmra.mxu0 %v7531_v23  ;;  %2218 = vmatpush.msra.mxu2 %v2051_v13  ;;  %v7723_v13 = vsub.f32 %v113_v0, %v7697_v51  ;;  %v2315_v63 = vsub.f32 %v7688_v36, %v10383_v48  ;;  %v7764_v0 = vand.u32 4294901760, %v103_v56 }
 0x141   :  { %2266 = vmatpush.msrb.mxu0 %v7663_v27  ;;  %2145 = vmatpush.msra.mxu1 %v7472_v5  ;;  %v1202_v26 = vpop.f32.mrf.mxu0  ;;  %v7727_v5 = vand.u32 4294901760, %v109_v62  ;;  %v10380_v43 = vand.u32 4294901760, %v7714_v35  ;;  %v2321_v14 = vsub.f32 %v7703_v41, %v10381_v57  ;;  %v151_v57 = vld [vmem:[#allocation2 + $0x1e8] sm:$0xff] }
 0x142   :  { %2255 = vmatpush.msra.mxu3 %v7489_v53  ;;  %2222 = vmatpush.msra.mxu2 %v2057_v33  ;;  %v1203_v25 = vadd.f32 %v1202_v26, %v1134_v45  ;;  %v7736_v33 = vsub.f32 %v111_v7, %v7708_v11  ;;  %v10379_v16 = vand.u32 4294901760, %v7723_v13  ;;  %v2316_v2 = vand.u32 4294901760, %v2315_v63  ;;  %v99_v7 = vld [vmem:[#allocation2 + $0x48] sm:$0xff] }
 0x143   :  { %2268 = vmatpush.msrb.mxu0 %v7670_v52  ;;  %2147 = vmatpush.msra.mxu1 %v7489_v53  ;;  %v7740_v53 = vand.u32 4294901760, %v107_v22  ;;  %v7754_v29 = vsub.f32 %v109_v62, %v7727_v5  ;;  %v2327_v37 = vsub.f32 %v7714_v35, %v10380_v43  ;;  %v2322_v20 = vand.u32 4294901760, %v2321_v14 }
 0x144   :  { %2257 = vmatpush.msra.mxu3 %v7504_v17  ;;  %2224 = vmatmul.f32.vlgmr.msra.gmra.mxu2 %v7499_v10  ;;  %v1239_v18 = vpop.f32.mrf.mxu1  ;;  %v10377_v44 = vand.u32 4294901760, %v7736_v33  ;;  %v7777_v45 = vand.u32 4294901760, %v101_v42  ;;  %v7781_v26 = vsub.f32 %v105_v59, %v7751_v28  ;;  %v7789_v63 = vand.u32 4294901760, %v99_v7 }
 0x145   :  { %2270 = vmatpush.msrb.mxu0 %v7682_v12  ;;  %2409 = vmatpush.msrb.mxu2 %v7678_v8  ;;  %v1240_v61 = vadd.f32 %v1239_v18, %v1203_v25  ;;  %v1280_v6 = vpop.f32.mrf.mxu2  ;;  %v7767_v50 = vsub.f32 %v107_v22, %v7740_v53  ;;  %v10376_v62 = vand.u32 4294901760, %v7754_v29  ;;  %v97_v25 = vld [vmem:[#allocation2 + $0x38] sm:$0xff]  ;;  %v2328_v22 = vand.u32 4294901760, %v2327_v37 }
 0x146   :  { %2149 = vmatpush.msra.mxu1 %v7504_v17  ;;  %2259 = vmatpush.msra.mxu3 %v7517_v47  ;;  %v2339_v40 = vsub.f32 %v7736_v33, %v10377_v44  ;;  %v7793_v59 = vsub.f32 %v103_v56, %v7764_v0  ;;  %v7801_v14 = vand.u32 4294901760, %v97_v25  ;;  %v7805_v56 = vsub.f32 %v101_v42, %v7777_v45  ;;  %v93_v42 = vld [vmem:[#allocation2 + $0x18] sm:$0xff] }
 0x147   :  { %2261 = vmatmul.f32.vlgmr.msra.gmra.mxu3 %v7499_v10  ;;  %2272 = vmatpush.msrb.mxu0 %v7692_v1  ;;  %v1281_v17 = vadd.f32 %v1280_v6, %v1240_v61  ;;  %v10375_v18 = vand.u32 4294901760, %v7767_v50  ;;  %v95_v6 = vld [vmem:[#allocation2 + $0x28] sm:$0xff]  ;;  %v7831_v44 = vand.u32 4294901760, %v93_v42  ;;  %v7863_v15 = vand.u32 4294901760, %v151_v57 }
 0x148   :  { %2412 = vmatpush.msrb.mxu2 %v7688_v36  ;;  %2462 = vmatpush.msrb.mxu3 %v7663_v27  ;;  %v1381_v21 = vpop.f32.mrf.mxu3  ;;  %v7813_v37 = vand.u32 4294901760, %v95_v6 }
 0x149   :  { %2151 = vmatpush.msra.mxu1 %v7517_v47  ;;  %2274 = vmatpush.msrb.mxu0 %v7697_v51  ;;  %v7769_v39 = vadd.f32 %v1381_v21, %v1281_v17  ;;  %v2333_v47 = vsub.f32 %v7723_v13, %v10379_v16  ;;  %v10378_v17 = vand.u32 4294901760, %v7781_v26  ;;  %v2351_v21 = vsub.f32 %v7767_v50, %v10375_v18  ;;  %v149_v16 = vld [vmem:[#allocation2 + $0x1d8] sm:$0xff] }
 0x14a   :  { %2155 = vmatmul.f32.vlgmr.msra.gmra.mxu1 %v7553_v4  ;;  %2415 = vmatpush.msrb.mxu2 %v7703_v41  ;;  %v10385_v18 = vand.u32 4294901760, %v7805_v56  ;;  %10629 = vst [vmem:[#allocation33_spill] sm:$0xff] %v7831_v44  ;;  %v7889_v23 = vsub.f32 %v151_v57, %v7863_v15 }
 0x14b   :  { %2311 = vmatpush.msrb.mxu1 %v2310_v38  ;;  %2464 = vmatpush.msrb.mxu3 %v7670_v52  ;;  %v2334_v61 = vand.u32 4294901760, %v2333_v47  ;;  %v2345_v38 = vsub.f32 %v7754_v29, %v10376_v62  ;;  %v10382_v47 = vand.u32 4294901760, %v7793_v59  ;;  %v7827_v62 = vsub.f32 %v97_v25, %v7801_v14 }
 0x14c   :  { %2276 = vmatpush.msrb.mxu0 %v7708_v11  ;;  %2418 = vmatpush.msrb.mxu2 %v7714_v35  ;;  %v7839_v25 = vsub.f32 %v95_v6, %v7813_v37  ;;  %v145_v6 = vld [vmem:[#allocation2 + $0x1b8] sm:$0xff] }
 0x14d   :  { %2317 = vmatpush.msrb.mxu1 %v2316_v2  ;;  %2466 = vmatpush.msrb.mxu3 %v7682_v12  ;;  %v2340_v2 = vand.u32 4294901760, %v2339_v40  ;;  %v2346_v40 = vand.u32 4294901760, %v2345_v38  ;;  %v2352_v38 = vand.u32 4294901760, %v2351_v21  ;;  %v2369_v21 = vsub.f32 %v7805_v56, %v10385_v18 }
 0x14e   :  { %2278 = vmatpush.msrb.mxu0 %v7727_v5  ;;  %2421 = vmatpush.msrb.mxu2 %v7723_v13 }
 0x14f   :  { %2323 = vmatpush.msrb.mxu1 %v2322_v20  ;;  %2468 = vmatpush.msrb.mxu3 %v7692_v1  ;;  %v7817_v20 = vsub.f32 %v99_v7, %v7789_v63  ;;  %v153_v7 = vld [vmem:[#allocation2 + $0x1f8] sm:$0xff] }
 0x150   :  { %2280 = vmatpush.msrb.mxu0 %v7740_v53  ;;  %2424 = vmatpush.msrb.mxu2 %v7736_v33  ;;  %v7843_v43 = vand.u32 4294901760, %v153_v7 }
 0x151   :  { %2329 = vmatpush.msrb.mxu1 %v2328_v22  ;;  %2470 = vmatpush.msrb.mxu3 %v7697_v51  ;;  %v2357_v22 = vsub.f32 %v7781_v26, %v10378_v17  ;;  %v2363_v17 = vsub.f32 %v7793_v59, %v10382_v47  ;;  %v10630_v18 = vand.u32 4294901760, %v7817_v20 }
 0x152   :  { %2282 = vmatpush.msrb.mxu0 %v7751_v28  ;;  %2427 = vmatpush.msrb.mxu2 %v7754_v29 }
 0x153   :  { %2335 = vmatpush.msrb.mxu1 %v2334_v61  ;;  %2472 = vmatpush.msrb.mxu3 %v7708_v11  ;;  %v91_v61 = vld [vmem:[#allocation2 + $0x8] sm:$0xff]  ;;  %v2375_v4 = vsub.f32 %v7817_v20, %v10630_v18 }
 0x154   :  { %2284 = vmatpush.msrb.mxu0 %v7764_v0  ;;  %2430 = vmatpush.msrb.mxu2 %v7767_v50  ;;  %v7849_v47 = vand.u32 4294901760, %v91_v61 }
 0x155   :  { %2341 = vmatpush.msrb.mxu1 %v2340_v2  ;;  %2474 = vmatpush.msrb.mxu3 %v7727_v5  ;;  %v2358_v2 = vand.u32 4294901760, %v2357_v22  ;;  %v2364_v22 = vand.u32 4294901760, %v2363_v17  ;;  %v10631_v17 = vand.u32 4294901760, %v7827_v62 }
 0x156   :  { %2286 = vmatpush.msrb.mxu0 %v7777_v45  ;;  %2433 = vmatpush.msrb.mxu2 %v7781_v26 }
 0x157   :  { %2347 = vmatpush.msrb.mxu1 %v2346_v40  ;;  %2476 = vmatpush.msrb.mxu3 %v7740_v53  ;;  %v1435_v48 = vpop.f32.mrf.mxu0  ;;  %v7856_v40 = vsub.f32 %v93_v42, %v7831_v44  ;;  %v2381_v18 = vsub.f32 %v7827_v62, %v10631_v17  ;;  %v7875_v42 = vsub.f32 %v91_v61, %v7849_v47  ;;  %v10632_v17 = vand.u32 4294901760, %v7839_v25 }
 0x158   :  { %2288 = vmatpush.msrb.mxu0 %v7789_v63  ;;  %2436 = vmatpush.msrb.mxu2 %v7793_v59  ;;  %v1436_v9 = vadd.f32 %v1435_v48, %v7769_v39  ;;  %v7868_v48 = vsub.f32 %v153_v7, %v7843_v43  ;;  %v2370_v39 = vand.u32 4294901760, %v2369_v21  ;;  %v2376_v21 = vand.u32 4294901760, %v2375_v4 }
 0x159   :  { %2353 = vmatpush.msrb.mxu1 %v2352_v38  ;;  %2478 = vmatpush.msrb.mxu3 %v7751_v28  ;;  %v7877_v38 = vand.u32 4294901760, %v149_v16  ;;  %v2387_v61 = vsub.f32 %v7839_v25, %v10632_v17  ;;  %v7894_v7 = vand.u32 4294901760, %v145_v6  ;;  %v2382_v4 = vand.u32 4294901760, %v2381_v18 }
 0x15a   :  { %2290 = vmatpush.msrb.mxu0 %v7801_v14  ;;  %2439 = vmatpush.msrb.mxu2 %v7805_v56  ;;  %v10633_v57 = vand.u32 4294901760, %v7856_v40 }
 0x15b   :  { %2359 = vmatpush.msrb.mxu1 %v2358_v2  ;;  %2480 = vmatpush.msrb.mxu3 %v7764_v0  ;;  %v7882_v2 = vand.u32 4294901760, %v147_v49  ;;  %v7899_v17 = vsub.f32 %v149_v16, %v7877_v38  ;;  %v2388_v18 = vand.u32 4294901760, %v2387_v61  ;;  %v10636_v61 = vand.u32 4294901760, %v7678_v8  ;;  %v137_v8 = vld [vmem:[#allocation2 + $0x178] sm:$0xff] }
 0x15c   :  { %2292 = vmatpush.msrb.mxu0 %v7813_v37  ;;  %2442 = vmatpush.msrb.mxu2 %v7817_v20  ;;  %v2393_v24 = vsub.f32 %v7856_v40, %v10633_v57  ;;  %v10635_v57 = vand.u32 4294901760, %v7868_v48 }
 0x15d   :  { %2365 = vmatpush.msrb.mxu1 %v2364_v22  ;;  %2482 = vmatpush.msrb.mxu3 %v7777_v45  ;;  %v7907_v30 = vsub.f32 %v147_v49, %v7882_v2  ;;  %v10637_v22 = vand.u32 4294901760, %v7875_v42 }
 0x15e   :  { %2294 = vmatpush.msrb.mxu0 %v7831_v44  ;;  %2445 = vmatpush.msrb.mxu2 %v7827_v62  ;;  %v2650_v49 = vsub.f32 %v7868_v48, %v10635_v57 }
 0x15f   :  { %2371 = vmatpush.msrb.mxu1 %v2370_v39  ;;  %2484 = vmatpush.msrb.mxu3 %v7789_v63  ;;  %v141_v39 = vld [vmem:[#allocation2 + $0x198] sm:$0xff]  ;;  %v2399_v10 = vsub.f32 %v7875_v42, %v10637_v22  ;;  %v10639_v22 = vand.u32 4294901760, %v7889_v23 }
 0x160   :  { %2296 = vmatpush.msrb.mxu0 %v7849_v47  ;;  %2448 = vmatpush.msrb.mxu2 %v7839_v25  ;;  %v7927_v46 = vand.u32 4294901760, %v141_v39 }
 0x161   :  { %2377 = vmatpush.msrb.mxu1 %v2376_v21  ;;  %2486 = vmatpush.msrb.mxu3 %v7801_v14  ;;  %v1474_v16 = vpop.f32.mrf.mxu1  ;;  %v1543_v55 = vpop.f32.mrf.mxu2  ;;  %v7919_v21 = vsub.f32 %v145_v6, %v7894_v7 }
 0x162   :  { %2302 = vmatmul.f32.vlgmr.msrb.gmra.mxu0 %v10634_v60  ;;  %2451 = vmatpush.msrb.mxu2 %v7856_v40  ;;  %v1475_v19 = vadd.f32 %v1474_v16, %v1436_v9  ;;  %v2394_v9 = vand.u32 4294901760, %v2393_v24  ;;  %v7938_v60 = vsub.f32 %v143_v31, %v7911_v3  ;;  %v10643_v31 = vand.u32 4294901760, %v7899_v17 }
 0x163   :  { %2503 = vmatpush.msra.mxu0 %v10636_v61  ;;  %2383 = vmatpush.msrb.mxu1 %v2382_v4  ;;  %v10638_v4 = vand.u32 4294901760, %v7688_v36  ;;  %v2656_v61 = vsub.f32 %v7889_v23, %v10639_v22  ;;  %v2400_v22 = vand.u32 4294901760, %v2399_v10  ;;  %v10646_v10 = vand.u32 4294901760, %v7714_v35 }
 0x164   :  { %2488 = vmatpush.msrb.mxu3 %v7813_v37  ;;  %2454 = vmatpush.msrb.mxu2 %v7875_v42  ;;  %v1544_v6 = vadd.f32 %v1543_v55, %v1475_v19  ;;  %v1580_v57 = vpop.f32.mrf.mxu3  ;;  %v10640_v19 = vld [vmem:[#allocation16_spill] sm:$0xff]  ;;  %v2651_v55 = vand.u32 4294901760, %v2650_v49  ;;  %v2662_v16 = vsub.f32 %v7899_v17, %v10643_v31  ;;  %v10644_v49 = vand.u32 4294901760, %v7907_v30  ;;  %v129_v31 = vld [vmem:[#allocation2 + $0x138] sm:$0xff] }
 0x165   :  { %2507 = vmatpush.msra.mxu0 %v10638_v4  ;;  %2389 = vmatpush.msrb.mxu1 %v2388_v18  ;;  %v135_v4 = vld [vmem:[#allocation2 + $0x168] sm:$0xff]  ;;  %v10642_v18 = vand.u32 4294901760, %v7703_v41  ;;  %v10648_v35 = vand.u32 4294901760, %v7723_v13  ;;  %v10649_v13 = vand.u32 4294901760, %v7938_v60 }
 0x166   :  { %2490 = vmatpush.msrb.mxu3 %v7831_v44  ;;  %2457 = vmatmul.f32.vlgmr.msrb.gmra.mxu2 %v10640_v19  ;;  %v7944_v24 = vadd.f32 %v1580_v57, %v1544_v6  ;;  %v7954_v44 = vsub.f32 %v141_v39, %v7927_v46  ;;  %v7956_v19 = vand.u32 4294901760, %v137_v8  ;;  %v2668_v41 = vsub.f32 %v7907_v30, %v10644_v49  ;;  %v133_v6 = vld [vmem:[#allocation2 + $0x158] sm:$0xff]  ;;  %v10645_v57 = vld [vmem:[#allocation21_spill] sm:$0xff] }
 0x167   :  { %2511 = vmatpush.msra.mxu0 %v10642_v18  ;;  %2607 = vmatpush.msra.mxu2 %v7843_v43  ;;  %v2657_v18 = vand.u32 4294901760, %v2656_v61  ;;  %v7967_v39 = vsub.f32 %v139_v32, %v7940_v58  ;;  %v7969_v36 = vand.u32 4294901760, %v135_v4  ;;  %v2663_v61 = vand.u32 4294901760, %v2662_v16 }
 0x168   :  { %10641 = vst [vmem:[#allocation18_spill] sm:$0xff] %v7944_v24  ;;  %2395 = vmatpush.msrb.mxu1 %v2394_v9  ;;  %2492 = vmatpush.msrb.mxu3 %v7849_v47  ;;  %v10647_v9 = vand.u32 4294901760, %v7919_v21  ;;  %v131_v24 = vld [vmem:[#allocation2 + $0x148] sm:$0xff]  ;;  %v7979_v32 = vsub.f32 %v137_v8, %v7956_v19  ;;  %v2680_v16 = vsub.f32 %v7938_v60, %v10649_v13  ;;  %v8006_v13 = vand.u32 4294901760, %v129_v31 }
 0x169   :  { %2496 = vmatmul.f32.vlgmr.msrb.gmra.mxu3 %v10645_v57  ;;  %2515 = vmatpush.msra.mxu0 %v10646_v10  ;;  %v10392_v57 = vand.u32 4294901760, %v7954_v44  ;;  %v7981_v10 = vand.u32 4294901760, %v133_v6  ;;  %v7991_v8 = vsub.f32 %v135_v4, %v7969_v36 }
 0x16a   :  { %2609 = vmatpush.msra.mxu2 %v7863_v15  ;;  %2652 = vmatpush.msra.mxu3 %v2651_v55  ;;  %v2674_v49 = vsub.f32 %v7919_v21, %v10647_v9  ;;  %v2669_v55 = vand.u32 4294901760, %v2668_v41  ;;  %v7993_v9 = vand.u32 4294901760, %v131_v24 }
 0x16b   :  { %2401 = vmatpush.msrb.mxu1 %v2400_v22  ;;  %2519 = vmatpush.msra.mxu0 %v10648_v35  ;;  %v10650_v35 = vand.u32 4294901760, %v7736_v33  ;;  %v8004_v4 = vsub.f32 %v133_v6, %v7981_v10  ;;  %v127_v22 = vld [vmem:[#allocation2 + $0x128] sm:$0xff]  ;;  %v10651_v33 = vand.u32 4294901760, %v7754_v29 }
 0x16c   :  { %2403 = vmatmul.f32.vlgmr.msrb.gmra.mxu1 %v7252_v54  ;;  %2611 = vmatpush.msra.mxu2 %v7877_v38  ;;  %v2675_v41 = vand.u32 4294901760, %v2674_v49  ;;  %v10652_v49 = vand.u32 4294901760, %v7967_v39  ;;  %v8017_v6 = vsub.f32 %v131_v24, %v7993_v9  ;;  %v8022_v29 = vand.u32 4294901760, %v127_v22 }
 0x16d   :  { %2570 = vmatpush.msra.mxu1 %v7663_v27  ;;  %2658 = vmatpush.msra.mxu3 %v2657_v18  ;;  %v2686_v27 = vsub.f32 %v7954_v44, %v10392_v57  ;;  %v125_v57 = vld [vmem:[#allocation2 + $0x118] sm:$0xff]  ;;  %v10653_v18 = vand.u32 4294901760, %v7767_v50  ;;  %v8030_v24 = vsub.f32 %v129_v31, %v8006_v13  ;;  %v10655_v50 = vand.u32 4294901760, %v7781_v26 }
 0x16e   :  { %2523 = vmatpush.msra.mxu0 %v10650_v35  ;;  %2613 = vmatpush.msra.mxu2 %v7882_v2  ;;  %v2703_v35 = vand.u32 4294901760, %v7991_v8  ;;  %v10656_v31 = vand.u32 4294901760, %v7793_v59  ;;  %v8046_v26 = vsub.f32 %v127_v22, %v8022_v29  ;;  %v10657_v59 = vand.u32 4294901760, %v7805_v56 }
 0x16f   :  { %2572 = vmatpush.msra.mxu1 %v7670_v52  ;;  %2664 = vmatpush.msra.mxu3 %v2663_v61  ;;  %v2681_v52 = vand.u32 4294901760, %v2680_v16  ;;  %v2692_v61 = vsub.f32 %v7967_v39, %v10652_v49  ;;  %v123_v49 = vld [vmem:[#allocation2 + $0x108] sm:$0xff] }
 0x170   :  { %2527 = vmatpush.msra.mxu0 %v10651_v33  ;;  %2615 = vmatpush.msra.mxu2 %v7894_v7  ;;  %v2709_v33 = vand.u32 4294901760, %v8004_v4  ;;  %v2727_v56 = vand.u32 4294901760, %v8046_v26 }
 0x171   :  { %2574 = vmatpush.msra.mxu1 %v7682_v12  ;;  %2670 = vmatpush.msra.mxu3 %v2669_v55  ;;  %v2687_v12 = vand.u32 4294901760, %v2686_v27  ;;  %v10654_v55 = vand.u32 4294901760, %v7979_v32  ;;  %v2715_v27 = vand.u32 4294901760, %v8017_v6 }
 0x172   :  { %2531 = vmatpush.msra.mxu0 %v10653_v18  ;;  %2617 = vmatpush.msra.mxu2 %v7911_v3  ;;  %v8035_v18 = vand.u32 4294901760, %v125_v57 }
 0x173   :  { %2576 = vmatpush.msra.mxu1 %v7692_v1  ;;  %2676 = vmatpush.msra.mxu3 %v2675_v41  ;;  %v2698_v16 = vsub.f32 %v7979_v32, %v10654_v55  ;;  %v2693_v1 = vand.u32 4294901760, %v2692_v61  ;;  %v2704_v41 = vsub.f32 %v7991_v8, %v2703_v35  ;;  %v8048_v55 = vand.u32 4294901760, %v123_v49 }
 0x174   :  { %2535 = vmatpush.msra.mxu0 %v10655_v50  ;;  %2619 = vmatpush.msra.mxu2 %v7927_v46  ;;  %v2721_v61 = vand.u32 4294901760, %v8030_v24  ;;  %v8059_v22 = vsub.f32 %v125_v57, %v8035_v18 }
 0x175   :  { %2578 = vmatpush.msra.mxu1 %v7697_v51  ;;  %2682 = vmatpush.msra.mxu3 %v2681_v52  ;;  %v2699_v51 = vand.u32 4294901760, %v2698_v16  ;;  %v2710_v52 = vsub.f32 %v8004_v4, %v2709_v33  ;;  %v10658_v16 = vand.u32 4294901760, %v7817_v20  ;;  %v8070_v50 = vsub.f32 %v123_v49, %v8048_v55 }
 0x176   :  { %2539 = vmatpush.msra.mxu0 %v10656_v31  ;;  %2621 = vmatpush.msra.mxu2 %v7940_v58  ;;  %v2722_v57 = vsub.f32 %v8030_v24, %v2721_v61  ;;  %v2733_v20 = vand.u32 4294901760, %v8059_v22 }
 0x177   :  { %2580 = vmatpush.msra.mxu1 %v7708_v11  ;;  %2688 = vmatpush.msra.mxu3 %v2687_v12  ;;  %v2705_v11 = vand.u32 4294901760, %v2704_v41  ;;  %v2716_v12 = vsub.f32 %v8017_v6, %v2715_v27  ;;  %v10660_v41 = vand.u32 4294901760, %v7839_v25  ;;  %v10662_v25 = vand.u32 4294901760, %v7875_v42 }
 0x178   :  { %2543 = vmatpush.msra.mxu0 %v10657_v59  ;;  %2623 = vmatpush.msra.mxu2 %v7956_v19  ;;  %v2723_v31 = vand.u32 4294901760, %v2722_v57  ;;  %v10664_v59 = vld [vmem:[#allocation20_spill] sm:$0xff] }
 0x179   :  { %2582 = vmatpush.msra.mxu1 %v7727_v5  ;;  %2694 = vmatpush.msra.mxu3 %v2693_v1  ;;  %v2711_v5 = vand.u32 4294901760, %v2710_v52  ;;  %v10659_v1 = vand.u32 4294901760, %v7827_v62  ;;  %v2717_v49 = vand.u32 4294901760, %v2716_v12  ;;  %v2739_v62 = vand.u32 4294901760, %v8070_v50  ;;  %v10667_v12 = vld [vmem:[#allocation25_spill] sm:$0xff] }
 0x17a   :  { %2547 = vmatpush.msra.mxu0 %v10658_v16  ;;  %2625 = vmatpush.msra.mxu2 %v7969_v36  ;;  %v10668_v16 = vld [vmem:[#allocation26_spill] sm:$0xff] }
 0x17b   :  { %2584 = vmatpush.msra.mxu1 %v7740_v53  ;;  %2700 = vmatpush.msra.mxu3 %v2699_v51  ;;  %v2728_v53 = vsub.f32 %v8046_v26, %v2727_v56  ;;  %v10661_v51 = vand.u32 4294901760, %v7856_v40  ;;  %v2740_v40 = vsub.f32 %v8070_v50, %v2739_v62 }
 0x17c   :  { %2551 = vmatpush.msra.mxu0 %v10659_v1  ;;  %2627 = vmatpush.msra.mxu2 %v7981_v10 }
 0x17d   :  { %2586 = vmatpush.msra.mxu1 %v7751_v28  ;;  %2706 = vmatpush.msra.mxu3 %v2705_v11  ;;  %v2734_v28 = vsub.f32 %v8059_v22, %v2733_v20  ;;  %v10665_v11 = vand.u32 4294901760, %v7868_v48 }
 0x17e   :  { %2555 = vmatpush.msra.mxu0 %v10660_v41  ;;  %2629 = vmatpush.msra.mxu2 %v7993_v9 }
 0x17f   :  { %2588 = vmatpush.msra.mxu1 %v7764_v0  ;;  %2712 = vmatpush.msra.mxu3 %v2711_v5  ;;  %v2729_v0 = vand.u32 4294901760, %v2728_v53  ;;  %v2735_v52 = vand.u32 4294901760, %v2734_v28  ;;  %v10669_v5 = vand.u32 4294901760, %v7889_v23  ;;  %v3096_v53 = vld [vmem:[#allocation2 + $0x2a0] sm:$0xff] }
 0x180   :  { %2559 = vmatpush.msra.mxu0 %v10661_v51  ;;  %2631 = vmatpush.msra.mxu2 %v8006_v13  ;;  %v3094_v51 = vld [vmem:[#allocation2 + $0x290] sm:$0xff]  ;;  %v10685_v28 = vld [vmem:[#allocation31_spill] sm:$0xff] }
 0x181   :  { %2590 = vmatpush.msra.mxu1 %v7777_v45  ;;  %2718 = vmatpush.msra.mxu3 %v2717_v49  ;;  %v2741_v45 = vand.u32 4294901760, %v2740_v40  ;;  %v3098_v49 = vld [vmem:[#allocation2 + $0x2b0] sm:$0xff] }
 0x182   :  { %2563 = vmatpush.msra.mxu0 %v10662_v25  ;;  %2633 = vmatpush.msra.mxu2 %v8022_v29 }
 0x183   :  { %2592 = vmatpush.msra.mxu1 %v7789_v63  ;;  %2724 = vmatpush.msra.mxu3 %v2723_v31  ;;  %v10663_v63 = vld [vmem:[#allocation19_spill] sm:$0xff] }
 0x184   :  { %2565 = vmatmul.f32.vlgmr.msra.gmra.mxu0 %v7252_v54  ;;  %2635 = vmatpush.msra.mxu2 %v8035_v18  ;;  %v359_v42 = vadd.f32 %v10663_v63, %v7579_v34  ;;  %v10670_v34 = vand.u32 4294901760, %v7899_v17  ;;  %v10684_v31 = vld [vmem:[#allocation23_spill] sm:$0xff] }
 0x185   :  { %2750 = vmatpush.msrb.mxu0 %v7868_v48  ;;  %2594 = vmatpush.msra.mxu1 %v7801_v14  ;;  %v10666_v14 = vld [vmem:[#allocation33_spill] sm:$0xff]  ;;  %v10671_v48 = vld [vmem:[#allocation27_spill] sm:$0xff] }
 0x186   :  { %2730 = vmatpush.msra.mxu3 %v2729_v0  ;;  %2637 = vmatpush.msra.mxu2 %v8048_v55 }
 0x187   :  { %2753 = vmatpush.msrb.mxu0 %v7889_v23  ;;  %2596 = vmatpush.msra.mxu1 %v7813_v37  ;;  %v413_v37 = vadd.f32 %v10668_v16, %v359_v42  ;;  %v10672_v23 = vand.u32 4294901760, %v7907_v30  ;;  %v3088_v42 = vld [vmem:[#allocation2 + $0x260] sm:$0xff]  ;;  %v1722_v16 = vpop.f32.mrf.mxu1 }
 0x188   :  { %2736 = vmatpush.msra.mxu3 %v2735_v52  ;;  %2643 = vmatmul.f32.vlgmr.msra.gmra.mxu2 %v10664_v59  ;;  %v3090_v52 = vld [vmem:[#allocation2 + $0x270] sm:$0xff]  ;;  %v10686_v59 = vld [vmem:[#allocation32_spill] sm:$0xff] }
 0x189   :  { %2756 = vmatpush.msrb.mxu0 %v7899_v17  ;;  %2844 = vmatpush.msrb.mxu2 %v10665_v11  ;;  %v452_v57 = vadd.f32 %v10671_v48, %v413_v37 }
 0x18a   :  { %2598 = vmatpush.msra.mxu1 %v10666_v14  ;;  %2742 = vmatpush.msra.mxu3 %v2741_v45  ;;  %v8254_v14 = vand.u32 4294901760, %v3090_v52 }
 0x18b   :  { %2744 = vmatmul.f32.vlgmr.msra.gmra.mxu3 %v10667_v12  ;;  %2759 = vmatpush.msrb.mxu0 %v7907_v30  ;;  %v10675_v30 = vand.u32 4294901760, %v7938_v60 }
 0x18c   :  { %2848 = vmatpush.msrb.mxu2 %v10669_v5  ;;  %2911 = vmatpush.msrb.mxu3 %v7843_v43 }
 0x18d   :  { %2600 = vmatpush.msra.mxu1 %v7849_v47  ;;  %2762 = vmatpush.msrb.mxu0 %v7919_v21 }
 0x18e   :  { %2602 = vmatmul.f32.vlgmr.msra.gmra.mxu1 %v7252_v54  ;;  %2852 = vmatpush.msrb.mxu2 %v10670_v34  ;;  %v10673_v54 = vand.u32 4294901760, %v7919_v21  ;;  %v10678_v21 = vand.u32 4294901760, %v7967_v39 }
 0x18f   :  { %2803 = vmatpush.msrb.mxu1 %v7843_v43  ;;  %2913 = vmatpush.msrb.mxu3 %v7863_v15  ;;  %v10674_v43 = vld [vmem:[#allocation22_spill] sm:$0xff] }
 0x190   :  { %2765 = vmatpush.msrb.mxu0 %v7938_v60  ;;  %2856 = vmatpush.msrb.mxu2 %v10672_v23  ;;  %v521_v47 = vadd.f32 %v10674_v43, %v452_v57  ;;  %v8267_v57 = vand.u32 4294901760, %v3088_v42 }
 0x191   :  { %2805 = vmatpush.msrb.mxu1 %v7863_v15  ;;  %2915 = vmatpush.msrb.mxu3 %v7877_v38  ;;  %v10676_v15 = vand.u32 4294901760, %v7954_v44 }
 0x192   :  { %2768 = vmatpush.msrb.mxu0 %v7954_v44  ;;  %2860 = vmatpush.msrb.mxu2 %v10673_v54  ;;  %v10679_v44 = vand.u32 4294901760, %v7979_v32 }
 0x193   :  { %2807 = vmatpush.msrb.mxu1 %v7877_v38  ;;  %2917 = vmatpush.msrb.mxu3 %v7882_v2  ;;  %v10677_v38 = vld [vmem:[#allocation28_spill] sm:$0xff] }
 0x194   :  { %2771 = vmatpush.msrb.mxu0 %v7967_v39  ;;  %2864 = vmatpush.msrb.mxu2 %v10675_v30  ;;  %v558_v17 = vadd.f32 %v10677_v38, %v521_v47  ;;  %v8281_v38 = vsub.f32 %v3090_v52, %v8254_v14 }
 0x195   :  { %2809 = vmatpush.msrb.mxu1 %v7882_v2  ;;  %2919 = vmatpush.msrb.mxu3 %v7894_v7  ;;  %v3106_v2 = vld [vmem:[#allocation2 + $0x2f0] sm:$0xff] }
 0x196   :  { %2774 = vmatpush.msrb.mxu0 %v7979_v32  ;;  %2868 = vmatpush.msrb.mxu2 %v10676_v15  ;;  %v8169_v39 = vand.u32 4294901760, %v3106_v2  ;;  %v10687_v15 = vld [vmem:[#allocation15_spill] sm:$0xff] }
 0x197   :  { %2811 = vmatpush.msrb.mxu1 %v7894_v7  ;;  %2921 = vmatpush.msrb.mxu3 %v7911_v3  ;;  %v10680_v7 = vld [vmem:[#allocation24_spill] sm:$0xff] }
 0x198   :  { %2777 = vmatpush.msrb.mxu0 %v7991_v8  ;;  %2872 = vmatpush.msrb.mxu2 %v10678_v21  ;;  %v599_v60 = vadd.f32 %v10680_v7, %v558_v17  ;;  %v10681_v8 = vld [vmem:[#allocation17_spill] sm:$0xff]  ;;  %v1776_v17 = vpop.f32.mrf.mxu2 }
 0x199   :  { %2813 = vmatpush.msrb.mxu1 %v7911_v3  ;;  %2923 = vmatpush.msrb.mxu3 %v7927_v46  ;;  %v3104_v3 = vld [vmem:[#allocation2 + $0x2e0] sm:$0xff] }
 0x19a   :  { %2780 = vmatpush.msrb.mxu0 %v8004_v4  ;;  %2876 = vmatpush.msrb.mxu2 %v10679_v44  ;;  %v8176_v32 = vand.u32 4294901760, %v3104_v3 }
 0x19b   :  { %2815 = vmatpush.msrb.mxu1 %v7927_v46  ;;  %2925 = vmatpush.msrb.mxu3 %v7940_v58  ;;  %v3102_v46 = vld [vmem:[#allocation2 + $0x2d0] sm:$0xff] }
 0x19c   :  { %2783 = vmatpush.msrb.mxu0 %v8017_v6  ;;  %2880 = vmatpush.msrb.mxu2 %v2703_v35  ;;  %v700_v35 = vadd.f32 %v10681_v8, %v599_v60  ;;  %v8184_v4 = vand.u32 4294901760, %v3102_v46  ;;  %v8198_v6 = vsub.f32 %v3104_v3, %v8176_v32  ;;  %v8293_v60 = vsub.f32 %v3088_v42, %v8267_v57  ;;  %v3082_v3 = vld [vmem:[#allocation2 + $0x230] sm:$0xff] }
 0x19d   :  { %2817 = vmatpush.msrb.mxu1 %v7940_v58  ;;  %2927 = vmatpush.msrb.mxu3 %v7956_v19  ;;  %v3100_v58 = vld [vmem:[#allocation2 + $0x2c0] sm:$0xff]  ;;  %v3138_v42 = vld [vmem:[#allocation2 + $0x3f0] sm:$0xff] }
 0x19e   :  { %2786 = vmatpush.msrb.mxu0 %v8030_v24  ;;  %2884 = vmatpush.msrb.mxu2 %v2709_v33  ;;  %v10682_v33 = vld [vmem:[#allocation29_spill] sm:$0xff] }
 0x19f   :  { %2819 = vmatpush.msrb.mxu1 %v7956_v19  ;;  %2929 = vmatpush.msrb.mxu3 %v7969_v36  ;;  %v8187_v19 = vsub.f32 %v3106_v2, %v8169_v39  ;;  %v754_v1 = vadd.f32 %v10682_v33, %v700_v35 }
 0x1a0   :  { %2789 = vmatpush.msrb.mxu0 %v8046_v26  ;;  %2888 = vmatpush.msrb.mxu2 %v2715_v27  ;;  %v10683_v27 = vld [vmem:[#allocation30_spill] sm:$0xff]  ;;  %v10406_v26 = vand.u32 4294901760, %v8198_v6 }
 0x1a1   :  { %2821 = vmatpush.msrb.mxu1 %v7969_v36  ;;  %2931 = vmatpush.msrb.mxu3 %v7981_v10  ;;  %v8195_v36 = vand.u32 4294901760, %v3100_v58  ;;  %v793_v41 = vadd.f32 %v10683_v27, %v754_v1  ;;  %v3183_v24 = vand.u32 4294901760, %v8187_v19  ;;  %v10396_v1 = vand.u32 4294901760, %v8281_v38  ;;  %v1815_v27 = vpop.f32.mrf.mxu3 }
 0x1a2   :  { %2792 = vmatpush.msrb.mxu0 %v8059_v22  ;;  %2892 = vmatpush.msrb.mxu2 %v2721_v61  ;;  %v8210_v61 = vsub.f32 %v3102_v46, %v8184_v4  ;;  %v3092_v22 = vld [vmem:[#allocation2 + $0x280] sm:$0xff] }
 0x1a3   :  { %2823 = vmatpush.msrb.mxu1 %v7981_v10  ;;  %2933 = vmatpush.msrb.mxu3 %v7993_v9  ;;  %v8206_v10 = vand.u32 4294901760, %v3098_v49  ;;  %v862_v25 = vadd.f32 %v10685_v28, %v793_v41  ;;  %v10395_v28 = vand.u32 4294901760, %v8293_v60 }
 0x1a4   :  { %2795 = vmatpush.msrb.mxu0 %v8070_v50  ;;  %2896 = vmatpush.msrb.mxu2 %v2727_v56  ;;  %v8221_v56 = vsub.f32 %v3100_v58, %v8195_v36  ;;  %v10405_v0 = vand.u32 4294901760, %v8210_v61  ;;  %v1621_v50 = vpop.f32.mrf.mxu0 }
 0x1a5   :  { %2825 = vmatpush.msrb.mxu1 %v7993_v9  ;;  %2935 = vmatpush.msrb.mxu3 %v8006_v13  ;;  %v8217_v9 = vand.u32 4294901760, %v3096_v53  ;;  %v8236_v40 = vsub.f32 %v3098_v49, %v8206_v10  ;;  %v899_v11 = vadd.f32 %v10686_v59, %v862_v25  ;;  %v3080_v49 = vld [vmem:[#allocation2 + $0x220] sm:$0xff]  ;;  %v3078_v25 = vld [vmem:[#allocation2 + $0x210] sm:$0xff] }
 0x1a6   :  { %2798 = vmatmul.f32.vlgmr.msrb.gmra.mxu0 %v10684_v31  ;;  %2900 = vmatpush.msrb.mxu2 %v2733_v20  ;;  %v8232_v20 = vand.u32 4294901760, %v3094_v51  ;;  %v10403_v45 = vand.u32 4294901760, %v8221_v56  ;;  %v3196_v5 = vsub.f32 %v8210_v61, %v10405_v0  ;;  %v8309_v31 = vand.u32 4294901760, %v3082_v3 }
 0x1a7   :  { %3141 = vmatpush.msra.mxu0 %v8169_v39  ;;  %2827 = vmatpush.msrb.mxu1 %v8006_v13  ;;  %v3184_v13 = vsub.f32 %v8187_v19, %v3183_v24  ;;  %v8249_v63 = vsub.f32 %v3096_v53, %v8217_v9  ;;  %v10402_v34 = vand.u32 4294901760, %v8236_v40 }
 0x1a8   :  { %2937 = vmatpush.msrb.mxu3 %v8022_v29  ;;  %2904 = vmatpush.msrb.mxu2 %v2739_v62  ;;  %v8245_v62 = vand.u32 4294901760, %v3092_v22  ;;  %v8263_v48 = vsub.f32 %v3094_v51, %v8232_v20  ;;  %v3202_v54 = vsub.f32 %v8221_v56, %v10403_v45  ;;  %v3197_v21 = vand.u32 4294901760, %v3196_v5  ;;  %10688 = vst [vmem:[#allocation16_spill] sm:$0xff] %v8309_v31 }
 0x1a9   :  { %3143 = vmatpush.msra.mxu0 %v8176_v32  ;;  %2829 = vmatpush.msrb.mxu1 %v8022_v29  ;;  %v3190_v29 = vsub.f32 %v8198_v6, %v10406_v26  ;;  %v3185_v37 = vand.u32 4294901760, %v3184_v13  ;;  %v10400_v43 = vand.u32 4294901760, %v8249_v63  ;;  %v3208_v44 = vsub.f32 %v8236_v40, %v10402_v34  ;;  %v2990_v34 = vld [vmem:[#allocation7 + $0x10] sm:$0xff] }
 0x1aa   :  { %2939 = vmatpush.msrb.mxu3 %v8035_v18  ;;  %2906 = vmatmul.f32.vlgmr.msrb.gmra.mxu2 %v10667_v12  ;;  %v8276_v47 = vsub.f32 %v3092_v22, %v8245_v62  ;;  %v10399_v7 = vand.u32 4294901760, %v8263_v48  ;;  %v3203_v46 = vand.u32 4294901760, %v3202_v54 }
 0x1ab   :  { %3145 = vmatpush.msra.mxu0 %v8184_v4  ;;  %3284 = vmatpush.msra.mxu2 %v8187_v19  ;;  %v3191_v23 = vand.u32 4294901760, %v3190_v29  ;;  %v3214_v8 = vsub.f32 %v8249_v63, %v10400_v43  ;;  %v3209_v41 = vand.u32 4294901760, %v3208_v44 }
 0x1ac   :  { %2831 = vmatpush.msrb.mxu1 %v8035_v18  ;;  %2941 = vmatpush.msrb.mxu3 %v8048_v55  ;;  %v1622_v18 = vadd.f32 %v1621_v50, %v899_v11  ;;  %v10398_v58 = vand.u32 4294901760, %v8276_v47  ;;  %v3220_v53 = vsub.f32 %v8263_v48, %v10399_v7  ;;  %v1884_v22 = vpop.f32.mrf.mxu0  ;;  %v8321_v50 = vand.u32 4294901760, %v3080_v49 }
 0x1ad   :  { %2943 = vmatmul.f32.vlgmr.msrb.gmra.mxu3 %v10667_v12  ;;  %3147 = vmatpush.msra.mxu0 %v8195_v36  ;;  %v3086_v12 = vld [vmem:[#allocation2 + $0x250] sm:$0xff]  ;;  %v3215_v13 = vand.u32 4294901760, %v3214_v8  ;;  %v3232_v11 = vsub.f32 %v8281_v38, %v10396_v1 }
 0x1ae   :  { %3287 = vmatpush.msra.mxu2 %v8198_v6  ;;  %3337 = vmatpush.msra.mxu3 %v8169_v39  ;;  %v1723_v30 = vadd.f32 %v1722_v16, %v1622_v18  ;;  %v8287_v2 = vand.u32 4294901760, %v3086_v12  ;;  %v3226_v52 = vsub.f32 %v8276_v47, %v10398_v58  ;;  %10689 = vst [vmem:[#allocation21_spill] sm:$0xff] %v8321_v50  ;;  %v3076_v16 = vld [vmem:[#allocation2 + $0x200] sm:$0xff]  ;;  %v3221_v5 = vand.u32 4294901760, %v3220_v53 }
 0x1af   :  { %2833 = vmatpush.msrb.mxu1 %v8048_v55  ;;  %3149 = vmatpush.msra.mxu0 %v8206_v10  ;;  %v3084_v55 = vld [vmem:[#allocation2 + $0x240] sm:$0xff]  ;;  %v8332_v18 = vand.u32 4294901760, %v3078_v25  ;;  %v3233_v8 = vand.u32 4294901760, %v3232_v11 }
 0x1b0   :  { %2837 = vmatmul.f32.vlgmr.msrb.gmra.mxu1 %v10687_v15  ;;  %3290 = vmatpush.msra.mxu2 %v8210_v61  ;;  %v8299_v35 = vand.u32 4294901760, %v3084_v55  ;;  %v1777_v33 = vadd.f32 %v1776_v17, %v1723_v30  ;;  %v8312_v51 = vsub.f32 %v3086_v12, %v8287_v2  ;;  %v3238_v30 = vsub.f32 %v8293_v60, %v10395_v28 }
 0x1b1   :  { %3186 = vmatpush.msra.mxu1 %v3185_v37  ;;  %3339 = vmatpush.msra.mxu3 %v8176_v32  ;;  %v1921_v37 = vpop.f32.mrf.mxu1  ;;  %v8343_v15 = vand.u32 4294901760, %v3138_v42  ;;  %v3227_v17 = vand.u32 4294901760, %v3226_v52 }
 0x1b2   :  { %3151 = vmatpush.msra.mxu0 %v8217_v9  ;;  %3293 = vmatpush.msra.mxu2 %v8221_v56  ;;  %v8324_v29 = vsub.f32 %v3084_v55, %v8299_v35  ;;  %v1816_v59 = vadd.f32 %v1815_v27, %v1777_v33  ;;  %v10393_v12 = vand.u32 4294901760, %v8312_v51  ;;  %v3136_v55 = vld [vmem:[#allocation2 + $0x3e0] sm:$0xff]  ;;  %v3134_v33 = vld [vmem:[#allocation2 + $0x3d0] sm:$0xff]  ;;  %v1962_v27 = vpop.f32.mrf.mxu2  ;;  %v3239_v52 = vand.u32 4294901760, %v3238_v30  ;;  %v2063_v30 = vpop.f32.mrf.mxu3 }
 0x1b3   :  { %3192 = vmatpush.msra.mxu1 %v3191_v23  ;;  %3341 = vmatpush.msra.mxu3 %v8184_v4  ;;  %v8336_v23 = vsub.f32 %v3082_v3, %v8309_v31  ;;  %10690 = vst [vmem:[#allocation19_spill] sm:$0xff] %v8343_v15  ;;  %v8350_v3 = vsub.f32 %v3080_v49, %v8321_v50 }
 0x1b4   :  { %3153 = vmatpush.msra.mxu0 %v8232_v20  ;;  %3296 = vmatpush.msra.mxu2 %v8236_v40  ;;  %v1885_v54 = vadd.f32 %v1884_v22, %v1816_v59  ;;  %v10394_v44 = vand.u32 4294901760, %v8324_v29  ;;  %v8360_v49 = vsub.f32 %v3078_v25, %v8332_v18  ;;  %v8362_v22 = vand.u32 4294901760, %v3136_v55 }
 0x1b5   :  { %3198 = vmatpush.msra.mxu1 %v3197_v21  ;;  %3343 = vmatpush.msra.mxu3 %v8195_v36  ;;  %v8346_v21 = vand.u32 4294901760, %v3076_v16  ;;  %v10397_v53 = vand.u32 4294901760, %v8336_v23  ;;  %v8367_v59 = vsub.f32 %v3138_v42, %v8343_v15  ;;  %v10401_v25 = vand.u32 4294901760, %v8350_v3 }
 0x1b6   :  { %3155 = vmatpush.msra.mxu0 %v8245_v62  ;;  %3299 = vmatpush.msra.mxu2 %v8249_v63  ;;  %v3250_v11 = vsub.f32 %v8324_v29, %v10394_v44  ;;  %v10404_v44 = vand.u32 4294901760, %v8360_v49  ;;  %v8389_v28 = vsub.f32 %v3136_v55, %v8362_v22 }
 0x1b7   :  { %3204 = vmatpush.msra.mxu1 %v3203_v46  ;;  %3345 = vmatpush.msra.mxu3 %v8206_v10  ;;  %v1922_v46 = vadd.f32 %v1921_v37, %v1885_v54  ;;  %10691 = vst [vmem:[#allocation20_spill] sm:$0xff] %v8367_v59  ;;  %v8375_v37 = vsub.f32 %v3076_v16, %v8346_v21  ;;  %v3130_v54 = vld [vmem:[#allocation2 + $0x3b0] sm:$0xff] }
 0x1b8   :  { %3157 = vmatpush.msra.mxu0 %v8254_v14  ;;  %3302 = vmatpush.msra.mxu2 %v8263_v48  ;;  %v3256_v16 = vsub.f32 %v8336_v23, %v10397_v53  ;;  %v3262_v53 = vsub.f32 %v8350_v3, %v10401_v25 }
 0x1b9   :  { %3210 = vmatpush.msra.mxu1 %v3209_v41  ;;  %3347 = vmatpush.msra.mxu3 %v8217_v9  ;;  %v3244_v41 = vsub.f32 %v8312_v51, %v10393_v12  ;;  %v1963_v12 = vadd.f32 %v1962_v27, %v1922_v46  ;;  %v3128_v46 = vld [vmem:[#allocation2 + $0x3a0] sm:$0xff]  ;;  %v10407_v27 = vand.u32 4294901760, %v8367_v59  ;;  %v10410_v55 = vand.u32 4294901760, %v8375_v37 }
 0x1ba   :  { %3159 = vmatpush.msra.mxu0 %v8267_v57  ;;  %3305 = vmatpush.msra.mxu2 %v8276_v47  ;;  %v8409_v43 = vand.u32 4294901760, %v3128_v46  ;;  %v3257_v25 = vand.u32 4294901760, %v3256_v16  ;;  %v3124_v16 = vld [vmem:[#allocation2 + $0x380] sm:$0xff] }
 0x1bb   :  { %3216 = vmatpush.msra.mxu1 %v3215_v13  ;;  %3349 = vmatpush.msra.mxu3 %v8232_v20  ;;  %v3132_v13 = vld [vmem:[#allocation2 + $0x3c0] sm:$0xff]  ;;  %v2064_v7 = vadd.f32 %v2063_v30, %v1963_v12  ;;  %v3274_v0 = vsub.f32 %v8375_v37, %v10410_v55  ;;  %v10692_v12 = vand.u32 4294901760, %v8389_v28  ;;  %v8442_v19 = vand.u32 4294901760, %v3124_v16 }
 0x1bc   :  { %3161 = vmatpush.msra.mxu0 %v8287_v2  ;;  %3308 = vmatpush.msra.mxu2 %v8281_v38  ;;  %v8381_v42 = vand.u32 4294901760, %v3132_v13  ;;  %v2987_v30 = vld [vmem:[#allocation7] sm:$0xff] }
 0x1bd   :  { %3222 = vmatpush.msra.mxu1 %v3221_v5  ;;  %3351 = vmatpush.msra.mxu3 %v8245_v62  ;;  %v8377_v5 = vand.u32 4294901760, %v3134_v33  ;;  %v2117_v1 = vpop.f32.mrf.mxu0 }
 0x1be   :  { %3163 = vmatpush.msra.mxu0 %v8299_v35  ;;  %3311 = vmatpush.msra.mxu2 %v8293_v60 }
 0x1bf   :  { %3228 = vmatpush.msra.mxu1 %v3227_v17  ;;  %3353 = vmatpush.msra.mxu3 %v8254_v14  ;;  %v3245_v17 = vand.u32 4294901760, %v3244_v41  ;;  %v3251_v41 = vand.u32 4294901760, %v3250_v11  ;;  %v8402_v58 = vsub.f32 %v3134_v33, %v8377_v5  ;;  %v3126_v11 = vld [vmem:[#allocation2 + $0x390] sm:$0xff]  ;;  %v3268_v33 = vsub.f32 %v8360_v49, %v10404_v44 }
 0x1c0   :  { %3165 = vmatpush.msra.mxu0 %v8309_v31  ;;  %3314 = vmatpush.msra.mxu2 %v8312_v51  ;;  %v3263_v44 = vand.u32 4294901760, %v3262_v53  ;;  %v8436_v53 = vsub.f32 %v3128_v46, %v8409_v43 }
 0x1c1   :  { %3234 = vmatpush.msra.mxu1 %v3233_v8  ;;  %3355 = vmatpush.msra.mxu3 %v8267_v57  ;;  %v8394_v8 = vand.u32 4294901760, %v3130_v54  ;;  %v3269_v55 = vand.u32 4294901760, %v3268_v33  ;;  %v3275_v33 = vand.u32 4294901760, %v3274_v0 }
 0x1c2   :  { %3167 = vmatpush.msra.mxu0 %v8321_v50  ;;  %3317 = vmatpush.msra.mxu2 %v8324_v29  ;;  %v10418_v0 = vand.u32 4294901760, %v8436_v53 }
 0x1c3   :  { %3240 = vmatpush.msra.mxu1 %v3239_v52  ;;  %3357 = vmatpush.msra.mxu3 %v8287_v2  ;;  %v8407_v52 = vsub.f32 %v3132_v13, %v8381_v42  ;;  %v2118_v13 = vadd.f32 %v2117_v1, %v2064_v7  ;;  %v8422_v45 = vsub.f32 %v3130_v54, %v8394_v8  ;;  %v8429_v1 = vand.u32 4294901760, %v3126_v11 }
 0x1c4   :  { %3169 = vmatpush.msra.mxu0 %v8332_v18  ;;  %3320 = vmatpush.msra.mxu2 %v8336_v23 }
 0x1c5   :  { %3246 = vmatpush.msra.mxu1 %v3245_v17  ;;  %3359 = vmatpush.msra.mxu3 %v8299_v35  ;;  %v3525_v17 = vsub.f32 %v8367_v59, %v10407_v27  ;;  %v3122_v27 = vld [vmem:[#allocation2 + $0x370] sm:$0xff]  ;;  %v2994_v59 = vmax.f32 %v2987_v30, %v2990_v34 }
 0x1c6   :  { %3171 = vmatpush.msra.mxu0 %v8346_v21  ;;  %3323 = vmatpush.msra.mxu2 %v8350_v3 }
 0x1c7   :  { %3252 = vmatpush.msra.mxu1 %v3251_v41  ;;  %3361 = vmatpush.msra.mxu3 %v8309_v31  ;;  %v2156_v26 = vpop.f32.mrf.mxu1  ;;  %v2225_v7 = vpop.f32.mrf.mxu2  ;;  %v3531_v31 = vsub.f32 %v8389_v28, %v10692_v12  ;;  %v3526_v46 = vand.u32 4294901760, %v3525_v17  ;;  %v10694_v12 = vand.u32 4294901760, %v8402_v58  ;;  %v10695_v17 = vand.u32 4294901760, %v8210_v61 }
 0x1c8   :  { %3378 = vmatpush.msrb.mxu0 %v3183_v24  ;;  %3326 = vmatpush.msra.mxu2 %v8360_v49  ;;  %v2157_v54 = vadd.f32 %v2156_v26, %v2118_v13  ;;  %v2997_v24 = vld [vmem:[#allocation7 + $0x20] sm:$0xff]  ;;  %v10693_v26 = vand.u32 4294901760, %v8198_v6  ;;  %v8455_v6 = vand.u32 4294901760, %v3122_v27 }
 0x1c9   :  { %3258 = vmatpush.msra.mxu1 %v3257_v25  ;;  %3363 = vmatpush.msra.mxu3 %v8321_v50  ;;  %v3120_v25 = vld [vmem:[#allocation2 + $0x360] sm:$0xff]  ;;  %v3537_v30 = vsub.f32 %v8402_v58, %v10694_v12  ;;  %v8453_v50 = vsub.f32 %v3126_v11, %v8429_v1  ;;  %v3001_v34 = vmax.f32 %v2994_v59, %v2997_v24  ;;  %v3532_v11 = vand.u32 4294901760, %v3531_v31 }
 0x1ca   :  { %3382 = vmatpush.msrb.mxu0 %v10693_v26  ;;  %3329 = vmatpush.msra.mxu2 %v8375_v37  ;;  %v2226_v13 = vadd.f32 %v2225_v7, %v2157_v54  ;;  %v2262_v41 = vpop.f32.mrf.mxu3  ;;  %v10696_v7 = vand.u32 4294901760, %v8407_v52  ;;  %v3118_v26 = vld [vmem:[#allocation2 + $0x350] sm:$0xff]  ;;  %v8466_v12 = vsub.f32 %v3124_v16, %v8442_v19  ;;  %v8468_v61 = vand.u32 4294901760, %v3120_v25 }
 0x1cb   :  { %3264 = vmatpush.msra.mxu1 %v3263_v44  ;;  %3365 = vmatpush.msra.mxu3 %v8332_v18  ;;  %v3538_v31 = vand.u32 4294901760, %v3537_v30  ;;  %v10415_v16 = vand.u32 4294901760, %v8453_v50  ;;  %v8478_v24 = vsub.f32 %v3122_v27, %v8455_v6 }
 0x1cc   :  { %3386 = vmatpush.msrb.mxu0 %v10695_v17  ;;  %3482 = vmatpush.msrb.mxu2 %v8343_v15  ;;  %v3543_v44 = vsub.f32 %v8407_v52, %v10696_v7  ;;  %v2263_v54 = vadd.f32 %v2262_v41, %v2226_v13  ;;  %v3004_v17 = vld [vmem:[#allocation7 + $0x30] sm:$0xff]  ;;  %v10697_v15 = vand.u32 4294901760, %v8221_v56  ;;  %v10698_v13 = vand.u32 4294901760, %v8422_v45 }
 0x1cd   :  { %3270 = vmatpush.msra.mxu1 %v3269_v55  ;;  %3367 = vmatpush.msra.mxu3 %v8346_v21  ;;  %v3116_v55 = vld [vmem:[#allocation2 + $0x340] sm:$0xff]  ;;  %v8480_v7 = vand.u32 4294901760, %v3118_v26  ;;  %v10699_v56 = vand.u32 4294901760, %v8236_v40  ;;  %v10416_v27 = vand.u32 4294901760, %v8466_v12  ;;  %v8491_v30 = vsub.f32 %v3120_v25, %v8468_v61 }
 0x1ce   :  { %3390 = vmatpush.msrb.mxu0 %v10697_v15  ;;  %3484 = vmatpush.msrb.mxu2 %v8362_v22  ;;  %v5942_v41 = vmul.f32 -1.442695, %v2263_v54  ;;  %v3549_v59 = vsub.f32 %v8422_v45, %v10698_v13  ;;  %v3544_v15 = vand.u32 4294901760, %v3543_v44  ;;  %v3555_v54 = vsub.f32 %v8436_v53, %v10418_v0  ;;  %v2988_v13 = vld [vmem:[#allocation7 + $0x8] sm:$0xff] }
 0x1cf   :  { %3527 = vmatpush.msrb.mxu3 %v3526_v46  ;;  %3276 = vmatpush.msra.mxu1 %v3275_v33  ;;  %v3114_v46 = vld [vmem:[#allocation2 + $0x330] sm:$0xff]  ;;  %v3008_v33 = vmax.f32 %v3001_v34, %v3004_v17  ;;  %v8493_v40 = vand.u32 4294901760, %v3116_v55  ;;  %v10700_v44 = vand.u32 4294901760, %v8249_v63  ;;  %v3561_v34 = vsub.f32 %v8453_v50, %v10415_v16 }
 0x1d0   :  { %3394 = vmatpush.msrb.mxu0 %v10699_v56  ;;  %3486 = vmatpush.msrb.mxu2 %v8377_v5  ;;  %5953 = vpow2.f32 %v5942_v41  ;;  %v3550_v56 = vand.u32 4294901760, %v3549_v59  ;;  %v10417_v25 = vand.u32 4294901760, %v8478_v24  ;;  %v8506_v17 = vand.u32 4294901760, %v3114_v46  ;;  %v3112_v41 = vld [vmem:[#allocation2 + $0x320] sm:$0xff] }
 0x1d1   :  { %3445 = vmatpush.msrb.mxu1 %v8169_v39  ;;  %3533 = vmatpush.msrb.mxu3 %v3532_v11  ;;  %v2991_v39 = vld [vmem:[#allocation7 + $0x18] sm:$0xff]  ;;  %v8504_v11 = vsub.f32 %v3118_v26, %v8480_v7  ;;  %v10701_v63 = vand.u32 4294901760, %v8263_v48  ;;  %v3567_v26 = vsub.f32 %v8466_v12, %v10416_v27  ;;  %v8519_v16 = vsub.f32 %v3116_v55, %v8493_v40  ;;  %v3110_v48 = vld [vmem:[#allocation2 + $0x310] sm:$0xff] }
 0x1d2   :  { %3398 = vmatpush.msrb.mxu0 %v10700_v44  ;;  %3488 = vmatpush.msrb.mxu2 %v8381_v42  ;;  %v2995_v59 = vmax.f32 %v2988_v13, %v2991_v39  ;;  %v3578_v44 = vand.u32 4294901760, %v8491_v30  ;;  %v8524_v13 = vand.u32 4294901760, %v3112_v41  ;;  %v3573_v39 = vsub.f32 %v8478_v24, %v10417_v25 }
 0x1d3   :  { %3447 = vmatpush.msrb.mxu1 %v8176_v32  ;;  %3539 = vmatpush.msrb.mxu3 %v3538_v31  ;;  %v8511_v32 = vand.u32 4294901760, %v3008_v33  ;;  %v3556_v31 = vand.u32 4294901760, %v3555_v54  ;;  %v3562_v54 = vand.u32 4294901760, %v3561_v34  ;;  %v3584_v55 = vand.u32 4294901760, %v8504_v11 }
 0x1d4   :  { %3402 = vmatpush.msrb.mxu0 %v10701_v63  ;;  %3490 = vmatpush.msrb.mxu2 %v8394_v8  ;;  %v2998_v63 = vld [vmem:[#allocation7 + $0x28] sm:$0xff]  ;;  %v8532_v27 = vsub.f32 %v3114_v46, %v8506_v17  ;;  %v3568_v25 = vand.u32 4294901760, %v3567_v26  ;;  %v3579_v46 = vsub.f32 %v8491_v30, %v3578_v44 }
 0x1d5   :  { %3449 = vmatpush.msrb.mxu1 %v8184_v4  ;;  %10702 = vst [vmem:[#allocation33_spill] sm:$0xff] %v8511_v32  ;;  %3545 = vmatpush.msrb.mxu3 %v3544_v15  ;;  %v10703_v4 = vand.u32 4294901760, %v8276_v47  ;;  %v10704_v47 = vand.u32 4294901760, %v8281_v38  ;;  %v3002_v34 = vmax.f32 %v2995_v59, %v2998_v63  ;;  %v3590_v38 = vand.u32 4294901760, %v8519_v16 }
 0x1d6   :  { %v5954_v15 = vpop.eup %5953  ;;  %3492 = vmatpush.msrb.mxu2 %v8409_v43  ;;  %v3574_v59 = vand.u32 4294901760, %v3573_v39  ;;  %v3596_v26 = vand.u32 4294901760, %v8532_v27  ;;  %3278 = vmatmul.f32.vlgmr.msra.gmra.mxu1 %v8511_v32 }
 0x1d7   :  { %3406 = vmatpush.msrb.mxu0 %v10703_v4  ;;  %3451 = vmatpush.msrb.mxu1 %v8195_v36  ;;  %v8538_v36 = vsub.f32 %v3008_v33, %v8511_v32  ;;  %v8540_v4 = vand.u32 4294901760, %v3110_v48  ;;  %v8547_v0 = vadd.f32 1.0, %v5954_v15  ;;  %v8553_v33 = vsub.f32 %v3112_v41, %v8524_v13 }
 0x1d8   :  { %3551 = vmatpush.msrb.mxu3 %v3550_v56  ;;  %v3108_v56 = vld [vmem:[#allocation2 + $0x300] sm:$0xff]  ;;  %3494 = vmatpush.msrb.mxu2 %v8429_v1  ;;  %v3591_v39 = vsub.f32 %v8519_v16, %v3590_v38 }
 0x1d9   :  { %3410 = vmatpush.msrb.mxu0 %v10704_v47  ;;  %3453 = vmatpush.msrb.mxu1 %v8206_v10  ;;  %10705 = vst [vmem:[#allocation25_spill] sm:$0xff] %v8538_v36  ;;  %v3005_v47 = vld [vmem:[#allocation7 + $0x38] sm:$0xff]  ;;  %v10706_v10 = vand.u32 4294901760, %v8293_v60  ;;  %v8560_v63 = vand.u32 4294901760, %v3108_v56  ;;  %v10707_v60 = vand.u32 4294901760, %v8312_v51  ;;  %v8569_v41 = vsub.f32 %v3110_v48, %v8540_v4 }
 0x1da   :  { %3557 = vmatpush.msrb.mxu3 %v3556_v31  ;;  %3496 = vmatpush.msrb.mxu2 %v8442_v19  ;;  %v3585_v31 = vsub.f32 %v8504_v11, %v3584_v55  ;;  %v3009_v15 = vmax.f32 %v3002_v34, %v3005_v47  ;;  %5955 = vrcp.f32 %v8547_v0  ;;  %v10709_v51 = vand.u32 4294901760, %v8324_v29 }
 0x1db   :  { %3414 = vmatpush.msrb.mxu0 %v10706_v10  ;;  %3455 = vmatpush.msrb.mxu1 %v8217_v9  ;;  %v8566_v9 = vand.u32 4294901760, %v8538_v36  ;;  %v8585_v34 = vsub.f32 %v3108_v56, %v8560_v63  ;;  %v3608_v29 = vand.u32 4294901760, %v8569_v41  ;;  %v3592_v10 = vand.u32 4294901760, %v3591_v39 }
 0x1dc   :  { %3563 = vmatpush.msrb.mxu3 %v3562_v54  ;;  %3498 = vmatpush.msrb.mxu2 %v8455_v6  ;;  %v3580_v54 = vand.u32 4294901760, %v3579_v46  ;;  %v3586_v48 = vand.u32 4294901760, %v3585_v31  ;;  %v10710_v46 = vand.u32 4294901760, %v8336_v23  ;;  %v8593_v47 = vand.u32 4294901760, %v3009_v15 }
 0x1dd   :  { %3418 = vmatpush.msrb.mxu0 %v10707_v60  ;;  %3457 = vmatpush.msrb.mxu1 %v8232_v20  ;;  %10708 = vst [vmem:[#allocation26_spill] sm:$0xff] %v8566_v9  ;;  %v3602_v20 = vand.u32 4294901760, %v8553_v33  ;;  %v3614_v56 = vand.u32 4294901760, %v8585_v34  ;;  %v10713_v60 = vand.u32 4294901760, %v8360_v49  ;;  %v10715_v39 = vand.u32 4294901760, %v8375_v37 }
 0x1de   :  { %3569 = vmatpush.msrb.mxu3 %v3568_v25  ;;  %3500 = vmatpush.msrb.mxu2 %v8468_v61  ;;  %v3597_v25 = vsub.f32 %v8532_v27, %v3596_v26  ;;  %10711 = vst [vmem:[#allocation27_spill] sm:$0xff] %v8593_v47  ;;  %vm2960_vm1 = vweird.f32 %v8547_v0 }
 0x1df   :  { %3422 = vmatpush.msrb.mxu0 %v10709_v51  ;;  %3459 = vmatpush.msrb.mxu1 %v8245_v62  ;;  %v3175_v62 = vsub.f32 %v8538_v36, %v8566_v9  ;;  %v3615_v51 = vsub.f32 %v8585_v34, %v3614_v56 }
 0x1e0   :  { %3575 = vmatpush.msrb.mxu3 %v3574_v59  ;;  %3502 = vmatpush.msrb.mxu2 %v8480_v7  ;;  %v10712_v59 = vand.u32 4294901760, %v8350_v3  ;;  %v3598_v23 = vand.u32 4294901760, %v3597_v25  ;;  %v5956_v31 = vpop.eup %5955  ;;  %v10718_v25 = vld [vmem:[#allocation20_spill] sm:$0xff] }
 0x1e1   :  { %3426 = vmatpush.msrb.mxu0 %v10710_v46  ;;  %3461 = vmatpush.msrb.mxu1 %v8254_v14  ;;  %v3603_v14 = vsub.f32 %v8553_v33, %v3602_v20  ;;  %v8607_v3 = vand.u32 4294901760, %v3175_v62  ;;  %v10719_v46 = vld [vmem:[#allocation21_spill] sm:$0xff]  ;;  %v3616_v62 = vand.u32 4294901760, %v3615_v51  ;;  %vm2961_vm0 = vweird.f32 %v5956_v31 }
 0x1e2   :  { %3581 = vmatpush.msrb.mxu3 %v3580_v54  ;;  %3504 = vmatpush.msrb.mxu2 %v8493_v40  ;;  %v8613_v54 = vsub.f32 %v3009_v15, %v8593_v47  ;;  %v10716_v15 = vld [vmem:[#allocation16_spill] sm:$0xff]  ;;  %vm2962_vm2 = vmor %vm2960_vm1, %vm2961_vm0  ;;  %v10724_v51 = vand.u32 4294901760, %v8402_v58 }
 0x1e3   :  { %3430 = vmatpush.msrb.mxu0 %v10712_v59  ;;  %3463 = vmatpush.msrb.mxu1 %v8267_v57  ;;  %v3609_v57 = vsub.f32 %v8569_v41, %v3608_v29  ;;  %v3604_v49 = vand.u32 4294901760, %v3603_v14  ;;  %v10720_v59 = vand.u32 4294901760, %v10718_v25  ;;  %v2966_v14 = vand.u32 2147483648, %v8547_v0 }
 0x1e4   :  { %3587 = vmatpush.msrb.mxu3 %v3586_v48  ;;  %10714 = vst [vmem:[#allocation22_spill] sm:$0xff] %v8613_v54  ;;  %3506 = vmatpush.msrb.mxu2 %v8506_v17  ;;  %v8627_v37 = vand.u32 4294901760, %v8613_v54 }
 0x1e5   :  { %3434 = vmatpush.msrb.mxu0 %v10713_v60  ;;  %3465 = vmatpush.msrb.mxu1 %v8287_v2  ;;  %v2956_v2 = vmul.f32 %v5956_v31, %v8547_v0  ;;  %v3610_v48 = vand.u32 4294901760, %v3609_v57  ;;  %v2964_v60 = vand.u32 2147483647, %v8547_v0  ;;  %v10721_v57 = vand.u32 4294901760, %v8389_v28 }
 0x1e6   :  { %3593 = vmatpush.msrb.mxu3 %v3592_v10  ;;  %3508 = vmatpush.msrb.mxu2 %v8524_v13  ;;  %10717 = vst [vmem:[#allocation28_spill] sm:$0xff] %v8627_v37  ;;  %v3516_v10 = vsub.f32 %v8613_v54, %v8627_v37  ;;  %v10725_v0 = vand.u32 4294901760, %v8407_v52 }
 0x1e7   :  { %3438 = vmatpush.msrb.mxu0 %v10715_v39  ;;  %3467 = vmatpush.msrb.mxu1 %v8299_v35  ;;  %v2957_v35 = vsub.f32 1.0, %v2956_v2  ;;  %v2967_v2 = vor.u32 1.1754944e-38, %v2966_v14  ;;  %vm2965_vm3 = vcmp.eq.f32.partialorder %v2964_v60, 8.507059e+37 }
 0x1e8   :  { %3599 = vmatpush.msrb.mxu3 %v3598_v23  ;;  %3177 = vmatmul.f32.vlgmr.msra.gmra.mxu0 %v8607_v3  ;;  %v8648_v39 = vand.u32 4294901760, %v3516_v10 }
 0x1e9   :  { %3469 = vmatpush.msrb.mxu1 %v10716_v15  ;;  %3625 = vmatpush.msra.mxu0 %v10718_v25  ;;  %v2958_v23 = vmul.f32 %v5956_v31, %v2957_v35  ;;  %v2404_v25 = vpop.f32.mrf.mxu1 }
 0x1ea   :  { %3510 = vmatpush.msrb.mxu2 %v8540_v4  ;;  %3605 = vmatpush.msrb.mxu3 %v3604_v49  ;;  %10722 = vst [vmem:[#allocation24_spill] sm:$0xff] %v8648_v39  ;;  %v10723_v49 = vld [vmem:[#allocation19_spill] sm:$0xff] }
 0x1eb   :  { %3332 = vmatmul.f32.vlgmr.msra.gmra.mxu2 %v8538_v36  ;;  %3628 = vmatpush.msra.mxu0 %v8389_v28 }
 0x1ec   :  { %3471 = vmatpush.msrb.mxu1 %v10719_v46  ;;  %3512 = vmatpush.msrb.mxu2 %v8560_v63 }
 0x1ed   :  { %3611 = vmatpush.msrb.mxu3 %v3610_v48  ;;  %3631 = vmatpush.msra.mxu0 %v8402_v58  ;;  %v10726_v58 = vand.u32 4294901760, %v8422_v45  ;;  %v3089_v48 = vld [vmem:[#allocation2 + $0x268] sm:$0xff] }
 0x1ee   :  { %3371 = vmatmul.f32.vlgmr.msra.gmra.mxu3 %v8566_v9  ;;  %3719 = vmatpush.msra.mxu2 %v10720_v59 }
 0x1ef   :  { %3473 = vmatpush.msrb.mxu1 %v8332_v18  ;;  %3617 = vmatpush.msrb.mxu3 %v3616_v62  ;;  %v2959_v18 = vadd.f32 %v5956_v31, %v2958_v23  ;;  %v3087_v23 = vld [vmem:[#allocation2 + $0x258] sm:$0xff] }
 0x1f0   :  { %3634 = vmatpush.msra.mxu0 %v8407_v52  ;;  %3723 = vmatpush.msra.mxu2 %v10721_v57  ;;  %v8796_v57 = vand.u32 4294901760, %v3089_v48 }
 0x1f1   :  { %3786 = vmatpush.msra.mxu3 %v10723_v49  ;;  %3475 = vmatpush.msrb.mxu1 %v8346_v21  ;;  %v2963_v28 = vsel %vm2962_vm2, %v5956_v31, %v2959_v18 }
 0x1f2   :  { %3637 = vmatpush.msra.mxu0 %v8422_v45  ;;  %3727 = vmatpush.msra.mxu2 %v10724_v51  ;;  %v2968_v21 = vsel %vm2965_vm3, %v2967_v2, %v2963_v28  ;;  %v10728_v45 = vand.u32 4294901760, %v8453_v50  ;;  %v3085_v2 = vld [vmem:[#allocation2 + $0x248] sm:$0xff]  ;;  %v2458_v28 = vpop.f32.mrf.mxu2 }
 0x1f3   :  { %3678 = vmatpush.msra.mxu1 %v10723_v49  ;;  %3788 = vmatpush.msra.mxu3 %v8362_v22  ;;  %2985 = vst [vmem:[#allocation8] sm:$0xff] %v2968_v21 }
 0x1f4   :  { %3518 = vmatmul.f32.vlgmr.msrb.gmra.mxu2 %v8648_v39  ;;  %3640 = vmatpush.msra.mxu0 %v8436_v53 }
 0x1f5   :  { %3680 = vmatpush.msra.mxu1 %v8362_v22  ;;  %3731 = vmatpush.msra.mxu2 %v10725_v0  ;;  %v10727_v22 = vand.u32 4294901760, %v8436_v53  ;;  %v3101_v53 = vld [vmem:[#allocation2 + $0x2c8] sm:$0xff] }
 0x1f6   :  { %3790 = vmatpush.msra.mxu3 %v8377_v5  ;;  %3440 = vmatmul.f32.vlgmr.msrb.gmra.mxu0 %v8511_v32 }
 0x1f7   :  { %3619 = vmatmul.f32.vlgmr.msrb.gmra.mxu3 %v8593_v47  ;;  %3643 = vmatpush.msra.mxu0 %v8453_v50  ;;  %v3105_v50 = vld [vmem:[#allocation2 + $0x2e8] sm:$0xff] }
 0x1f8   :  { %3682 = vmatpush.msra.mxu1 %v8377_v5  ;;  %3735 = vmatpush.msra.mxu2 %v10726_v58  ;;  %v10729_v5 = vand.u32 4294901760, %v8466_v12  ;;  %v8701_v52 = vand.u32 4294901760, %v3105_v50  ;;  %v8811_v58 = vand.u32 4294901760, %v3087_v23 }
 0x1f9   :  { %3792 = vmatpush.msra.mxu3 %v8381_v42  ;;  %3477 = vmatmul.f32.vlgmr.msrb.gmra.mxu1 %v8511_v32 }
 0x1fa   :  { %3646 = vmatpush.msra.mxu0 %v8466_v12  ;;  %3684 = vmatpush.msra.mxu1 %v8381_v42  ;;  %v3107_v42 = vld [vmem:[#allocation2 + $0x2f8] sm:$0xff]  ;;  %v8719_v12 = vsub.f32 %v3105_v50, %v8701_v52 }
 0x1fb   :  { %3739 = vmatpush.msra.mxu2 %v10727_v22  ;;  %3794 = vmatpush.msra.mxu3 %v8394_v8 }
 0x1fc   :  { %3649 = vmatpush.msra.mxu0 %v8478_v24  ;;  %3686 = vmatpush.msra.mxu1 %v8394_v8  ;;  %v10730_v8 = vand.u32 4294901760, %v8478_v24  ;;  %v3099_v24 = vld [vmem:[#allocation2 + $0x2b8] sm:$0xff] }
 0x1fd   :  { %3743 = vmatpush.msra.mxu2 %v10728_v45  ;;  %3796 = vmatpush.msra.mxu3 %v8409_v43  ;;  %v8816_v45 = vand.u32 4294901760, %v3085_v2 }
 0x1fe   :  { %3652 = vmatpush.msra.mxu0 %v8491_v30  ;;  %3688 = vmatpush.msra.mxu1 %v8409_v43  ;;  %v8697_v43 = vand.u32 4294901760, %v3107_v42 }
 0x1ff   :  { %3747 = vmatpush.msra.mxu2 %v10729_v5  ;;  %3798 = vmatpush.msra.mxu3 %v8429_v1  ;;  %v3083_v5 = vld [vmem:[#allocation2 + $0x238] sm:$0xff] }
 0x200   :  { %3655 = vmatpush.msra.mxu0 %v8504_v11  ;;  %3690 = vmatpush.msra.mxu1 %v8429_v1  ;;  %v3103_v1 = vld [vmem:[#allocation2 + $0x2d8] sm:$0xff]  ;;  %v10429_v11 = vand.u32 4294901760, %v8719_v12 }
 0x201   :  { %3751 = vmatpush.msra.mxu2 %v10730_v8  ;;  %3800 = vmatpush.msra.mxu3 %v8442_v19 }
 0x202   :  { %3658 = vmatpush.msra.mxu0 %v8519_v16  ;;  %3692 = vmatpush.msra.mxu1 %v8442_v19  ;;  %v8711_v19 = vand.u32 4294901760, %v3103_v1  ;;  %v3097_v16 = vld [vmem:[#allocation2 + $0x2a8] sm:$0xff] }
 0x203   :  { %3755 = vmatpush.msra.mxu2 %v3578_v44  ;;  %3802 = vmatpush.msra.mxu3 %v8455_v6  ;;  %v8743_v44 = vand.u32 4294901760, %v3097_v16 }
 0x204   :  { %3661 = vmatpush.msra.mxu0 %v8532_v27  ;;  %3694 = vmatpush.msra.mxu1 %v8455_v6  ;;  %v8714_v6 = vsub.f32 %v3107_v42, %v8697_v43  ;;  %v8735_v27 = vsub.f32 %v3103_v1, %v8711_v19  ;;  %v8824_v1 = vsub.f32 %v3089_v48, %v8796_v57  ;;  %v3079_v48 = vld [vmem:[#allocation2 + $0x218] sm:$0xff] }
 0x205   :  { %3759 = vmatpush.msra.mxu2 %v3584_v55  ;;  %3804 = vmatpush.msra.mxu3 %v8468_v61  ;;  %v8773_v31 = vsub.f32 %v3097_v16, %v8743_v44  ;;  %v3081_v16 = vld [vmem:[#allocation2 + $0x228] sm:$0xff] }
 0x206   :  { %3664 = vmatpush.msra.mxu0 %v8553_v33  ;;  %3696 = vmatpush.msra.mxu1 %v8468_v61  ;;  %v8724_v61 = vand.u32 4294901760, %v3101_v53  ;;  %v10431_v30 = vand.u32 4294901760, %v8714_v6 }
 0x207   :  { %3763 = vmatpush.msra.mxu2 %v3590_v38  ;;  %3806 = vmatpush.msra.mxu3 %v8480_v7  ;;  %v3093_v38 = vld [vmem:[#allocation2 + $0x288] sm:$0xff]  ;;  %v10424_v49 = vand.u32 4294901760, %v8773_v31 }
 0x208   :  { %3667 = vmatpush.msra.mxu0 %v8569_v41  ;;  %3698 = vmatpush.msra.mxu1 %v8480_v7  ;;  %v8731_v7 = vand.u32 4294901760, %v3099_v24  ;;  %v8746_v55 = vsub.f32 %v3101_v53, %v8724_v61 }
 0x209   :  { %3767 = vmatpush.msra.mxu2 %v3596_v26  ;;  %3808 = vmatpush.msra.mxu3 %v8493_v40  ;;  %v10428_v26 = vand.u32 4294901760, %v8735_v27  ;;  %v3896_v8 = vsub.f32 %v8773_v31, %v10424_v49 }
 0x20a   :  { %3670 = vmatpush.msra.mxu0 %v8585_v34  ;;  %3700 = vmatpush.msra.mxu1 %v8493_v40  ;;  %v3095_v40 = vld [vmem:[#allocation2 + $0x298] sm:$0xff]  ;;  %v8760_v41 = vsub.f32 %v3099_v24, %v8731_v7  ;;  %v2303_v34 = vpop.f32.mrf.mxu0 }
 0x20b   :  { %3771 = vmatpush.msra.mxu2 %v3602_v20  ;;  %3810 = vmatpush.msra.mxu3 %v8506_v17  ;;  %v8756_v33 = vand.u32 4294901760, %v3095_v40  ;;  %v3091_v20 = vld [vmem:[#allocation2 + $0x278] sm:$0xff]  ;;  %v3878_v46 = vsub.f32 %v8735_v27, %v10428_v26 }
 0x20c   :  { %3673 = vmatmul.f32.vlgmr.msra.gmra.mxu0 %v8613_v54  ;;  %3702 = vmatpush.msra.mxu1 %v8506_v17  ;;  %v3866_v17 = vsub.f32 %v8714_v6, %v10431_v30  ;;  %v8777_v15 = vand.u32 4294901760, %v3091_v20  ;;  %v10425_v62 = vand.u32 4294901760, %v8760_v41 }
 0x20d   :  { %3823 = vmatpush.msrb.mxu0 %v8697_v43  ;;  %3775 = vmatpush.msra.mxu2 %v3608_v29  ;;  %v8769_v29 = vand.u32 4294901760, %v3093_v38  ;;  %v8786_v10 = vsub.f32 %v3095_v40, %v8756_v33  ;;  %v3879_v21 = vand.u32 4294901760, %v3878_v46  ;;  %v2497_v40 = vpop.f32.mrf.mxu3 }
 0x20e   :  { %3812 = vmatpush.msra.mxu3 %v8524_v13  ;;  %3704 = vmatpush.msra.mxu1 %v8524_v13  ;;  %v3872_v13 = vsub.f32 %v8719_v12, %v10429_v11  ;;  %v3867_v35 = vand.u32 4294901760, %v3866_v17  ;;  %v3890_v0 = vsub.f32 %v8760_v41, %v10425_v62 }
 0x20f   :  { %3825 = vmatpush.msrb.mxu0 %v8701_v52  ;;  %3779 = vmatpush.msra.mxu2 %v3614_v56  ;;  %v10426_v56 = vand.u32 4294901760, %v8746_v55  ;;  %v8800_v18 = vsub.f32 %v3093_v38, %v8769_v29  ;;  %v10421_v22 = vand.u32 4294901760, %v8786_v10 }
 0x210   :  { %3814 = vmatpush.msra.mxu3 %v8540_v4  ;;  %3781 = vmatmul.f32.vlgmr.msra.gmra.mxu2 %v8593_v47  ;;  %v3873_v14 = vand.u32 4294901760, %v3872_v13  ;;  %v3891_v38 = vand.u32 4294901760, %v3890_v0  ;;  %v8836_v13 = vsub.f32 %v3087_v23, %v8811_v58 }
 0x211   :  { %3827 = vmatpush.msrb.mxu0 %v8711_v19  ;;  %3966 = vmatpush.msrb.mxu2 %v8714_v6  ;;  %v3884_v60 = vsub.f32 %v8746_v55, %v10426_v56  ;;  %v10420_v50 = vand.u32 4294901760, %v8800_v18  ;;  %v3902_v17 = vsub.f32 %v8786_v10, %v10421_v22  ;;  %v3135_v22 = vld [vmem:[#allocation2 + $0x3d8] sm:$0xff] }
 0x212   :  { %3706 = vmatpush.msra.mxu1 %v8540_v4  ;;  %3816 = vmatpush.msra.mxu3 %v8560_v63  ;;  %v10731_v4 = vld [vmem:[#allocation18_spill] sm:$0xff]  ;;  %v10423_v0 = vand.u32 4294901760, %v8836_v13  ;;  %v8901_v62 = vand.u32 4294901760, %v3135_v22 }
 0x213   :  { %3818 = vmatmul.f32.vlgmr.msra.gmra.mxu3 %v8593_v47  ;;  %3829 = vmatpush.msrb.mxu0 %v8724_v61  ;;  %v2304_v59 = vadd.f32 %v2303_v34, %v10731_v4  ;;  %v3885_v42 = vand.u32 4294901760, %v3884_v60  ;;  %v8841_v34 = vsub.f32 %v3085_v2, %v8816_v45  ;;  %v3908_v46 = vsub.f32 %v8800_v18, %v10420_v50  ;;  %v3077_v2 = vld [vmem:[#allocation2 + $0x208] sm:$0xff] }
 0x214   :  { %3969 = vmatpush.msrb.mxu2 %v8719_v12  ;;  %4019 = vmatpush.msrb.mxu3 %v8697_v43  ;;  %v8847_v4 = vand.u32 4294901760, %v3081_v16 }
 0x215   :  { %3708 = vmatpush.msra.mxu1 %v8560_v63  ;;  %3831 = vmatpush.msrb.mxu0 %v8731_v7  ;;  %v2405_v51 = vadd.f32 %v2404_v25, %v2304_v59  ;;  %v8805_v63 = vsub.f32 %v3091_v20, %v8777_v15  ;;  %v8833_v20 = vand.u32 4294901760, %v3083_v5  ;;  %v2566_v25 = vpop.f32.mrf.mxu0  ;;  %v10422_v59 = vand.u32 4294901760, %v8824_v1  ;;  %v2745_v26 = vpop.f32.mrf.mxu3 }
 0x216   :  { %3712 = vmatmul.f32.vlgmr.msra.gmra.mxu1 %v8627_v37  ;;  %3972 = vmatpush.msrb.mxu2 %v8735_v27  ;;  %v3127_v37 = vld [vmem:[#allocation2 + $0x398] sm:$0xff] }
 0x217   :  { %3868 = vmatpush.msrb.mxu1 %v3867_v35  ;;  %4021 = vmatpush.msrb.mxu3 %v8701_v52  ;;  %v2459_v53 = vadd.f32 %v2458_v28, %v2405_v51  ;;  %v10419_v24 = vand.u32 4294901760, %v8805_v63  ;;  %v3897_v35 = vand.u32 4294901760, %v3896_v8  ;;  %v2603_v51 = vpop.f32.mrf.mxu1  ;;  %v3903_v28 = vand.u32 4294901760, %v3902_v17 }
 0x218   :  { %3833 = vmatpush.msrb.mxu0 %v8743_v44  ;;  %3975 = vmatpush.msrb.mxu2 %v8746_v55  ;;  %v3909_v17 = vand.u32 4294901760, %v3908_v46  ;;  %v3926_v46 = vsub.f32 %v8836_v13, %v10423_v0 }
 0x219   :  { %3874 = vmatpush.msrb.mxu1 %v3873_v14  ;;  %4023 = vmatpush.msrb.mxu3 %v8711_v19  ;;  %v3139_v14 = vld [vmem:[#allocation2 + $0x3f8] sm:$0xff]  ;;  %v2498_v23 = vadd.f32 %v2497_v40, %v2459_v53  ;;  %v3914_v60 = vsub.f32 %v8805_v63, %v10419_v24  ;;  %v10427_v53 = vand.u32 4294901760, %v8841_v34  ;;  %v3920_v24 = vsub.f32 %v8824_v1, %v10422_v59 }
 0x21a   :  { %3835 = vmatpush.msrb.mxu0 %v8756_v33  ;;  %3978 = vmatpush.msrb.mxu2 %v8760_v41  ;;  %v8865_v40 = vand.u32 4294901760, %v3139_v14 }
 0x21b   :  { %3880 = vmatpush.msrb.mxu1 %v3879_v21  ;;  %4025 = vmatpush.msrb.mxu3 %v8724_v61  ;;  %v8856_v21 = vand.u32 4294901760, %v3079_v48  ;;  %v2567_v8 = vadd.f32 %v2566_v25, %v2498_v23  ;;  %v8874_v25 = vsub.f32 %v3081_v16, %v8847_v4  ;;  %v3915_v50 = vand.u32 4294901760, %v3914_v60 }
 0x21c   :  { %3837 = vmatpush.msrb.mxu0 %v8769_v29  ;;  %3981 = vmatpush.msrb.mxu2 %v8773_v31  ;;  %v3932_v60 = vsub.f32 %v8841_v34, %v10427_v53  ;;  %v3921_v0 = vand.u32 4294901760, %v3920_v24  ;;  %v3927_v24 = vand.u32 4294901760, %v3926_v46 }
 0x21d   :  { %3886 = vmatpush.msrb.mxu1 %v3885_v42  ;;  %4027 = vmatpush.msrb.mxu3 %v8731_v7  ;;  %10732 = vst [vmem:[#allocation17_spill] sm:$0xff] %v8856_v21  ;;  %v8860_v42 = vsub.f32 %v3083_v5, %v8833_v20  ;;  %v8871_v5 = vand.u32 4294901760, %v3077_v2  ;;  %v2604_v23 = vadd.f32 %v2603_v51, %v2567_v8  ;;  %v3133_v8 = vld [vmem:[#allocation2 + $0x3c8] sm:$0xff] }
 0x21e   :  { %3839 = vmatpush.msrb.mxu0 %v8777_v15  ;;  %3984 = vmatpush.msrb.mxu2 %v8786_v10  ;;  %v8884_v16 = vsub.f32 %v3079_v48, %v8856_v21  ;;  %v10433_v48 = vand.u32 4294901760, %v8874_v25  ;;  %v8905_v53 = vand.u32 4294901760, %v3133_v8 }
 0x21f   :  { %3892 = vmatpush.msrb.mxu1 %v3891_v38  ;;  %4029 = vmatpush.msrb.mxu3 %v8743_v44  ;;  %v3137_v38 = vld [vmem:[#allocation2 + $0x3e8] sm:$0xff]  ;;  %v10430_v59 = vand.u32 4294901760, %v8860_v42  ;;  %v8899_v49 = vsub.f32 %v3077_v2, %v8871_v5 }
 0x220   :  { %3841 = vmatpush.msrb.mxu0 %v8796_v57  ;;  %3987 = vmatpush.msrb.mxu2 %v8800_v18  ;;  %v8886_v51 = vand.u32 4294901760, %v3137_v38  ;;  %v10734_v30 = vand.u32 4294901760, %v8884_v16 }
 0x221   :  { %3898 = vmatpush.msrb.mxu1 %v3897_v35  ;;  %4031 = vmatpush.msrb.mxu3 %v8756_v33  ;;  %v2644_v35 = vpop.f32.mrf.mxu2  ;;  %v3938_v2 = vsub.f32 %v8860_v42, %v10430_v59  ;;  %v3944_v59 = vsub.f32 %v8874_v25, %v10433_v48  ;;  %v10736_v11 = vand.u32 4294901760, %v8899_v49 }
 0x222   :  { %3843 = vmatpush.msrb.mxu0 %v8811_v58  ;;  %3990 = vmatpush.msrb.mxu2 %v8805_v63  ;;  %v2645_v56 = vadd.f32 %v2644_v35, %v2604_v23  ;;  %v8913_v23 = vsub.f32 %v3137_v38, %v8886_v51  ;;  %v3933_v35 = vand.u32 4294901760, %v3932_v60  ;;  %v8924_v38 = vsub.f32 %v3135_v22, %v8901_v62 }
 0x223   :  { %3904 = vmatpush.msrb.mxu1 %v3903_v28  ;;  %4033 = vmatpush.msrb.mxu3 %v8769_v29  ;;  %v8894_v28 = vsub.f32 %v3139_v14, %v8865_v40  ;;  %v3131_v14 = vld [vmem:[#allocation2 + $0x3b8] sm:$0xff]  ;;  %v2799_v46 = vpop.f32.mrf.mxu0  ;;  %v3939_v48 = vand.u32 4294901760, %v3938_v2  ;;  %v3950_v22 = vsub.f32 %v8884_v16, %v10734_v30  ;;  %v3125_v2 = vld [vmem:[#allocation2 + $0x388] sm:$0xff]  ;;  %v3945_v30 = vand.u32 4294901760, %v3944_v59 }
 0x224   :  { %3845 = vmatpush.msrb.mxu0 %v8816_v45  ;;  %3993 = vmatpush.msrb.mxu2 %v8824_v1  ;;  %v2746_v60 = vadd.f32 %v2745_v26, %v2645_v56  ;;  %v3956_v47 = vsub.f32 %v8899_v49, %v10736_v11  ;;  %v3123_v59 = vld [vmem:[#allocation2 + $0x378] sm:$0xff]  ;;  %v10738_v36 = vand.u32 4294901760, %v8913_v23 }
 0x225   :  { %10733 = vst [vmem:[#allocation29_spill] sm:$0xff] %v8894_v28  ;;  %3910 = vmatpush.msrb.mxu1 %v3909_v17  ;;  %4035 = vmatpush.msrb.mxu3 %v8777_v15  ;;  %v8926_v17 = vand.u32 4294901760, %v3131_v14  ;;  %v10735_v56 = vand.u32 4294901760, %v8894_v28  ;;  %v3951_v11 = vand.u32 4294901760, %v3950_v22  ;;  %v3121_v22 = vld [vmem:[#allocation2 + $0x368] sm:$0xff] }
 0x226   :  { %3847 = vmatpush.msrb.mxu0 %v8833_v20  ;;  %3996 = vmatpush.msrb.mxu2 %v8836_v13  ;;  %v2800_v26 = vadd.f32 %v2799_v46, %v2746_v60  ;;  %v10737_v60 = vand.u32 4294901760, %v8714_v6  ;;  %v4213_v32 = vsub.f32 %v8913_v23, %v10738_v36  ;;  %v10739_v6 = vand.u32 4294901760, %v8719_v12 }
 0x227   :  { %3916 = vmatpush.msrb.mxu1 %v3915_v50  ;;  %4037 = vmatpush.msrb.mxu3 %v8796_v57  ;;  %v3129_v50 = vld [vmem:[#allocation2 + $0x3a8] sm:$0xff]  ;;  %v8953_v46 = vsub.f32 %v3131_v14, %v8926_v17  ;;  %v3957_v36 = vand.u32 4294901760, %v3956_v47 }
 0x228   :  { %3849 = vmatpush.msrb.mxu0 %v8847_v4  ;;  %3999 = vmatpush.msrb.mxu2 %v8841_v34  ;;  %v8938_v54 = vand.u32 4294901760, %v3129_v50  ;;  %v4214_v47 = vand.u32 4294901760, %v4213_v32 }
 0x229   :  { %3922 = vmatpush.msrb.mxu1 %v3921_v0  ;;  %4039 = vmatpush.msrb.mxu3 %v8811_v58  ;;  %v8931_v0 = vsub.f32 %v3133_v8, %v8905_v53  ;;  %v4207_v8 = vsub.f32 %v8894_v28, %v10735_v56  ;;  %v8966_v28 = vand.u32 4294901760, %v3125_v2  ;;  %v10744_v32 = vand.u32 4294901760, %v8953_v46 }
 0x22a   :  { %3851 = vmatpush.msrb.mxu0 %v8856_v21  ;;  %4002 = vmatpush.msrb.mxu2 %v8860_v42  ;;  %v8964_v14 = vsub.f32 %v3129_v50, %v8938_v54  ;;  %v10740_v50 = vand.u32 4294901760, %v8924_v38 }
 0x22b   :  { %3928 = vmatpush.msrb.mxu1 %v3927_v24  ;;  %4041 = vmatpush.msrb.mxu3 %v8816_v45  ;;  %v8945_v24 = vand.u32 4294901760, %v3127_v37  ;;  %v8990_v12 = vsub.f32 %v3125_v2, %v8966_v28 }
 0x22c   :  { %3853 = vmatpush.msrb.mxu0 %v8871_v5  ;;  %4005 = vmatpush.msrb.mxu2 %v8874_v25  ;;  %v4219_v56 = vsub.f32 %v8924_v38, %v10740_v50 }
 0x22d   :  { %3934 = vmatpush.msrb.mxu1 %v3933_v35  ;;  %4043 = vmatpush.msrb.mxu3 %v8833_v20  ;;  %v2838_v39 = vpop.f32.mrf.mxu1  ;;  %v2907_v9 = vpop.f32.mrf.mxu2 }
 0x22e   :  { %4060 = vmatpush.msra.mxu0 %v10737_v60  ;;  %4008 = vmatpush.msrb.mxu2 %v8884_v16  ;;  %v2839_v35 = vadd.f32 %v2838_v39, %v2800_v26  ;;  %v4208_v39 = vand.u32 4294901760, %v4207_v8  ;;  %v8972_v60 = vsub.f32 %v3127_v37, %v8945_v24  ;;  %v10741_v8 = vand.u32 4294901760, %v8735_v27 }
 0x22f   :  { %3940 = vmatpush.msrb.mxu1 %v3939_v48  ;;  %4045 = vmatpush.msrb.mxu3 %v8847_v4  ;;  %v10743_v27 = vand.u32 4294901760, %v8746_v55  ;;  %v10745_v55 = vand.u32 4294901760, %v8760_v41  ;;  %v10747_v41 = vand.u32 4294901760, %v8773_v31  ;;  %v10748_v31 = vand.u32 4294901760, %v8786_v10 }
 0x230   :  { %4064 = vmatpush.msra.mxu0 %v10739_v6  ;;  %4011 = vmatpush.msrb.mxu2 %v8899_v49  ;;  %v2908_v26 = vadd.f32 %v2907_v9, %v2839_v35  ;;  %v2944_v48 = vpop.f32.mrf.mxu3  ;;  %v8979_v6 = vand.u32 4294901760, %v3123_v59  ;;  %v10742_v9 = vand.u32 4294901760, %v8931_v0  ;;  %v3119_v35 = vld [vmem:[#allocation2 + $0x358] sm:$0xff]  ;;  %v10749_v10 = vand.u32 4294901760, %v8800_v18 }
 0x231   :  { %3946 = vmatpush.msrb.mxu1 %v3945_v30  ;;  %4047 = vmatpush.msrb.mxu3 %v8856_v21  ;;  %v8992_v21 = vand.u32 4294901760, %v3121_v22  ;;  %v9004_v50 = vand.u32 4294901760, %v3119_v35  ;;  %v10750_v18 = vand.u32 4294901760, %v8805_v63  ;;  %v10751_v63 = vand.u32 4294901760, %v8824_v1 }
 0x232   :  { %4068 = vmatpush.msra.mxu0 %v10741_v8  ;;  %4164 = vmatpush.msra.mxu2 %v8865_v40  ;;  %v4225_v37 = vsub.f32 %v8931_v0, %v10742_v9  ;;  %v2945_v30 = vadd.f32 %v2944_v48, %v2908_v26  ;;  %v4242_v26 = vand.u32 4294901760, %v8972_v60  ;;  %v3117_v48 = vld [vmem:[#allocation2 + $0x348] sm:$0xff]  ;;  %v4231_v9 = vsub.f32 %v8953_v46, %v10744_v32 }
 0x233   :  { %3952 = vmatpush.msrb.mxu1 %v3951_v11  ;;  %4049 = vmatpush.msrb.mxu3 %v8871_v5  ;;  %v4220_v11 = vand.u32 4294901760, %v4219_v56  ;;  %v9002_v2 = vsub.f32 %v3123_v59, %v8979_v6  ;;  %v10746_v56 = vand.u32 4294901760, %v8964_v14  ;;  %v10445_v59 = vand.u32 4294901760, %v8990_v12 }
 0x234   :  { %4072 = vmatpush.msra.mxu0 %v10743_v27  ;;  %4166 = vmatpush.msra.mxu2 %v8886_v51  ;;  %v5943_v8 = vmul.f32 -1.442695, %v2945_v30  ;;  %v4226_v30 = vand.u32 4294901760, %v4225_v37  ;;  %v3115_v27 = vld [vmem:[#allocation2 + $0x338] sm:$0xff]  ;;  %v9017_v32 = vand.u32 4294901760, %v3117_v48  ;;  %v4232_v37 = vand.u32 4294901760, %v4231_v9 }
 0x235   :  { %4209 = vmatpush.msra.mxu3 %v4208_v39  ;;  %3958 = vmatpush.msrb.mxu1 %v3957_v36  ;;  %v4237_v39 = vsub.f32 %v8964_v14, %v10746_v56  ;;  %v9015_v36 = vsub.f32 %v3121_v22, %v8992_v21  ;;  %v9028_v22 = vsub.f32 %v3119_v35, %v9004_v50  ;;  %v3111_v56 = vld [vmem:[#allocation2 + $0x318] sm:$0xff]  ;;  %v10752_v1 = vand.u32 4294901760, %v8836_v13 }
 0x236   :  { %4076 = vmatpush.msra.mxu0 %v10745_v55  ;;  %5957 = vpow2.f32 %v5943_v8  ;;  %4168 = vmatpush.msra.mxu2 %v8901_v62  ;;  %v9030_v8 = vand.u32 4294901760, %v3115_v27  ;;  %v3113_v55 = vld [vmem:[#allocation2 + $0x328] sm:$0xff]  ;;  %v9041_v35 = vsub.f32 %v3117_v48, %v9017_v32 }
 0x237   :  { %4127 = vmatpush.msra.mxu1 %v8697_v43  ;;  %4215 = vmatpush.msra.mxu3 %v4214_v47  ;;  %v4243_v43 = vsub.f32 %v8972_v60, %v4242_v26  ;;  %v4254_v47 = vand.u32 4294901760, %v9002_v2  ;;  %v4260_v9 = vand.u32 4294901760, %v9015_v36 }
 0x238   :  { %4080 = vmatpush.msra.mxu0 %v10747_v41  ;;  %4170 = vmatpush.msra.mxu2 %v8905_v53 }
 0x239   :  { %4129 = vmatpush.msra.mxu1 %v8701_v52  ;;  %4221 = vmatpush.msra.mxu3 %v4220_v11  ;;  %v4238_v52 = vand.u32 4294901760, %v4237_v39  ;;  %v4249_v11 = vsub.f32 %v8990_v12, %v10445_v59  ;;  %v4255_v48 = vsub.f32 %v9002_v2, %v4254_v47  ;;  %v4266_v39 = vand.u32 4294901760, %v9028_v22 }
 0x23a   :  { %4084 = vmatpush.msra.mxu0 %v10748_v31  ;;  %4172 = vmatpush.msra.mxu2 %v8926_v17  ;;  %v9046_v31 = vand.u32 4294901760, %v3113_v55  ;;  %v9056_v59 = vsub.f32 %v3115_v27, %v9030_v8  ;;  %v4272_v27 = vand.u32 4294901760, %v9041_v35 }
 0x23b   :  { %4131 = vmatpush.msra.mxu1 %v8711_v19  ;;  %4227 = vmatpush.msra.mxu3 %v4226_v30  ;;  %v4244_v19 = vand.u32 4294901760, %v4243_v43  ;;  %v3109_v43 = vld [vmem:[#allocation2 + $0x308] sm:$0xff] }
 0x23c   :  { %v5958_v41 = vpop.eup %5957  ;;  %4088 = vmatpush.msra.mxu0 %v10749_v10  ;;  %4174 = vmatpush.msra.mxu2 %v8938_v54  ;;  %v4256_v10 = vand.u32 4294901760, %v4255_v48  ;;  %v10753_v48 = vand.u32 4294901760, %v8841_v34  ;;  %v10754_v34 = vand.u32 4294901760, %v8860_v42 }
 0x23d   :  { %4133 = vmatpush.msra.mxu1 %v8724_v61  ;;  %v9048_v30 = vadd.f32 1.0, %v5958_v41  ;;  %4233 = vmatpush.msra.mxu3 %v4232_v37  ;;  %v9061_v61 = vand.u32 4294901760, %v3111_v56  ;;  %v4250_v37 = vand.u32 4294901760, %v4249_v11  ;;  %v4261_v41 = vsub.f32 %v9015_v36, %v4260_v9 }
 0x23e   :  { %4092 = vmatpush.msra.mxu0 %v10750_v18  ;;  %4176 = vmatpush.msra.mxu2 %v8945_v24  ;;  %v4278_v11 = vand.u32 4294901760, %v9056_v59  ;;  %v9080_v18 = vand.u32 4294901760, %v3109_v43 }
 0x23f   :  { %4135 = vmatpush.msra.mxu1 %v8731_v7  ;;  %5959 = vrcp.f32 %v9048_v30  ;;  %4239 = vmatpush.msra.mxu3 %v4238_v52  ;;  %v9073_v7 = vsub.f32 %v3113_v55, %v9046_v31  ;;  %v4267_v52 = vsub.f32 %v9028_v22, %v4266_v39  ;;  %v4262_v55 = vand.u32 4294901760, %v4261_v41 }
 0x240   :  { %4096 = vmatpush.msra.mxu0 %v10751_v63  ;;  %4178 = vmatpush.msra.mxu2 %v8966_v28  ;;  %vm2975_vm5 = vweird.f32 %v9048_v30 }
 0x241   :  { %4137 = vmatpush.msra.mxu1 %v8743_v44  ;;  %4245 = vmatpush.msra.mxu3 %v4244_v19  ;;  %v9086_v44 = vsub.f32 %v3111_v56, %v9061_v61  ;;  %v4273_v19 = vsub.f32 %v9041_v35, %v4272_v27  ;;  %v4284_v13 = vand.u32 4294901760, %v9073_v7  ;;  %v4279_v56 = vsub.f32 %v9056_v59, %v4278_v11 }
 0x242   :  { %4100 = vmatpush.msra.mxu0 %v10752_v1  ;;  %4180 = vmatpush.msra.mxu2 %v8979_v6  ;;  %v10755_v1 = vand.u32 4294901760, %v8874_v25 }
 0x243   :  { %4139 = vmatpush.msra.mxu1 %v8756_v33  ;;  %4251 = vmatpush.msra.mxu3 %v4250_v37  ;;  %v4268_v33 = vand.u32 4294901760, %v4267_v52  ;;  %v9101_v37 = vsub.f32 %v3109_v43, %v9080_v18  ;;  %v4285_v43 = vsub.f32 %v9073_v7, %v4284_v13 }
 0x244   :  { %4104 = vmatpush.msra.mxu0 %v10753_v48  ;;  %4182 = vmatpush.msra.mxu2 %v8992_v21  ;;  %v10756_v48 = vand.u32 4294901760, %v8884_v16  ;;  %v2979_v16 = vand.u32 2147483647, %v9048_v30 }
 0x245   :  { %4141 = vmatpush.msra.mxu1 %v8769_v29  ;;  %v5960_v63 = vpop.eup %5959  ;;  %4257 = vmatpush.msra.mxu3 %v4256_v10  ;;  %v4290_v29 = vand.u32 4294901760, %v9086_v44  ;;  %v4274_v10 = vand.u32 4294901760, %v4273_v19  ;;  %v4296_v42 = vand.u32 4294901760, %v9101_v37  ;;  %v4286_v19 = vand.u32 4294901760, %v4285_v43 }
 0x246   :  { %v2971_v41 = vmul.f32 %v5960_v63, %v9048_v30  ;;  %4108 = vmatpush.msra.mxu0 %v10754_v34  ;;  %4184 = vmatpush.msra.mxu2 %v9004_v50  ;;  %vm2976_vm4 = vweird.f32 %v5960_v63  ;;  %v10759_v34 = vld [vmem:[#allocation25_spill] sm:$0xff]  ;;  %vm2980_vm7 = vcmp.eq.f32.partialorder %v2979_v16, 8.507059e+37  ;;  %v10765_v43 = vand.u32 4294901760, %v8924_v38 }
 0x247   :  { %4143 = vmatpush.msra.mxu1 %v8777_v15  ;;  %4263 = vmatpush.msra.mxu3 %v4262_v55  ;;  %v4280_v15 = vand.u32 4294901760, %v4279_v56  ;;  %v4291_v25 = vsub.f32 %v9086_v44, %v4290_v29  ;;  %v10757_v55 = vand.u32 4294901760, %v8899_v49  ;;  %vm2977_vm6 = vmor %vm2975_vm5, %vm2976_vm4 }
 0x248   :  { %v2972_v52 = vsub.f32 1.0, %v2971_v41  ;;  %4112 = vmatpush.msra.mxu0 %v10755_v1  ;;  %4186 = vmatpush.msra.mxu2 %v9017_v32  ;;  %v10762_v1 = vld [vmem:[#allocation17_spill] sm:$0xff] }
 0x249   :  { %4145 = vmatpush.msra.mxu1 %v8796_v57  ;;  %4269 = vmatpush.msra.mxu3 %v4268_v33  ;;  %v2981_v57 = vand.u32 2147483648, %v9048_v30  ;;  %v4292_v49 = vand.u32 4294901760, %v4291_v25  ;;  %v10760_v30 = vld [vmem:[#allocation26_spill] sm:$0xff] }
 0x24a   :  { %4116 = vmatpush.msra.mxu0 %v10756_v48  ;;  %4188 = vmatpush.msra.mxu2 %v9030_v8  ;;  %v2973_v33 = vmul.f32 %v5960_v63, %v2972_v52 }
 0x24b   :  { %4147 = vmatpush.msra.mxu1 %v8811_v58  ;;  %4275 = vmatpush.msra.mxu3 %v4274_v10  ;;  %v4297_v58 = vsub.f32 %v9101_v37, %v4296_v42  ;;  %v2982_v41 = vor.u32 1.1754944e-38, %v2981_v57  ;;  %v3024_v57 = vld [vmem:[#allocation2 + $0x60] sm:$0xff] }
 0x24c   :  { %4120 = vmatpush.msra.mxu0 %v10757_v55  ;;  %4190 = vmatpush.msra.mxu2 %v9046_v31  ;;  %v2974_v56 = vadd.f32 %v5960_v63, %v2973_v33  ;;  %v5972_v55 = vld [vmem:[#allocation7 + $0x30] sm:$0xff] }
 0x24d   :  { %4149 = vmatpush.msra.mxu1 %v8816_v45  ;;  %4281 = vmatpush.msra.mxu3 %v4280_v15  ;;  %v10758_v45 = vld [vmem:[#allocation29_spill] sm:$0xff]  ;;  %v10766_v15 = vld [vmem:[#allocation24_spill] sm:$0xff] }
 0x24e   :  { %3859 = vmatmul.f32.vlgmr.msrb.gmra.mxu0 %v8607_v3  ;;  %4192 = vmatpush.msra.mxu2 %v9061_v61  ;;  %v2978_v10 = vsel %vm2977_vm6, %v5960_v63, %v2974_v56  ;;  %v4298_v3 = vand.u32 4294901760, %v4297_v58  ;;  %v10761_v52 = vand.u32 4294901760, %v10758_v45  ;;  %v10763_v63 = vld [vmem:[#allocation33_spill] sm:$0xff] }
 0x24f   :  { %4151 = vmatpush.msra.mxu1 %v8833_v20  ;;  %4307 = vmatpush.msrb.mxu0 %v10758_v45  ;;  %v2983_v20 = vsel %vm2980_vm7, %v2982_v41, %v2978_v10  ;;  %v3022_v56 = vld [vmem:[#allocation2 + $0x50] sm:$0xff] }
 0x250   :  { %4287 = vmatpush.msra.mxu3 %v4286_v19  ;;  %4014 = vmatmul.f32.vlgmr.msrb.gmra.mxu2 %v10759_v34  ;;  %2986 = vst [vmem:[#allocation8 + $0x8] sm:$0xff] %v2983_v20  ;;  %v9296_v34 = vand.u32 4294901760, %v3024_v57  ;;  %v3020_v20 = vld [vmem:[#allocation2 + $0x40] sm:$0xff] }
 0x251   :  { %4310 = vmatpush.msrb.mxu0 %v8913_v23  ;;  %4153 = vmatpush.msra.mxu1 %v8847_v4  ;;  %v10764_v4 = vand.u32 4294901760, %v8913_v23  ;;  %v10767_v23 = vand.u32 4294901760, %v8931_v0  ;;  %5918 = dma.vmem_to_hbm [thread:$0]  %s5914_s7, 256, %s5916_s5, [#allocation4]  }
 0x252   :  { %4194 = vmatpush.msra.mxu2 %v9080_v18  ;;  %4293 = vmatpush.msra.mxu3 %v4292_v49 }
 0x253   :  { %4053 = vmatmul.f32.vlgmr.msrb.gmra.mxu3 %v10760_v30  ;;  %4313 = vmatpush.msrb.mxu0 %v8924_v38  ;;  %v3038_v38 = vld [vmem:[#allocation2 + $0xd0] sm:$0xff] }
 0x254   :  { %4401 = vmatpush.msrb.mxu2 %v10761_v52  ;;  %4155 = vmatpush.msra.mxu1 %v10762_v1  ;;  %v9307_v1 = vand.u32 4294901760, %v3022_v56 }
 0x255   :  { %4299 = vmatpush.msra.mxu3 %v4298_v3  ;;  %3960 = vmatmul.f32.vlgmr.msrb.gmra.mxu1 %v10763_v63  ;;  %v10773_v3 = vld [vmem:[#allocation28_spill] sm:$0xff] }
 0x256   :  { %4316 = vmatpush.msrb.mxu0 %v8931_v0  ;;  %4405 = vmatpush.msrb.mxu2 %v10764_v4 }
 0x257   :  { %4468 = vmatpush.msrb.mxu3 %v8865_v40  ;;  %4157 = vmatpush.msra.mxu1 %v8871_v5  ;;  %v10768_v5 = vld [vmem:[#allocation27_spill] sm:$0xff] }
 0x258   :  { %4319 = vmatpush.msrb.mxu0 %v8953_v46  ;;  %4409 = vmatpush.msrb.mxu2 %v10765_v43 }
 0x259   :  { %4360 = vmatpush.msrb.mxu1 %v8865_v40  ;;  %4470 = vmatpush.msrb.mxu3 %v8886_v51  ;;  %v10769_v40 = vand.u32 4294901760, %v8953_v46 }
 0x25a   :  { %4200 = vmatmul.f32.vlgmr.msra.gmra.mxu2 %v10766_v15  ;;  %4322 = vmatpush.msrb.mxu0 %v8964_v14  ;;  %v3018_v15 = vld [vmem:[#allocation2 + $0x30] sm:$0xff] }
 0x25b   :  { %4362 = vmatpush.msrb.mxu1 %v8886_v51  ;;  %4413 = vmatpush.msrb.mxu2 %v10767_v23  ;;  %v10770_v51 = vand.u32 4294901760, %v8964_v14  ;;  %v3034_v14 = vld [vmem:[#allocation2 + $0xb0] sm:$0xff] }
 0x25c   :  { %4472 = vmatpush.msrb.mxu3 %v8901_v62  ;;  %4122 = vmatmul.f32.vlgmr.msra.gmra.mxu0 %v10763_v63 }
 0x25d   :  { %4301 = vmatmul.f32.vlgmr.msra.gmra.mxu3 %v10768_v5  ;;  %4325 = vmatpush.msrb.mxu0 %v8972_v60 }
 0x25e   :  { %4364 = vmatpush.msrb.mxu1 %v8901_v62  ;;  %4417 = vmatpush.msrb.mxu2 %v10769_v40  ;;  %v10771_v62 = vand.u32 4294901760, %v8990_v12 }
 0x25f   :  { %4474 = vmatpush.msrb.mxu3 %v8905_v53  ;;  %4159 = vmatmul.f32.vlgmr.msra.gmra.mxu1 %v10763_v63 }
 0x260   :  { %4328 = vmatpush.msrb.mxu0 %v8990_v12  ;;  %4366 = vmatpush.msrb.mxu1 %v8905_v53  ;;  %v3042_v53 = vld [vmem:[#allocation2 + $0xf0] sm:$0xff]  ;;  %v3032_v12 = vld [vmem:[#allocation2 + $0xa0] sm:$0xff] }
 0x261   :  { %4421 = vmatpush.msrb.mxu2 %v10770_v51  ;;  %4476 = vmatpush.msrb.mxu3 %v8926_v17  ;;  %v9323_v51 = vsub.f32 %v3024_v57, %v9296_v34  ;;  %v3074_v57 = vld [vmem:[#allocation2 + $0x1f0] sm:$0xff] }
 0x262   :  { %4331 = vmatpush.msrb.mxu0 %v9002_v2  ;;  %4368 = vmatpush.msrb.mxu1 %v8926_v17  ;;  %v9197_v17 = vand.u32 4294901760, %v3042_v53  ;;  %v5970_v2 = vld [vmem:[#allocation7 + $0x10] sm:$0xff] }
 0x263   :  { %4425 = vmatpush.msrb.mxu2 %v4242_v26  ;;  %4478 = vmatpush.msrb.mxu3 %v8938_v54  ;;  %v5969_v26 = vld [vmem:[#allocation7] sm:$0xff] }
 0x264   :  { %4334 = vmatpush.msrb.mxu0 %v9015_v36  ;;  %4370 = vmatpush.msrb.mxu1 %v8938_v54  ;;  %v3040_v54 = vld [vmem:[#allocation2 + $0xe0] sm:$0xff]  ;;  %v9214_v46 = vsub.f32 %v3042_v53, %v9197_v17 }
 0x265   :  { %4429 = vmatpush.msrb.mxu2 %v10771_v62  ;;  %4480 = vmatpush.msrb.mxu3 %v8945_v24  ;;  %v9204_v0 = vand.u32 4294901760, %v3040_v54  ;;  %v3016_v53 = vld [vmem:[#allocation2 + $0x20] sm:$0xff] }
 0x266   :  { %4337 = vmatpush.msrb.mxu0 %v9028_v22  ;;  %4372 = vmatpush.msrb.mxu1 %v8945_v24  ;;  %v9211_v24 = vand.u32 4294901760, %v3038_v38  ;;  %v3030_v22 = vld [vmem:[#allocation2 + $0x90] sm:$0xff] }
 0x267   :  { %4433 = vmatpush.msrb.mxu2 %v4254_v47  ;;  %4482 = vmatpush.msrb.mxu3 %v8966_v28  ;;  %v9224_v60 = vsub.f32 %v3040_v54, %v9204_v0  ;;  %v10772_v47 = vld [vmem:[#allocation22_spill] sm:$0xff] }
 0x268   :  { %4340 = vmatpush.msrb.mxu0 %v9041_v35  ;;  %4374 = vmatpush.msrb.mxu1 %v8966_v28  ;;  %v3036_v28 = vld [vmem:[#allocation2 + $0xc0] sm:$0xff]  ;;  %v9235_v36 = vsub.f32 %v3038_v38, %v9211_v24 }
 0x269   :  { %4437 = vmatpush.msrb.mxu2 %v4260_v9  ;;  %4484 = vmatpush.msrb.mxu3 %v8979_v6  ;;  %v4553_v9 = vand.u32 4294901760, %v9224_v60 }
 0x26a   :  { %4343 = vmatpush.msrb.mxu0 %v9056_v59  ;;  %4376 = vmatpush.msrb.mxu1 %v8979_v6  ;;  %v9228_v6 = vand.u32 4294901760, %v3034_v14  ;;  %v4547_v59 = vand.u32 4294901760, %v9214_v46 }
 0x26b   :  { %4441 = vmatpush.msrb.mxu2 %v4266_v39  ;;  %4486 = vmatpush.msrb.mxu3 %v8992_v21 }
 0x26c   :  { %4346 = vmatpush.msrb.mxu0 %v9073_v7  ;;  %4378 = vmatpush.msrb.mxu1 %v8992_v21  ;;  %v9221_v21 = vand.u32 4294901760, %v3036_v28  ;;  %v9251_v39 = vsub.f32 %v3034_v14, %v9228_v6 }
 0x26d   :  { %4445 = vmatpush.msrb.mxu2 %v4272_v27  ;;  %4488 = vmatpush.msrb.mxu3 %v9004_v50  ;;  %v5971_v27 = vld [vmem:[#allocation7 + $0x20] sm:$0xff] }
 0x26e   :  { %4349 = vmatpush.msrb.mxu0 %v9086_v44  ;;  %4380 = vmatpush.msrb.mxu1 %v9004_v50  ;;  %v2992_v50 = vadd.f32 %v5970_v2, %v5969_v26  ;;  %v9246_v35 = vsub.f32 %v3036_v28, %v9221_v21  ;;  %v9259_v44 = vand.u32 4294901760, %v3030_v22  ;;  %v10456_v25 = vand.u32 4294901760, %v9251_v39 }
 0x26f   :  { %4449 = vmatpush.msrb.mxu2 %v4278_v11  ;;  %4490 = vmatpush.msrb.mxu3 %v9017_v32  ;;  %v4548_v11 = vsub.f32 %v9214_v46, %v4547_v59  ;;  %v9333_v28 = vand.u32 4294901760, %v3018_v15 }
 0x270   :  { %4352 = vmatpush.msrb.mxu0 %v9101_v37  ;;  %4382 = vmatpush.msrb.mxu1 %v9017_v32  ;;  %v9239_v32 = vand.u32 4294901760, %v3032_v12  ;;  %v2999_v7 = vadd.f32 %v5971_v27, %v2992_v50  ;;  %v4554_v37 = vsub.f32 %v9224_v60, %v4553_v9  ;;  %v10457_v48 = vand.u32 4294901760, %v9246_v35 }
 0x271   :  { %4453 = vmatpush.msrb.mxu2 %v4284_v13  ;;  %4492 = vmatpush.msrb.mxu3 %v9030_v8  ;;  %v10459_v13 = vand.u32 4294901760, %v9235_v36  ;;  %v4549_v33 = vand.u32 4294901760, %v4548_v11  ;;  %v9345_v50 = vand.u32 4294901760, %v3016_v53 }
 0x272   :  { %4355 = vmatmul.f32.vlgmr.msrb.gmra.mxu0 %v10772_v47  ;;  %4384 = vmatpush.msrb.mxu1 %v9030_v8  ;;  %v3028_v8 = vld [vmem:[#allocation2 + $0x80] sm:$0xff]  ;;  %v3006_v19 = vadd.f32 %v5972_v55, %v2999_v7  ;;  %v4555_v45 = vand.u32 4294901760, %v4554_v37  ;;  %v4566_v41 = vsub.f32 %v9246_v35, %v10457_v48  ;;  %v10449_v47 = vand.u32 4294901760, %v9323_v51 }
 0x273   :  { %4505 = vmatpush.msra.mxu0 %v9197_v17  ;;  %4457 = vmatpush.msrb.mxu2 %v4290_v29  ;;  %v3026_v29 = vld [vmem:[#allocation2 + $0x70] sm:$0xff]  ;;  %v4560_v16 = vsub.f32 %v9235_v36, %v10459_v13  ;;  %v9362_v37 = vsub.f32 %v3018_v15, %v9333_v28 }
 0x274   :  { %4494 = vmatpush.msrb.mxu3 %v9046_v31  ;;  %4386 = vmatpush.msrb.mxu1 %v9046_v31  ;;  %v9265_v31 = vsub.f32 %v3032_v12, %v9239_v32  ;;  %v9283_v58 = vand.u32 4294901760, %v3026_v29  ;;  %v3010_v30 = vmul.f32 0.25, %v3006_v19  ;;  %v4567_v23 = vand.u32 4294901760, %v4566_v41  ;;  %v3012_v19 = vld [vmem:[#allocation2] sm:$0xff]  ;;  %v3058_v13 = vld [vmem:[#allocation2 + $0x170] sm:$0xff] }
 0x275   :  { %4507 = vmatpush.msra.mxu0 %v9204_v0  ;;  %4461 = vmatpush.msrb.mxu2 %v4296_v42  ;;  %v9272_v42 = vand.u32 4294901760, %v3028_v8  ;;  %v4561_v52 = vand.u32 4294901760, %v4560_v16  ;;  %v9337_v12 = vsub.f32 %v3022_v56, %v9307_v1  ;;  %v4602_v16 = vsub.f32 %v9323_v51, %v10449_v47 }
 0x276   :  { %4496 = vmatpush.msrb.mxu3 %v9061_v61  ;;  %4463 = vmatmul.f32.vlgmr.msrb.gmra.mxu2 %v10768_v5  ;;  %v10454_v49 = vand.u32 4294901760, %v9265_v31  ;;  %v9311_v4 = vsub.f32 %v3026_v29, %v9283_v58  ;;  %v9327_v54 = vand.u32 4294901760, %v3010_v30 }
 0x277   :  { %4509 = vmatpush.msra.mxu0 %v9211_v24  ;;  %4648 = vmatpush.msra.mxu2 %v9214_v46  ;;  %v9299_v10 = vsub.f32 %v3028_v8, %v9272_v42  ;;  %v3014_v8 = vld [vmem:[#allocation2 + $0x10] sm:$0xff]  ;;  %v10447_v29 = vand.u32 4294901760, %v9337_v12  ;;  %v5974_v46 = vld [vmem:[#allocation7 + $0x18] sm:$0xff] }
 0x278   :  { %4388 = vmatpush.msrb.mxu1 %v9061_v61  ;;  %4498 = vmatpush.msrb.mxu3 %v9080_v18  ;;  %v9286_v61 = vsub.f32 %v3030_v22, %v9259_v44  ;;  %v4578_v43 = vsub.f32 %v9265_v31, %v10454_v49  ;;  %v10450_v14 = vand.u32 4294901760, %v9311_v4  ;;  %v9354_v27 = vsub.f32 %v3010_v30, %v9327_v54  ;;  %v5973_v49 = vld [vmem:[#allocation7 + $0x8] sm:$0xff] }
 0x279   :  { %4500 = vmatmul.f32.vlgmr.msrb.gmra.mxu3 %v10768_v5  ;;  %4511 = vmatpush.msra.mxu0 %v9221_v21  ;;  %v9319_v5 = vand.u32 4294901760, %v3020_v20  ;;  %v10451_v40 = vand.u32 4294901760, %v9299_v10  ;;  %v9366_v55 = vand.u32 4294901760, %v3014_v8  ;;  %v4608_v30 = vsub.f32 %v9337_v12, %v10447_v29  ;;  %v3066_v29 = vld [vmem:[#allocation2 + $0x1b0] sm:$0xff] }
 0x27a   :  { %4651 = vmatpush.msra.mxu2 %v9224_v60  ;;  %4701 = vmatpush.msra.mxu3 %v9197_v17  ;;  %v10453_v63 = vand.u32 4294901760, %v9286_v61  ;;  %v4579_v26 = vand.u32 4294901760, %v4578_v43  ;;  %10774 = vst [vmem:[#allocation30_spill] sm:$0xff] %v9354_v27  ;;  %v4596_v11 = vsub.f32 %v9311_v4, %v10450_v14  ;;  %v9379_v41 = vand.u32 4294901760, %v9354_v27 }
 0x27b   :  { %4390 = vmatpush.msrb.mxu1 %v9080_v18  ;;  %4513 = vmatpush.msra.mxu0 %v9228_v6  ;;  %v4572_v18 = vsub.f32 %v9251_v39, %v10456_v25  ;;  %v4590_v2 = vsub.f32 %v9299_v10, %v10451_v40  ;;  %v9349_v22 = vsub.f32 %v3020_v20, %v9319_v5  ;;  %v10448_v43 = vand.u32 4294901760, %v9362_v37  ;;  %v3060_v25 = vld [vmem:[#allocation2 + $0x180] sm:$0xff] }
 0x27c   :  { %4394 = vmatmul.f32.vlgmr.msrb.gmra.mxu1 %v10773_v3  ;;  %4654 = vmatpush.msra.mxu2 %v9235_v36  ;;  %v4584_v38 = vsub.f32 %v9286_v61, %v10453_v63  ;;  %10775 = vst [vmem:[#allocation23_spill] sm:$0xff] %v9379_v41  ;;  %v9381_v3 = vand.u32 4294901760, %v3074_v57  ;;  %v4597_v20 = vand.u32 4294901760, %v4596_v11  ;;  %v9393_v15 = vsub.f32 %v3014_v8, %v9366_v55 }
 0x27d   :  { %4550 = vmatpush.msra.mxu1 %v4549_v33  ;;  %4703 = vmatpush.msra.mxu3 %v9204_v0  ;;  %v4573_v62 = vand.u32 4294901760, %v4572_v18  ;;  %v4591_v33 = vand.u32 4294901760, %v4590_v2  ;;  %v10446_v56 = vand.u32 4294901760, %v9349_v22  ;;  %v3072_v18 = vld [vmem:[#allocation2 + $0x1e0] sm:$0xff]  ;;  %v4539_v8 = vsub.f32 %v9354_v27, %v9379_v41 }
 0x27e   :  { %4515 = vmatpush.msra.mxu0 %v9239_v32  ;;  %4657 = vmatpush.msra.mxu2 %v9246_v35  ;;  %v4585_v7 = vand.u32 4294901760, %v4584_v38  ;;  %10776 = vst [vmem:[#allocation31_spill] sm:$0xff] %v9381_v3  ;;  %v3068_v2 = vld [vmem:[#allocation2 + $0x1c0] sm:$0xff]  ;;  %v4609_v11 = vand.u32 4294901760, %v4608_v30  ;;  %v9435_v40 = vand.u32 4294901760, %v3066_v29  ;;  %v10780_v60 = vand.u32 4294901760, %v9235_v36 }
 0x27f   :  { %4556 = vmatpush.msra.mxu1 %v4555_v45  ;;  %4705 = vmatpush.msra.mxu3 %v9211_v24  ;;  %v9374_v45 = vsub.f32 %v3016_v53, %v9345_v50  ;;  %v4614_v53 = vsub.f32 %v9349_v22, %v10446_v56  ;;  %v9432_v47 = vand.u32 4294901760, %v4539_v8 }
 0x280   :  { %4517 = vmatpush.msra.mxu0 %v9259_v44  ;;  %4660 = vmatpush.msra.mxu2 %v9251_v39 }
 0x281   :  { %4562 = vmatpush.msra.mxu1 %v4561_v52  ;;  %4707 = vmatpush.msra.mxu3 %v9221_v21  ;;  %v9387_v52 = vand.u32 4294901760, %v3012_v19  ;;  %v10452_v38 = vand.u32 4294901760, %v9374_v45  ;;  %v4615_v30 = vand.u32 4294901760, %v4614_v53  ;;  %10778 = vst [vmem:[#allocation15_spill] sm:$0xff] %v9432_v47 }
 0x282   :  { %4519 = vmatpush.msra.mxu0 %v9272_v42  ;;  %4663 = vmatpush.msra.mxu2 %v9265_v31 }
 0x283   :  { %4568 = vmatpush.msra.mxu1 %v4567_v23  ;;  %4709 = vmatpush.msra.mxu3 %v9228_v6  ;;  %v3070_v23 = vld [vmem:[#allocation2 + $0x1d0] sm:$0xff] }
 0x284   :  { %4521 = vmatpush.msra.mxu0 %v9283_v58  ;;  %4666 = vmatpush.msra.mxu2 %v9286_v61  ;;  %v9416_v56 = vand.u32 4294901760, %v3070_v23 }
 0x285   :  { %4574 = vmatpush.msra.mxu1 %v4573_v62  ;;  %4711 = vmatpush.msra.mxu3 %v9239_v32  ;;  %v4603_v62 = vand.u32 4294901760, %v4602_v16  ;;  %v9414_v16 = vsub.f32 %v3012_v19, %v9387_v52  ;;  %v4626_v19 = vsub.f32 %v9374_v45, %v10452_v38 }
 0x286   :  { %4523 = vmatpush.msra.mxu0 %v9296_v34  ;;  %4669 = vmatpush.msra.mxu2 %v9299_v10 }
 0x287   :  { %4580 = vmatpush.msra.mxu1 %v4579_v26  ;;  %4713 = vmatpush.msra.mxu3 %v9259_v44  ;;  %v9400_v26 = vand.u32 4294901760, %v3072_v18  ;;  %v10460_v38 = vand.u32 4294901760, %v9414_v16 }
 0x288   :  { %4525 = vmatpush.msra.mxu0 %v9307_v1  ;;  %4672 = vmatpush.msra.mxu2 %v9311_v4 }
 0x289   :  { %4586 = vmatpush.msra.mxu1 %v4585_v7  ;;  %4715 = vmatpush.msra.mxu3 %v9272_v42  ;;  %10777 = vst [vmem:[#allocation32_spill] sm:$0xff] %v9400_v26  ;;  %v9407_v7 = vsub.f32 %v3074_v57, %v9381_v3  ;;  %v10455_v57 = vand.u32 4294901760, %v9393_v15 }
 0x28a   :  { %4527 = vmatpush.msra.mxu0 %v9319_v5  ;;  %4675 = vmatpush.msra.mxu2 %v9323_v51 }
 0x28b   :  { %4592 = vmatpush.msra.mxu1 %v4591_v33  ;;  %4717 = vmatpush.msra.mxu3 %v9283_v58  ;;  %v4620_v33 = vsub.f32 %v9362_v37, %v10448_v43  ;;  %v9428_v43 = vsub.f32 %v3072_v18, %v9400_v26  ;;  %v10458_v14 = vand.u32 4294901760, %v9407_v7  ;;  %v9440_v18 = vsub.f32 %v3070_v23, %v9416_v56 }
 0x28c   :  { %4529 = vmatpush.msra.mxu0 %v9333_v28  ;;  %4678 = vmatpush.msra.mxu2 %v9337_v12  ;;  %v4632_v8 = vsub.f32 %v9393_v15, %v10455_v57 }
 0x28d   :  { %4598 = vmatpush.msra.mxu1 %v4597_v20  ;;  %4719 = vmatpush.msra.mxu3 %v9296_v34  ;;  %v9421_v20 = vand.u32 4294901760, %v3068_v2  ;;  %v4621_v53 = vand.u32 4294901760, %v4620_v33  ;;  %v4627_v33 = vand.u32 4294901760, %v4626_v19  ;;  %v4889_v57 = vsub.f32 %v9407_v7, %v10458_v14 }
 0x28e   :  { %4531 = vmatpush.msra.mxu0 %v9345_v50  ;;  %4681 = vmatpush.msra.mxu2 %v9349_v22  ;;  %v4633_v14 = vand.u32 4294901760, %v4632_v8 }
 0x28f   :  { %4604 = vmatpush.msra.mxu1 %v4603_v62  ;;  %4721 = vmatpush.msra.mxu3 %v9307_v1  ;;  %v3064_v62 = vld [vmem:[#allocation2 + $0x1a0] sm:$0xff]  ;;  %v9448_v63 = vsub.f32 %v3068_v2, %v9421_v20  ;;  %v9460_v2 = vsub.f32 %v3066_v29, %v9435_v40  ;;  %v4890_v8 = vand.u32 4294901760, %v4889_v57  ;;  %v9495_v29 = vand.u32 4294901760, %v3058_v13 }
 0x290   :  { %4533 = vmatpush.msra.mxu0 %v9366_v55  ;;  %4684 = vmatpush.msra.mxu2 %v9362_v37  ;;  %v9452_v23 = vand.u32 4294901760, %v3064_v62 }
 0x291   :  { %4610 = vmatpush.msra.mxu1 %v4609_v11  ;;  %4723 = vmatpush.msra.mxu3 %v9319_v5  ;;  %v3062_v11 = vld [vmem:[#allocation2 + $0x190] sm:$0xff]  ;;  %v10782_v57 = vand.u32 4294901760, %v9448_v63 }
 0x292   :  { %4535 = vmatpush.msra.mxu0 %v9387_v52  ;;  %4687 = vmatpush.msra.mxu2 %v9374_v45  ;;  %v9468_v48 = vand.u32 4294901760, %v3062_v11  ;;  %v9479_v19 = vsub.f32 %v3064_v62, %v9452_v23 }
 0x293   :  { %4616 = vmatpush.msra.mxu1 %v4615_v30  ;;  %4725 = vmatpush.msra.mxu3 %v9333_v28  ;;  %v4638_v30 = vsub.f32 %v9414_v16, %v10460_v38  ;;  %v4907_v36 = vsub.f32 %v9448_v63, %v10782_v57  ;;  %v10784_v57 = vand.u32 4294901760, %v9460_v2 }
 0x294   :  { %4541 = vmatmul.f32.vlgmr.msra.gmra.mxu0 %v9432_v47  ;;  %4690 = vmatpush.msra.mxu2 %v9393_v15  ;;  %v9481_v47 = vand.u32 4294901760, %v3060_v25 }
 0x295   :  { %4742 = vmatpush.msrb.mxu0 %v4547_v59  ;;  %4622 = vmatpush.msra.mxu1 %v4621_v53  ;;  %v2993_v59 = vadd.f32 %v5974_v46, %v5973_v49  ;;  %v10779_v53 = vand.u32 4294901760, %v9428_v43  ;;  %v3056_v46 = vld [vmem:[#allocation2 + $0x160] sm:$0xff]  ;;  %v5975_v49 = vld [vmem:[#allocation7 + $0x28] sm:$0xff] }
 0x296   :  { %4727 = vmatpush.msra.mxu3 %v9345_v50  ;;  %4693 = vmatpush.msra.mxu2 %v9414_v16 }
 0x297   :  { %4746 = vmatpush.msrb.mxu0 %v4553_v9  ;;  %4628 = vmatpush.msra.mxu1 %v4627_v33  ;;  %v4895_v38 = vsub.f32 %v9428_v43, %v10779_v53  ;;  %v4639_v9 = vand.u32 4294901760, %v4638_v30  ;;  %v10781_v33 = vand.u32 4294901760, %v9440_v18  ;;  %v9493_v53 = vsub.f32 %v3062_v11, %v9468_v48 }
 0x298   :  { %4729 = vmatpush.msra.mxu3 %v9366_v55  ;;  %4696 = vmatmul.f32.vlgmr.msra.gmra.mxu2 %v9354_v27  ;;  %v3000_v27 = vadd.f32 %v5975_v49, %v2993_v59  ;;  %v10783_v30 = vand.u32 4294901760, %v9246_v35  ;;  %v4913_v59 = vsub.f32 %v9460_v2, %v10784_v57  ;;  %v3052_v49 = vld [vmem:[#allocation2 + $0x140] sm:$0xff]  ;;  %v10785_v35 = vand.u32 4294901760, %v9251_v39  ;;  %v5976_v57 = vld [vmem:[#allocation7 + $0x38] sm:$0xff] }
 0x299   :  { %4750 = vmatpush.msrb.mxu0 %v10780_v60  ;;  %4846 = vmatpush.msrb.mxu2 %v9381_v3  ;;  %v4901_v62 = vsub.f32 %v9440_v18, %v10781_v33  ;;  %v3054_v60 = vld [vmem:[#allocation2 + $0x150] sm:$0xff]  ;;  %v4896_v33 = vand.u32 4294901760, %v4895_v38  ;;  %v9506_v3 = vsub.f32 %v3060_v25, %v9481_v47  ;;  %v9518_v25 = vsub.f32 %v3058_v13, %v9495_v29 }
 0x29a   :  { %4634 = vmatpush.msra.mxu1 %v4633_v14  ;;  %4731 = vmatpush.msra.mxu3 %v9387_v52  ;;  %v9508_v14 = vand.u32 4294901760, %v3056_v46  ;;  %v9520_v11 = vand.u32 4294901760, %v3054_v60  ;;  %v10786_v39 = vand.u32 4294901760, %v9479_v19 }
 0x29b   :  { %4735 = vmatmul.f32.vlgmr.msra.gmra.mxu3 %v9379_v41  ;;  %4754 = vmatpush.msrb.mxu0 %v10783_v30  ;;  %v4902_v38 = vand.u32 4294901760, %v4901_v62  ;;  %v3050_v41 = vld [vmem:[#allocation2 + $0x130] sm:$0xff]  ;;  %v4930_v13 = vand.u32 4294901760, %v9506_v3  ;;  %v10787_v30 = vand.u32 4294901760, %v9265_v31  ;;  %v10789_v31 = vand.u32 4294901760, %v9286_v61 }
 0x29c   :  { %4848 = vmatpush.msrb.mxu2 %v9400_v26  ;;  %4891 = vmatpush.msrb.mxu3 %v4890_v8  ;;  %v4908_v8 = vand.u32 4294901760, %v4907_v36  ;;  %v3007_v26 = vadd.f32 %v5976_v57, %v3000_v27  ;;  %v9530_v62 = vsub.f32 %v3056_v46, %v9508_v14  ;;  %v4914_v27 = vand.u32 4294901760, %v4913_v59 }
 0x29d   :  { %4640 = vmatpush.msra.mxu1 %v4639_v9  ;;  %4758 = vmatpush.msrb.mxu0 %v10785_v35  ;;  %v4919_v9 = vsub.f32 %v9479_v19, %v10786_v39  ;;  %v9532_v35 = vand.u32 4294901760, %v3052_v49  ;;  %v9543_v46 = vsub.f32 %v3054_v60, %v9520_v11  ;;  %v9545_v57 = vand.u32 4294901760, %v3050_v41  ;;  %v3048_v39 = vld [vmem:[#allocation2 + $0x120] sm:$0xff] }
 0x29e   :  { %4642 = vmatmul.f32.vlgmr.msra.gmra.mxu1 %v9327_v54  ;;  %4850 = vmatpush.msrb.mxu2 %v9416_v56  ;;  %v3011_v59 = vmul.f32 0.25, %v3007_v26  ;;  %v4942_v60 = vand.u32 4294901760, %v9530_v62  ;;  %v10790_v61 = vand.u32 4294901760, %v9299_v10  ;;  %v9561_v26 = vand.u32 4294901760, %v3048_v39 }
 0x29f   :  { %4809 = vmatpush.msrb.mxu1 %v9197_v17  ;;  %4897 = vmatpush.msrb.mxu3 %v4896_v33  ;;  %v10788_v17 = vand.u32 4294901760, %v9493_v53  ;;  %v10468_v33 = vand.u32 4294901760, %v9518_v25  ;;  %v10791_v10 = vand.u32 4294901760, %v9311_v4 }
 0x2a0   :  { %4762 = vmatpush.msrb.mxu0 %v10787_v30  ;;  %4852 = vmatpush.msrb.mxu2 %v9421_v20  ;;  %v9556_v30 = vsub.f32 %v3052_v49, %v9532_v35  ;;  %v9569_v49 = vsub.f32 %v3050_v41, %v9545_v57  ;;  %v9587_v4 = vsub.f32 %v3048_v39, %v9561_v26 }
 0x2a1   :  { %4811 = vmatpush.msrb.mxu1 %v9204_v0  ;;  %4903 = vmatpush.msrb.mxu3 %v4902_v38  ;;  %v4925_v36 = vsub.f32 %v9493_v53, %v10788_v17  ;;  %v4920_v0 = vand.u32 4294901760, %v4919_v9  ;;  %v4931_v38 = vsub.f32 %v9506_v3, %v4930_v13  ;;  %v3046_v17 = vld [vmem:[#allocation2 + $0x110] sm:$0xff]  ;;  %v4948_v9 = vand.u32 4294901760, %v9543_v46 }
 0x2a2   :  { %4766 = vmatpush.msrb.mxu0 %v10789_v31  ;;  %4854 = vmatpush.msrb.mxu2 %v9435_v40  ;;  %v3044_v31 = vld [vmem:[#allocation2 + $0x100] sm:$0xff]  ;;  %v4954_v41 = vand.u32 4294901760, %v9556_v30 }
 0x2a3   :  { %4813 = vmatpush.msrb.mxu1 %v9211_v24  ;;  %4909 = vmatpush.msrb.mxu3 %v4908_v8  ;;  %v4926_v24 = vand.u32 4294901760, %v4925_v36  ;;  %v4937_v8 = vsub.f32 %v9518_v25, %v10468_v33  ;;  %v4943_v36 = vsub.f32 %v9530_v62, %v4942_v60  ;;  %v10793_v33 = vand.u32 4294901760, %v9323_v51 }
 0x2a4   :  { %4770 = vmatpush.msrb.mxu0 %v10790_v61  ;;  %4856 = vmatpush.msrb.mxu2 %v9452_v23  ;;  %v9574_v61 = vand.u32 4294901760, %v3046_v17  ;;  %v10794_v51 = vand.u32 4294901760, %v9337_v12  ;;  %v4966_v12 = vand.u32 4294901760, %v9587_v4 }
 0x2a5   :  { %4815 = vmatpush.msrb.mxu1 %v9221_v21  ;;  %4915 = vmatpush.msrb.mxu3 %v4914_v27  ;;  %v9576_v21 = vand.u32 4294901760, %v3011_v59  ;;  %v4932_v27 = vand.u32 4294901760, %v4931_v38  ;;  %v4960_v38 = vand.u32 4294901760, %v9569_v49 }
 0x2a6   :  { %4774 = vmatpush.msrb.mxu0 %v10791_v10  ;;  %4858 = vmatpush.msrb.mxu2 %v9468_v48  ;;  %v9589_v10 = vand.u32 4294901760, %v3044_v31 }
 0x2a7   :  { %10792 = vst [vmem:[#allocation16_spill] sm:$0xff] %v9576_v21  ;;  %4817 = vmatpush.msrb.mxu1 %v9228_v6  ;;  %4921 = vmatpush.msrb.mxu3 %v4920_v0  ;;  %v4938_v6 = vand.u32 4294901760, %v4937_v8  ;;  %v4949_v0 = vsub.f32 %v9543_v46, %v4948_v9  ;;  %v9603_v39 = vsub.f32 %v3011_v59, %v9576_v21  ;;  %v10796_v8 = vand.u32 4294901760, %v9349_v22 }
 0x2a8   :  { %4778 = vmatpush.msrb.mxu0 %v10793_v33  ;;  %4860 = vmatpush.msrb.mxu2 %v9481_v47  ;;  %v9600_v33 = vsub.f32 %v3046_v17, %v9574_v61  ;;  %v9614_v17 = vsub.f32 %v3044_v31, %v9589_v10  ;;  %v4961_v59 = vsub.f32 %v9569_v49, %v4960_v38  ;;  %v10799_v31 = vand.u32 4294901760, %v9374_v45 }
 0x2a9   :  { %4819 = vmatpush.msrb.mxu1 %v9239_v32  ;;  %4927 = vmatpush.msrb.mxu3 %v4926_v24  ;;  %10795 = vst [vmem:[#allocation20_spill] sm:$0xff] %v9603_v39  ;;  %v4944_v32 = vand.u32 4294901760, %v4943_v36  ;;  %v4955_v24 = vsub.f32 %v9556_v30, %v4954_v41  ;;  %v9625_v36 = vand.u32 4294901760, %v9603_v39 }
 0x2aa   :  { %4782 = vmatpush.msrb.mxu0 %v10794_v51  ;;  %4862 = vmatpush.msrb.mxu2 %v9495_v29  ;;  %v4972_v22 = vand.u32 4294901760, %v9600_v33  ;;  %v10800_v51 = vand.u32 4294901760, %v9393_v15 }
 0x2ab   :  { %4821 = vmatpush.msrb.mxu1 %v9259_v44  ;;  %4933 = vmatpush.msrb.mxu3 %v4932_v27  ;;  %v4950_v44 = vand.u32 4294901760, %v4949_v0  ;;  %v10797_v27 = vand.u32 4294901760, %v9362_v37  ;;  %10798 = vst [vmem:[#allocation21_spill] sm:$0xff] %v9625_v36  ;;  %v4967_v37 = vsub.f32 %v9587_v4, %v4966_v12  ;;  %v4962_v0 = vand.u32 4294901760, %v4961_v59  ;;  %v9663_v59 = vpop.f32.mrf.mxu2 }
 0x2ac   :  { %4786 = vmatpush.msrb.mxu0 %v10796_v8  ;;  %4864 = vmatpush.msrb.mxu2 %v9508_v14  ;;  %v4880_v45 = vsub.f32 %v9603_v39, %v9625_v36  ;;  %10804 = vst [vmem:[#allocation29_spill] sm:$0xff] %v9663_v59  ;;  %v3061_v59 = vld [vmem:[#allocation2 + $0x188] sm:$0xff] }
 0x2ad   :  { %4823 = vmatpush.msrb.mxu1 %v9272_v42  ;;  %4939 = vmatpush.msrb.mxu3 %v4938_v6  ;;  %v4956_v42 = vand.u32 4294901760, %v4955_v24  ;;  %v4978_v6 = vand.u32 4294901760, %v9614_v17  ;;  %v9651_v24 = vpop.f32.mrf.mxu0 }
 0x2ae   :  { %4790 = vmatpush.msrb.mxu0 %v10797_v27  ;;  %4866 = vmatpush.msrb.mxu2 %v9520_v11  ;;  %v9656_v8 = vand.u32 4294901760, %v4880_v45  ;;  %v10807_v27 = vand.u32 4294901760, %v9428_v43 }
 0x2af   :  { %4825 = vmatpush.msrb.mxu1 %v9283_v58  ;;  %4945 = vmatpush.msrb.mxu3 %v4944_v32  ;;  %v4973_v58 = vsub.f32 %v9600_v33, %v4972_v22  ;;  %v10801_v32 = vand.u32 4294901760, %v9414_v16  ;;  %v4979_v15 = vsub.f32 %v9614_v17, %v4978_v6  ;;  %v9660_v16 = vpop.f32.mrf.mxu1 }
 0x2b0   :  { %4794 = vmatpush.msrb.mxu0 %v10799_v31  ;;  %4868 = vmatpush.msrb.mxu2 %v9532_v35  ;;  %10802 = vst [vmem:[#allocation19_spill] sm:$0xff] %v9656_v8 }
 0x2b1   :  { %4827 = vmatpush.msrb.mxu1 %v9296_v34  ;;  %4951 = vmatpush.msrb.mxu3 %v4950_v44  ;;  %v4968_v34 = vand.u32 4294901760, %v4967_v37  ;;  %10803 = vst [vmem:[#allocation18_spill] sm:$0xff] %v9660_v16  ;;  %v4980_v44 = vand.u32 4294901760, %v4979_v15  ;;  %v10012_v16 = vand.u32 4294901760, %v3061_v59 }
 0x2b2   :  { %4798 = vmatpush.msrb.mxu0 %v10800_v51  ;;  %4870 = vmatpush.msrb.mxu2 %v9545_v57 }
 0x2b3   :  { %4829 = vmatpush.msrb.mxu1 %v9307_v1  ;;  %4957 = vmatpush.msrb.mxu3 %v4956_v42  ;;  %v4974_v1 = vand.u32 4294901760, %v4973_v58  ;;  %v9693_v37 = vpop.f32.mrf.mxu2  ;;  %v3033_v58 = vld [vmem:[#allocation2 + $0xa8] sm:$0xff] }
 0x2b4   :  { %4802 = vmatpush.msrb.mxu0 %v10801_v32  ;;  %4872 = vmatpush.msrb.mxu2 %v9561_v26  ;;  %10814 = vst [vmem:[#allocation33_spill] sm:$0xff] %v9693_v37 }
 0x2b5   :  { %4831 = vmatpush.msrb.mxu1 %v9319_v5  ;;  %4963 = vmatpush.msrb.mxu3 %v4962_v0  ;;  %v10805_v5 = vand.u32 4294901760, %v9407_v7  ;;  %v9679_v42 = vpop.f32.mrf.mxu0 }
 0x2b6   :  { %4804 = vmatmul.f32.vlgmr.msrb.gmra.mxu0 %v9327_v54  ;;  %4874 = vmatpush.msrb.mxu2 %v9574_v61  ;;  %10809 = vst [vmem:[#allocation26_spill] sm:$0xff] %v9679_v42  ;;  %v10829_v42 = vld [vmem:[#allocation15_spill] sm:$0xff] }
 0x2b7   :  { %4989 = vmatpush.msra.mxu0 %v9407_v7  ;;  %4833 = vmatpush.msrb.mxu1 %v9333_v28  ;;  %v9671_v28 = vpop.f32.mrf.mxu3  ;;  %v10811_v7 = vld [vmem:[#allocation32_spill] sm:$0xff]  ;;  %v9688_v31 = vpop.f32.mrf.mxu1 }
 0x2b8   :  { %4969 = vmatpush.msrb.mxu3 %v4968_v34  ;;  %4876 = vmatpush.msrb.mxu2 %v9589_v10  ;;  %10806 = vst [vmem:[#allocation25_spill] sm:$0xff] %v9671_v28  ;;  %v3031_v34 = vld [vmem:[#allocation2 + $0x98] sm:$0xff] }
 0x2b9   :  { %4992 = vmatpush.msra.mxu0 %v9428_v43  ;;  %4835 = vmatpush.msrb.mxu1 %v9345_v50  ;;  %v10808_v50 = vld [vmem:[#allocation31_spill] sm:$0xff]  ;;  %10812 = vst [vmem:[#allocation17_spill] sm:$0xff] %v9688_v31  ;;  %v10813_v43 = vand.u32 4294901760, %v9448_v63 }
 0x2ba   :  { %4975 = vmatpush.msrb.mxu3 %v4974_v1  ;;  %4882 = vmatmul.f32.vlgmr.msrb.gmra.mxu2 %v9656_v8 }
 0x2bb   :  { %4995 = vmatpush.msra.mxu0 %v9440_v18  ;;  %5083 = vmatpush.msra.mxu2 %v10805_v5 }
 0x2bc   :  { %4837 = vmatpush.msrb.mxu1 %v9366_v55  ;;  %4981 = vmatpush.msrb.mxu3 %v4980_v44  ;;  %v10810_v55 = vand.u32 4294901760, %v9440_v18  ;;  %v3029_v44 = vld [vmem:[#allocation2 + $0x88] sm:$0xff] }
 0x2bd   :  { %4983 = vmatmul.f32.vlgmr.msrb.gmra.mxu3 %v9576_v21  ;;  %4998 = vmatpush.msra.mxu0 %v9448_v63  ;;  %v10817_v63 = vand.u32 4294901760, %v9479_v19  ;;  %v9707_v0 = vpop.f32.mrf.mxu0 }
 0x2be   :  { %5087 = vmatpush.msra.mxu2 %v10807_v27  ;;  %5150 = vmatpush.msra.mxu3 %v10808_v50  ;;  %10818 = vst [vmem:[#allocation27_spill] sm:$0xff] %v9707_v0  ;;  %v3065_v0 = vld [vmem:[#allocation2 + $0x1a8] sm:$0xff] }
 0x2bf   :  { %4839 = vmatpush.msrb.mxu1 %v9387_v52  ;;  %5001 = vmatpush.msra.mxu0 %v9460_v2  ;;  %v10815_v52 = vand.u32 4294901760, %v9460_v2  ;;  %v9702_v18 = vpop.f32.mrf.mxu3  ;;  %v10819_v2 = vand.u32 4294901760, %v9493_v53  ;;  %v9983_v31 = vand.u32 4294901760, %v3065_v0 }
 0x2c0   :  { %4841 = vmatmul.f32.vlgmr.msrb.gmra.mxu1 %v9327_v54  ;;  %5091 = vmatpush.msra.mxu2 %v10810_v55  ;;  %10816 = vst [vmem:[#allocation24_spill] sm:$0xff] %v9702_v18 }
 0x2c1   :  { %5042 = vmatpush.msra.mxu1 %v10808_v50  ;;  %5152 = vmatpush.msra.mxu3 %v10811_v7  ;;  %v3027_v50 = vld [vmem:[#allocation2 + $0x78] sm:$0xff] }
 0x2c2   :  { %5004 = vmatpush.msra.mxu0 %v9479_v19  ;;  %5095 = vmatpush.msra.mxu2 %v10813_v43  ;;  %v9721_v19 = vpop.f32.mrf.mxu2 }
 0x2c3   :  { %5044 = vmatpush.msra.mxu1 %v10811_v7  ;;  %5154 = vmatpush.msra.mxu3 %v9416_v56  ;;  %10821 = vst [vmem:[#allocation28_spill] sm:$0xff] %v9721_v19  ;;  %v3069_v19 = vld [vmem:[#allocation2 + $0x1c8] sm:$0xff] }
 0x2c4   :  { %5007 = vmatpush.msra.mxu0 %v9493_v53  ;;  %5099 = vmatpush.msra.mxu2 %v10815_v52  ;;  %v3041_v53 = vld [vmem:[#allocation2 + $0xe8] sm:$0xff] }
 0x2c5   :  { %5046 = vmatpush.msra.mxu1 %v9416_v56  ;;  %5156 = vmatpush.msra.mxu3 %v9421_v20  ;;  %v9716_v56 = vpop.f32.mrf.mxu1 }
 0x2c6   :  { %5010 = vmatpush.msra.mxu0 %v9506_v3  ;;  %5103 = vmatpush.msra.mxu2 %v10817_v63  ;;  %10820 = vst [vmem:[#allocation22_spill] sm:$0xff] %v9716_v56 }
 0x2c7   :  { %5048 = vmatpush.msra.mxu1 %v9421_v20  ;;  %5158 = vmatpush.msra.mxu3 %v9435_v40  ;;  %v3043_v20 = vld [vmem:[#allocation2 + $0xf8] sm:$0xff]  ;;  %v9730_v51 = vpop.f32.mrf.mxu3 }
 0x2c8   :  { %5013 = vmatpush.msra.mxu0 %v9518_v25  ;;  %5107 = vmatpush.msra.mxu2 %v10819_v2  ;;  %10823 = vst [vmem:[#allocation31_spill] sm:$0xff] %v9730_v51  ;;  %v9735_v3 = vand.u32 4294901760, %v3043_v20  ;;  %v3025_v2 = vld [vmem:[#allocation2 + $0x68] sm:$0xff] }
 0x2c9   :  { %5050 = vmatpush.msra.mxu1 %v9435_v40  ;;  %5160 = vmatpush.msra.mxu3 %v9452_v23  ;;  %v10822_v40 = vand.u32 4294901760, %v9518_v25  ;;  %v3039_v25 = vld [vmem:[#allocation2 + $0xd8] sm:$0xff] }
 0x2ca   :  { %5016 = vmatpush.msra.mxu0 %v9530_v62  ;;  %5111 = vmatpush.msra.mxu2 %v4930_v13  ;;  %v3037_v13 = vld [vmem:[#allocation2 + $0xc8] sm:$0xff] }
 0x2cb   :  { %5052 = vmatpush.msra.mxu1 %v9452_v23  ;;  %5162 = vmatpush.msra.mxu3 %v9468_v48  ;;  %v3860_v23 = vpop.f32.mrf.mxu0 }
 0x2cc   :  { %5019 = vmatpush.msra.mxu0 %v9543_v46  ;;  %5115 = vmatpush.msra.mxu2 %v10822_v40  ;;  %v9754_v46 = vand.u32 4294901760, %v3039_v25  ;;  %v9823_v40 = vand.u32 4294901760, %v3027_v50 }
 0x2cd   :  { %5054 = vmatpush.msra.mxu1 %v9468_v48  ;;  %5164 = vmatpush.msra.mxu3 %v9481_v47  ;;  %v9742_v48 = vand.u32 4294901760, %v3041_v53 }
 0x2ce   :  { %5022 = vmatpush.msra.mxu0 %v9556_v30  ;;  %5119 = vmatpush.msra.mxu2 %v4942_v60 }
 0x2cf   :  { %5056 = vmatpush.msra.mxu1 %v9481_v47  ;;  %5166 = vmatpush.msra.mxu3 %v9495_v29  ;;  %v9750_v47 = vsub.f32 %v3043_v20, %v9735_v3  ;;  %v9760_v30 = vsub.f32 %v3041_v53, %v9742_v48 }
 0x2d0   :  { %5025 = vmatpush.msra.mxu0 %v9569_v49  ;;  %5123 = vmatpush.msra.mxu2 %v4948_v9 }
 0x2d1   :  { %5058 = vmatpush.msra.mxu1 %v9495_v29  ;;  %5168 = vmatpush.msra.mxu3 %v9508_v14  ;;  %v3035_v29 = vld [vmem:[#allocation2 + $0xb8] sm:$0xff]  ;;  %v10478_v49 = vand.u32 4294901760, %v9750_v47 }
 0x2d2   :  { %5028 = vmatpush.msra.mxu0 %v9587_v4  ;;  %5127 = vmatpush.msra.mxu2 %v4954_v41  ;;  %v3961_v62 = vpop.f32.mrf.mxu1  ;;  %v9769_v45 = vand.u32 4294901760, %v3035_v29  ;;  %v9780_v4 = vand.u32 4294901760, %v3033_v58 }
 0x2d3   :  { %5060 = vmatpush.msra.mxu1 %v9508_v14  ;;  %5170 = vmatpush.msra.mxu3 %v9520_v11  ;;  %v3962_v60 = vadd.f32 %v3961_v62, %v3860_v23  ;;  %v4015_v9 = vpop.f32.mrf.mxu2  ;;  %v9764_v14 = vand.u32 4294901760, %v3037_v13  ;;  %v3023_v62 = vld [vmem:[#allocation2 + $0x58] sm:$0xff] }
 0x2d4   :  { %5031 = vmatpush.msra.mxu0 %v9600_v33  ;;  %5131 = vmatpush.msra.mxu2 %v4960_v38  ;;  %v5230_v33 = vsub.f32 %v9750_v47, %v10478_v49 }
 0x2d5   :  { %5062 = vmatpush.msra.mxu1 %v9520_v11  ;;  %5172 = vmatpush.msra.mxu3 %v9532_v35  ;;  %v4016_v41 = vadd.f32 %v4015_v9, %v3962_v60  ;;  %v9775_v11 = vsub.f32 %v3039_v25, %v9754_v46 }
 0x2d6   :  { %5034 = vmatpush.msra.mxu0 %v9614_v17  ;;  %5135 = vmatpush.msra.mxu2 %v4966_v12  ;;  %v4054_v38 = vpop.f32.mrf.mxu3  ;;  %v10477_v12 = vand.u32 4294901760, %v9760_v30  ;;  %v5231_v52 = vand.u32 4294901760, %v5230_v33 }
 0x2d7   :  { %5064 = vmatpush.msra.mxu1 %v9532_v35  ;;  %5174 = vmatpush.msra.mxu3 %v9545_v57  ;;  %v4055_v32 = vadd.f32 %v4054_v38, %v4016_v41  ;;  %v9786_v35 = vsub.f32 %v3037_v13, %v9764_v14  ;;  %v10475_v5 = vand.u32 4294901760, %v9775_v11 }
 0x2d8   :  { %5037 = vmatmul.f32.vlgmr.msra.gmra.mxu0 %v9603_v39  ;;  %5139 = vmatpush.msra.mxu2 %v4972_v22  ;;  %v9795_v22 = vsub.f32 %v3035_v29, %v9769_v45  ;;  %v5236_v17 = vsub.f32 %v9760_v30, %v10477_v12  ;;  %v9836_v29 = vand.u32 4294901760, %v3025_v2 }
 0x2d9   :  { %5187 = vmatpush.msrb.mxu0 %v9735_v3  ;;  %5066 = vmatpush.msra.mxu1 %v9545_v57  ;;  %v4123_v15 = vpop.f32.mrf.mxu0  ;;  %v9799_v57 = vand.u32 4294901760, %v3031_v34  ;;  %v10474_v55 = vand.u32 4294901760, %v9786_v35  ;;  %v5242_v20 = vsub.f32 %v9775_v11, %v10475_v5  ;;  %v3073_v5 = vld [vmem:[#allocation2 + $0x1e8] sm:$0xff] }
 0x2da   :  { %5176 = vmatpush.msra.mxu3 %v9561_v26  ;;  %5143 = vmatpush.msra.mxu2 %v4978_v6  ;;  %v4124_v1 = vadd.f32 %v4123_v15, %v4055_v32  ;;  %v9808_v6 = vsub.f32 %v3033_v58, %v9780_v4  ;;  %v10473_v63 = vand.u32 4294901760, %v9795_v22  ;;  %v5237_v23 = vand.u32 4294901760, %v5236_v17  ;;  %v3021_v58 = vld [vmem:[#allocation2 + $0x48] sm:$0xff] }
 0x2db   :  { %5189 = vmatpush.msrb.mxu0 %v9742_v48  ;;  %5068 = vmatpush.msra.mxu1 %v9561_v26  ;;  %v9812_v26 = vand.u32 4294901760, %v3029_v44  ;;  %v9826_v53 = vsub.f32 %v3031_v34, %v9799_v57  ;;  %v5248_v60 = vsub.f32 %v9786_v35, %v10474_v55  ;;  %v5243_v38 = vand.u32 4294901760, %v5242_v20 }
 0x2dc   :  { %5178 = vmatpush.msra.mxu3 %v9574_v61  ;;  %5145 = vmatmul.f32.vlgmr.msra.gmra.mxu2 %v9576_v21  ;;  %v4160_v27 = vpop.f32.mrf.mxu1  ;;  %v10471_v25 = vand.u32 4294901760, %v9808_v6  ;;  %v9849_v32 = vand.u32 4294901760, %v3023_v62  ;;  %v9853_v15 = vsub.f32 %v3027_v50, %v9823_v40  ;;  %v9861_v17 = vand.u32 4294901760, %v3021_v58 }
 0x2dd   :  { %5191 = vmatpush.msrb.mxu0 %v9754_v46  ;;  %5330 = vmatpush.msrb.mxu2 %v9750_v47  ;;  %v4161_v7 = vadd.f32 %v4160_v27, %v4124_v1  ;;  %v4201_v43 = vpop.f32.mrf.mxu2  ;;  %v9839_v9 = vsub.f32 %v3029_v44, %v9812_v26  ;;  %v10470_v34 = vand.u32 4294901760, %v9826_v53  ;;  %v3019_v1 = vld [vmem:[#allocation2 + $0x38] sm:$0xff]  ;;  %v5249_v44 = vand.u32 4294901760, %v5248_v60 }
 0x2de   :  { %5070 = vmatpush.msra.mxu1 %v9574_v61  ;;  %5180 = vmatpush.msra.mxu3 %v9589_v10  ;;  %v5260_v33 = vsub.f32 %v9808_v6, %v10471_v25  ;;  %v9865_v50 = vsub.f32 %v3025_v2, %v9836_v29  ;;  %v9873_v20 = vand.u32 4294901760, %v3019_v1  ;;  %v9877_v2 = vsub.f32 %v3023_v62, %v9849_v32  ;;  %v3015_v62 = vld [vmem:[#allocation2 + $0x18] sm:$0xff] }
 0x2df   :  { %5182 = vmatmul.f32.vlgmr.msra.gmra.mxu3 %v9576_v21  ;;  %5193 = vmatpush.msrb.mxu0 %v9764_v14  ;;  %v4202_v61 = vadd.f32 %v4201_v43, %v4161_v7  ;;  %v10469_v27 = vand.u32 4294901760, %v9839_v9  ;;  %v3017_v43 = vld [vmem:[#allocation2 + $0x28] sm:$0xff]  ;;  %v9903_v25 = vand.u32 4294901760, %v3015_v62  ;;  %v9935_v51 = vand.u32 4294901760, %v3073_v5 }
 0x2e0   :  { %5333 = vmatpush.msrb.mxu2 %v9760_v30  ;;  %5383 = vmatpush.msrb.mxu3 %v9735_v3  ;;  %v4302_v13 = vpop.f32.mrf.mxu3  ;;  %v9885_v60 = vand.u32 4294901760, %v3017_v43 }
 0x2e1   :  { %5072 = vmatpush.msra.mxu1 %v9589_v10  ;;  %5195 = vmatpush.msrb.mxu0 %v9769_v45  ;;  %v9841_v41 = vadd.f32 %v4302_v13, %v4202_v61  ;;  %v5254_v10 = vsub.f32 %v9795_v22, %v10473_v63  ;;  %v10472_v61 = vand.u32 4294901760, %v9853_v15  ;;  %v5272_v13 = vsub.f32 %v9839_v9, %v10469_v27  ;;  %v3071_v63 = vld [vmem:[#allocation2 + $0x1d8] sm:$0xff] }
 0x2e2   :  { %5076 = vmatmul.f32.vlgmr.msra.gmra.mxu1 %v9625_v36  ;;  %5336 = vmatpush.msrb.mxu2 %v9775_v11  ;;  %v10479_v27 = vand.u32 4294901760, %v9877_v2  ;;  %10824 = vst [vmem:[#allocation32_spill] sm:$0xff] %v9903_v25  ;;  %v9961_v39 = vsub.f32 %v3073_v5, %v9935_v51 }
 0x2e3   :  { %5232 = vmatpush.msrb.mxu1 %v5231_v52  ;;  %5385 = vmatpush.msrb.mxu3 %v9742_v48  ;;  %v5255_v7 = vand.u32 4294901760, %v5254_v10  ;;  %v5266_v52 = vsub.f32 %v9826_v53, %v10470_v34  ;;  %v10476_v10 = vand.u32 4294901760, %v9865_v50  ;;  %v9899_v34 = vsub.f32 %v3019_v1, %v9873_v20 }
 0x2e4   :  { %5197 = vmatpush.msrb.mxu0 %v9780_v4  ;;  %5339 = vmatpush.msrb.mxu2 %v9786_v35  ;;  %v9911_v1 = vsub.f32 %v3017_v43, %v9885_v60  ;;  %v3067_v43 = vld [vmem:[#allocation2 + $0x1b8] sm:$0xff] }
 0x2e5   :  { %5238 = vmatpush.msrb.mxu1 %v5237_v23  ;;  %5387 = vmatpush.msrb.mxu3 %v9754_v46  ;;  %v5261_v23 = vand.u32 4294901760, %v5260_v33  ;;  %v5267_v33 = vand.u32 4294901760, %v5266_v52  ;;  %v5273_v52 = vand.u32 4294901760, %v5272_v13  ;;  %v5290_v13 = vsub.f32 %v9877_v2, %v10479_v27 }
 0x2e6   :  { %5199 = vmatpush.msrb.mxu0 %v9799_v57  ;;  %5342 = vmatpush.msrb.mxu2 %v9795_v22 }
 0x2e7   :  { %5244 = vmatpush.msrb.mxu1 %v5243_v38  ;;  %5389 = vmatpush.msrb.mxu3 %v9764_v14  ;;  %v9889_v38 = vsub.f32 %v3021_v58, %v9861_v17  ;;  %v3075_v58 = vld [vmem:[#allocation2 + $0x1f8] sm:$0xff] }
 0x2e8   :  { %5201 = vmatpush.msrb.mxu0 %v9812_v26  ;;  %5345 = vmatpush.msrb.mxu2 %v9808_v6  ;;  %v9915_v55 = vand.u32 4294901760, %v3075_v58 }
 0x2e9   :  { %5250 = vmatpush.msrb.mxu1 %v5249_v44  ;;  %5391 = vmatpush.msrb.mxu3 %v9769_v45  ;;  %v5278_v44 = vsub.f32 %v9853_v15, %v10472_v61  ;;  %v5284_v61 = vsub.f32 %v9865_v50, %v10476_v10  ;;  %v10825_v27 = vand.u32 4294901760, %v9889_v38 }
 0x2ea   :  { %5203 = vmatpush.msrb.mxu0 %v9823_v40  ;;  %5348 = vmatpush.msrb.mxu2 %v9826_v53 }
 0x2eb   :  { %5256 = vmatpush.msrb.mxu1 %v5255_v7  ;;  %5393 = vmatpush.msrb.mxu3 %v9780_v4  ;;  %v3013_v7 = vld [vmem:[#allocation2 + $0x8] sm:$0xff]  ;;  %v5296_v36 = vsub.f32 %v9889_v38, %v10825_v27 }
 0x2ec   :  { %5205 = vmatpush.msrb.mxu0 %v9836_v29  ;;  %5351 = vmatpush.msrb.mxu2 %v9839_v9  ;;  %v9921_v10 = vand.u32 4294901760, %v3013_v7 }
 0x2ed   :  { %5262 = vmatpush.msrb.mxu1 %v5261_v23  ;;  %5395 = vmatpush.msrb.mxu3 %v9799_v57  ;;  %v5279_v23 = vand.u32 4294901760, %v5278_v44  ;;  %v5285_v44 = vand.u32 4294901760, %v5284_v61  ;;  %v10826_v61 = vand.u32 4294901760, %v9899_v34 }
 0x2ee   :  { %5207 = vmatpush.msrb.mxu0 %v9849_v32  ;;  %5354 = vmatpush.msrb.mxu2 %v9853_v15 }
 0x2ef   :  { %5268 = vmatpush.msrb.mxu1 %v5267_v33  ;;  %5397 = vmatpush.msrb.mxu3 %v9812_v26  ;;  %v4356_v12 = vpop.f32.mrf.mxu0  ;;  %v9928_v33 = vsub.f32 %v3015_v62, %v9903_v25  ;;  %v5302_v27 = vsub.f32 %v9899_v34, %v10826_v61  ;;  %v9947_v62 = vsub.f32 %v3013_v7, %v9921_v10  ;;  %v10827_v61 = vand.u32 4294901760, %v9911_v1 }
 0x2f0   :  { %5209 = vmatpush.msrb.mxu0 %v9861_v17  ;;  %5357 = vmatpush.msrb.mxu2 %v9865_v50  ;;  %v4357_v49 = vadd.f32 %v4356_v12, %v9841_v41  ;;  %v9940_v12 = vsub.f32 %v3075_v58, %v9915_v55  ;;  %v5291_v41 = vand.u32 4294901760, %v5290_v13  ;;  %v5297_v13 = vand.u32 4294901760, %v5296_v36 }
 0x2f1   :  { %5274 = vmatpush.msrb.mxu1 %v5273_v52  ;;  %5399 = vmatpush.msrb.mxu3 %v9823_v40  ;;  %v9949_v52 = vand.u32 4294901760, %v3071_v63  ;;  %v5308_v7 = vsub.f32 %v9911_v1, %v10827_v61  ;;  %v9966_v58 = vand.u32 4294901760, %v3067_v43  ;;  %v5303_v36 = vand.u32 4294901760, %v5302_v27 }
 0x2f2   :  { %5211 = vmatpush.msrb.mxu0 %v9873_v20  ;;  %5360 = vmatpush.msrb.mxu2 %v9877_v2  ;;  %v10828_v5 = vand.u32 4294901760, %v9928_v33 }
 0x2f3   :  { %5280 = vmatpush.msrb.mxu1 %v5279_v23  ;;  %5401 = vmatpush.msrb.mxu3 %v9836_v29  ;;  %v9954_v23 = vand.u32 4294901760, %v3069_v19  ;;  %v9971_v61 = vsub.f32 %v3071_v63, %v9949_v52  ;;  %v5309_v27 = vand.u32 4294901760, %v5308_v7  ;;  %v10831_v7 = vand.u32 4294901760, %v9750_v47  ;;  %v3059_v47 = vld [vmem:[#allocation2 + $0x178] sm:$0xff] }
 0x2f4   :  { %5213 = vmatpush.msrb.mxu0 %v9885_v60  ;;  %5363 = vmatpush.msrb.mxu2 %v9889_v38  ;;  %v5314_v56 = vsub.f32 %v9928_v33, %v10828_v5  ;;  %v10830_v5 = vand.u32 4294901760, %v9940_v12 }
 0x2f5   :  { %5286 = vmatpush.msrb.mxu1 %v5285_v44  ;;  %5403 = vmatpush.msrb.mxu3 %v9849_v32  ;;  %v9979_v18 = vsub.f32 %v3069_v19, %v9954_v23  ;;  %v10832_v44 = vand.u32 4294901760, %v9947_v62 }
 0x2f6   :  { %5215 = vmatpush.msrb.mxu0 %v9903_v25  ;;  %5366 = vmatpush.msrb.mxu2 %v9899_v34  ;;  %v5571_v19 = vsub.f32 %v9940_v12, %v10830_v5 }
 0x2f7   :  { %5292 = vmatpush.msrb.mxu1 %v5291_v41  ;;  %5405 = vmatpush.msrb.mxu3 %v9861_v17  ;;  %v3063_v41 = vld [vmem:[#allocation2 + $0x198] sm:$0xff]  ;;  %v5320_v21 = vsub.f32 %v9947_v62, %v10832_v44  ;;  %v10834_v44 = vand.u32 4294901760, %v9961_v39 }
 0x2f8   :  { %5217 = vmatpush.msrb.mxu0 %v9921_v10  ;;  %5369 = vmatpush.msrb.mxu2 %v9911_v1  ;;  %v9999_v8 = vand.u32 4294901760, %v3063_v41 }
 0x2f9   :  { %5298 = vmatpush.msrb.mxu1 %v5297_v13  ;;  %5407 = vmatpush.msrb.mxu3 %v9873_v20  ;;  %v4395_v63 = vpop.f32.mrf.mxu1  ;;  %v4464_v37 = vpop.f32.mrf.mxu2  ;;  %v9991_v13 = vsub.f32 %v3067_v43, %v9966_v58 }
 0x2fa   :  { %5223 = vmatmul.f32.vlgmr.msrb.gmra.mxu0 %v10829_v42  ;;  %5372 = vmatpush.msrb.mxu2 %v9928_v33  ;;  %v4396_v28 = vadd.f32 %v4395_v63, %v4357_v49  ;;  %v5315_v49 = vand.u32 4294901760, %v5314_v56  ;;  %v10010_v42 = vsub.f32 %v3065_v0, %v9983_v31  ;;  %v10838_v0 = vand.u32 4294901760, %v9971_v61 }
 0x2fb   :  { %5424 = vmatpush.msra.mxu0 %v10831_v7  ;;  %5304 = vmatpush.msrb.mxu1 %v5303_v36  ;;  %v10833_v36 = vand.u32 4294901760, %v9760_v30  ;;  %v5577_v7 = vsub.f32 %v9961_v39, %v10834_v44  ;;  %v5321_v44 = vand.u32 4294901760, %v5320_v21  ;;  %v10841_v21 = vand.u32 4294901760, %v9786_v35 }
 0x2fc   :  { %5409 = vmatpush.msrb.mxu3 %v9885_v60  ;;  %5375 = vmatpush.msrb.mxu2 %v9947_v62  ;;  %v4465_v43 = vadd.f32 %v4464_v37, %v4396_v28  ;;  %v4501_v5 = vpop.f32.mrf.mxu3  ;;  %v10835_v28 = vld [vmem:[#allocation30_spill] sm:$0xff]  ;;  %v5572_v37 = vand.u32 4294901760, %v5571_v19  ;;  %v5583_v63 = vsub.f32 %v9971_v61, %v10838_v0  ;;  %v10839_v19 = vand.u32 4294901760, %v9979_v18 }
 0x2fd   :  { %5428 = vmatpush.msra.mxu0 %v10833_v36  ;;  %5310 = vmatpush.msrb.mxu1 %v5309_v27  ;;  %v3057_v36 = vld [vmem:[#allocation2 + $0x168] sm:$0xff]  ;;  %v10837_v27 = vand.u32 4294901760, %v9775_v11  ;;  %v10843_v35 = vand.u32 4294901760, %v9795_v22  ;;  %v3051_v0 = vld [vmem:[#allocation2 + $0x138] sm:$0xff]  ;;  %v10844_v22 = vand.u32 4294901760, %v10010_v42 }
 0x2fe   :  { %5411 = vmatpush.msrb.mxu3 %v9903_v25  ;;  %5378 = vmatmul.f32.vlgmr.msrb.gmra.mxu2 %v10835_v28  ;;  %v10016_v56 = vadd.f32 %v4501_v5, %v4465_v43  ;;  %v10026_v25 = vsub.f32 %v3063_v41, %v9999_v8  ;;  %v10028_v28 = vand.u32 4294901760, %v3059_v47  ;;  %v5589_v11 = vsub.f32 %v9979_v18, %v10839_v19  ;;  %v3055_v43 = vld [vmem:[#allocation2 + $0x158] sm:$0xff]  ;;  %v10840_v5 = vld [vmem:[#allocation23_spill] sm:$0xff] }
 0x2ff   :  { %5432 = vmatpush.msra.mxu0 %v10837_v27  ;;  %5528 = vmatpush.msra.mxu2 %v9915_v55  ;;  %v5578_v27 = vand.u32 4294901760, %v5577_v7  ;;  %v10039_v41 = vsub.f32 %v3061_v59, %v10012_v16  ;;  %v10041_v30 = vand.u32 4294901760, %v3057_v36  ;;  %v5584_v7 = vand.u32 4294901760, %v5583_v63 }
 0x300   :  { %10836 = vst [vmem:[#allocation15_spill] sm:$0xff] %v10016_v56  ;;  %5316 = vmatpush.msrb.mxu1 %v5315_v49  ;;  %5413 = vmatpush.msrb.mxu3 %v9921_v10  ;;  %v10842_v49 = vand.u32 4294901760, %v9991_v13  ;;  %v3053_v56 = vld [vmem:[#allocation2 + $0x148] sm:$0xff]  ;;  %v10051_v59 = vsub.f32 %v3059_v47, %v10028_v28  ;;  %v5601_v63 = vsub.f32 %v10010_v42, %v10844_v22  ;;  %v10078_v22 = vand.u32 4294901760, %v3051_v0 }
 0x301   :  { %5417 = vmatmul.f32.vlgmr.msrb.gmra.mxu3 %v10840_v5  ;;  %5436 = vmatpush.msra.mxu0 %v10841_v21  ;;  %v10486_v5 = vand.u32 4294901760, %v10026_v25  ;;  %v10053_v21 = vand.u32 4294901760, %v3055_v43  ;;  %v10063_v47 = vsub.f32 %v3057_v36, %v10041_v30 }
 0x302   :  { %5530 = vmatpush.msra.mxu2 %v9935_v51  ;;  %5573 = vmatpush.msra.mxu3 %v5572_v37  ;;  %v5595_v19 = vsub.f32 %v9991_v13, %v10842_v49  ;;  %v5590_v37 = vand.u32 4294901760, %v5589_v11  ;;  %v10065_v49 = vand.u32 4294901760, %v3053_v56 }
 0x303   :  { %5322 = vmatpush.msrb.mxu1 %v5321_v44  ;;  %5440 = vmatpush.msra.mxu0 %v10843_v35  ;;  %v10845_v35 = vand.u32 4294901760, %v9808_v6  ;;  %v10076_v36 = vsub.f32 %v3055_v43, %v10053_v21  ;;  %v3049_v44 = vld [vmem:[#allocation2 + $0x128] sm:$0xff]  ;;  %v10846_v6 = vand.u32 4294901760, %v9826_v53 }
 0x304   :  { %5324 = vmatmul.f32.vlgmr.msrb.gmra.mxu1 %v9327_v54  ;;  %5532 = vmatpush.msra.mxu2 %v9949_v52  ;;  %v5596_v11 = vand.u32 4294901760, %v5595_v19  ;;  %v10847_v19 = vand.u32 4294901760, %v10039_v41  ;;  %v10089_v43 = vsub.f32 %v3053_v56, %v10065_v49  ;;  %v10094_v53 = vand.u32 4294901760, %v3049_v44 }
 0x305   :  { %5491 = vmatpush.msra.mxu1 %v9735_v3  ;;  %5579 = vmatpush.msra.mxu3 %v5578_v27  ;;  %v5607_v3 = vsub.f32 %v10026_v25, %v10486_v5  ;;  %v3047_v5 = vld [vmem:[#allocation2 + $0x118] sm:$0xff]  ;;  %v10848_v27 = vand.u32 4294901760, %v9839_v9  ;;  %v10102_v56 = vsub.f32 %v3051_v0, %v10078_v22  ;;  %v10850_v9 = vand.u32 4294901760, %v9853_v15 }
 0x306   :  { %5444 = vmatpush.msra.mxu0 %v10845_v35  ;;  %5534 = vmatpush.msra.mxu2 %v9954_v23  ;;  %v5624_v35 = vand.u32 4294901760, %v10063_v47  ;;  %v10851_v0 = vand.u32 4294901760, %v9865_v50  ;;  %v10118_v15 = vsub.f32 %v3049_v44, %v10094_v53  ;;  %v10852_v50 = vand.u32 4294901760, %v9877_v2 }
 0x307   :  { %5493 = vmatpush.msra.mxu1 %v9742_v48  ;;  %5585 = vmatpush.msra.mxu3 %v5584_v7  ;;  %v5602_v48 = vand.u32 4294901760, %v5601_v63  ;;  %v5613_v7 = vsub.f32 %v10039_v41, %v10847_v19  ;;  %v3045_v19 = vld [vmem:[#allocation2 + $0x108] sm:$0xff] }
 0x308   :  { %5448 = vmatpush.msra.mxu0 %v10846_v6  ;;  %5536 = vmatpush.msra.mxu2 %v9966_v58  ;;  %v5630_v6 = vand.u32 4294901760, %v10076_v36  ;;  %v5648_v2 = vand.u32 4294901760, %v10118_v15 }
 0x309   :  { %5495 = vmatpush.msra.mxu1 %v9754_v46  ;;  %5591 = vmatpush.msra.mxu3 %v5590_v37  ;;  %v5608_v46 = vand.u32 4294901760, %v5607_v3  ;;  %v10849_v37 = vand.u32 4294901760, %v10051_v59  ;;  %v5636_v3 = vand.u32 4294901760, %v10089_v43 }
 0x30a   :  { %5452 = vmatpush.msra.mxu0 %v10848_v27  ;;  %5538 = vmatpush.msra.mxu2 %v9983_v31  ;;  %v10107_v27 = vand.u32 4294901760, %v3047_v5 }
 0x30b   :  { %5497 = vmatpush.msra.mxu1 %v9764_v14  ;;  %5597 = vmatpush.msra.mxu3 %v5596_v11  ;;  %v5619_v63 = vsub.f32 %v10051_v59, %v10849_v37  ;;  %v5614_v14 = vand.u32 4294901760, %v5613_v7  ;;  %v5625_v11 = vsub.f32 %v10063_v47, %v5624_v35  ;;  %v10120_v37 = vand.u32 4294901760, %v3045_v19 }
 0x30c   :  { %5456 = vmatpush.msra.mxu0 %v10850_v9  ;;  %5540 = vmatpush.msra.mxu2 %v9999_v8  ;;  %v5642_v7 = vand.u32 4294901760, %v10102_v56  ;;  %v10131_v44 = vsub.f32 %v3047_v5, %v10107_v27 }
 0x30d   :  { %5499 = vmatpush.msra.mxu1 %v9769_v45  ;;  %5603 = vmatpush.msra.mxu3 %v5602_v48  ;;  %v5620_v45 = vand.u32 4294901760, %v5619_v63  ;;  %v5631_v48 = vsub.f32 %v10076_v36, %v5630_v6  ;;  %v10853_v63 = vand.u32 4294901760, %v9889_v38  ;;  %v10142_v9 = vsub.f32 %v3045_v19, %v10120_v37 }
 0x30e   :  { %5460 = vmatpush.msra.mxu0 %v10851_v0  ;;  %5542 = vmatpush.msra.mxu2 %v10012_v16  ;;  %v5643_v5 = vsub.f32 %v10102_v56, %v5642_v7  ;;  %v5654_v38 = vand.u32 4294901760, %v10131_v44 }
 0x30f   :  { %5501 = vmatpush.msra.mxu1 %v9780_v4  ;;  %5609 = vmatpush.msra.mxu3 %v5608_v46  ;;  %v5626_v4 = vand.u32 4294901760, %v5625_v11  ;;  %v5637_v46 = vsub.f32 %v10089_v43, %v5636_v3  ;;  %v10855_v11 = vand.u32 4294901760, %v9911_v1  ;;  %v10857_v1 = vand.u32 4294901760, %v9947_v62 }
 0x310   :  { %5464 = vmatpush.msra.mxu0 %v10852_v50  ;;  %5544 = vmatpush.msra.mxu2 %v10028_v28  ;;  %v5644_v0 = vand.u32 4294901760, %v5643_v5  ;;  %v10859_v50 = vld [vmem:[#allocation19_spill] sm:$0xff] }
 0x311   :  { %5503 = vmatpush.msra.mxu1 %v9799_v57  ;;  %5615 = vmatpush.msra.mxu3 %v5614_v14  ;;  %v5632_v57 = vand.u32 4294901760, %v5631_v48  ;;  %v10854_v14 = vand.u32 4294901760, %v9899_v34  ;;  %v5638_v19 = vand.u32 4294901760, %v5637_v46  ;;  %v5660_v34 = vand.u32 4294901760, %v10142_v9  ;;  %v10862_v46 = vld [vmem:[#allocation16_spill] sm:$0xff] }
 0x312   :  { %5468 = vmatpush.msra.mxu0 %v10853_v63  ;;  %5546 = vmatpush.msra.mxu2 %v10041_v30  ;;  %v10863_v63 = vld [vmem:[#allocation29_spill] sm:$0xff] }
 0x313   :  { %5505 = vmatpush.msra.mxu1 %v9812_v26  ;;  %5621 = vmatpush.msra.mxu3 %v5620_v45  ;;  %v5649_v26 = vsub.f32 %v10118_v15, %v5648_v2  ;;  %v10856_v45 = vand.u32 4294901760, %v9928_v33  ;;  %v5661_v33 = vsub.f32 %v10142_v9, %v5660_v34 }
 0x314   :  { %5472 = vmatpush.msra.mxu0 %v10854_v14  ;;  %5548 = vmatpush.msra.mxu2 %v10053_v21 }
 0x315   :  { %5507 = vmatpush.msra.mxu1 %v9823_v40  ;;  %5627 = vmatpush.msra.mxu3 %v5626_v4  ;;  %v5655_v40 = vsub.f32 %v10131_v44, %v5654_v38  ;;  %v10860_v4 = vand.u32 4294901760, %v9940_v12 }
 0x316   :  { %5476 = vmatpush.msra.mxu0 %v10855_v11  ;;  %5550 = vmatpush.msra.mxu2 %v10065_v49 }
 0x317   :  { %5509 = vmatpush.msra.mxu1 %v9836_v29  ;;  %5633 = vmatpush.msra.mxu3 %v5632_v57  ;;  %v5650_v29 = vand.u32 4294901760, %v5649_v26  ;;  %v5656_v48 = vand.u32 4294901760, %v5655_v40  ;;  %v10864_v57 = vand.u32 4294901760, %v9961_v39 }
 0x318   :  { %5480 = vmatpush.msra.mxu0 %v10856_v45  ;;  %5552 = vmatpush.msra.mxu2 %v10078_v22 }
 0x319   :  { %5511 = vmatpush.msra.mxu1 %v9849_v32  ;;  %5639 = vmatpush.msra.mxu3 %v5638_v19  ;;  %v5662_v32 = vand.u32 4294901760, %v5661_v33 }
 0x31a   :  { %5484 = vmatpush.msra.mxu0 %v10857_v1  ;;  %5554 = vmatpush.msra.mxu2 %v10094_v53 }
 0x31b   :  { %5513 = vmatpush.msra.mxu1 %v9861_v17  ;;  %5645 = vmatpush.msra.mxu3 %v5644_v0  ;;  %v10858_v17 = vld [vmem:[#allocation18_spill] sm:$0xff] }
 0x31c   :  { %5486 = vmatmul.f32.vlgmr.msra.gmra.mxu0 %v9327_v54  ;;  %5556 = vmatpush.msra.mxu2 %v10107_v27  ;;  %v3280_v62 = vadd.f32 %v10858_v17, %v9651_v24  ;;  %v10865_v24 = vand.u32 4294901760, %v9971_v61 }
 0x31d   :  { %5671 = vmatpush.msrb.mxu0 %v9940_v12  ;;  %5515 = vmatpush.msra.mxu1 %v9873_v20  ;;  %v10861_v20 = vld [vmem:[#allocation32_spill] sm:$0xff]  ;;  %v10866_v12 = vld [vmem:[#allocation25_spill] sm:$0xff] }
 0x31e   :  { %5651 = vmatpush.msra.mxu3 %v5650_v29  ;;  %5558 = vmatpush.msra.mxu2 %v10120_v37 }
 0x31f   :  { %5674 = vmatpush.msrb.mxu0 %v9961_v39  ;;  %5517 = vmatpush.msra.mxu1 %v9885_v60  ;;  %v3334_v60 = vadd.f32 %v10863_v63, %v3280_v62  ;;  %v10867_v39 = vand.u32 4294901760, %v9979_v18 }
 0x320   :  { %5657 = vmatpush.msra.mxu3 %v5656_v48  ;;  %5564 = vmatmul.f32.vlgmr.msra.gmra.mxu2 %v10859_v50 }
 0x321   :  { %5677 = vmatpush.msrb.mxu0 %v9971_v61  ;;  %5765 = vmatpush.msrb.mxu2 %v10860_v4  ;;  %v3373_v5 = vadd.f32 %v10866_v12, %v3334_v60 }
 0x322   :  { %5519 = vmatpush.msra.mxu1 %v10861_v20  ;;  %5663 = vmatpush.msra.mxu3 %v5662_v32 }
 0x323   :  { %5665 = vmatmul.f32.vlgmr.msra.gmra.mxu3 %v10862_v46  ;;  %5680 = vmatpush.msrb.mxu0 %v9979_v18  ;;  %v10870_v18 = vand.u32 4294901760, %v10010_v42 }
 0x324   :  { %5769 = vmatpush.msrb.mxu2 %v10864_v57  ;;  %5832 = vmatpush.msrb.mxu3 %v9915_v55 }
 0x325   :  { %5521 = vmatpush.msra.mxu1 %v9921_v10  ;;  %5683 = vmatpush.msrb.mxu0 %v9991_v13 }
 0x326   :  { %5523 = vmatmul.f32.vlgmr.msra.gmra.mxu1 %v9327_v54  ;;  %5773 = vmatpush.msrb.mxu2 %v10865_v24  ;;  %v10868_v54 = vand.u32 4294901760, %v9991_v13  ;;  %v10873_v13 = vand.u32 4294901760, %v10039_v41 }
 0x327   :  { %5724 = vmatpush.msrb.mxu1 %v9915_v55  ;;  %5834 = vmatpush.msrb.mxu3 %v9935_v51  ;;  %v10869_v55 = vld [vmem:[#allocation26_spill] sm:$0xff] }
 0x328   :  { %5686 = vmatpush.msrb.mxu0 %v10010_v42  ;;  %5777 = vmatpush.msrb.mxu2 %v10867_v39  ;;  %v3442_v10 = vadd.f32 %v10869_v55, %v3373_v5  ;;  %v10883_v5 = vld [vmem:[#allocation15_spill] sm:$0xff] }
 0x329   :  { %5726 = vmatpush.msrb.mxu1 %v9935_v51  ;;  %5836 = vmatpush.msrb.mxu3 %v9949_v52  ;;  %v10871_v51 = vand.u32 4294901760, %v10026_v25 }
 0x32a   :  { %5689 = vmatpush.msrb.mxu0 %v10026_v25  ;;  %5781 = vmatpush.msrb.mxu2 %v10868_v54  ;;  %v10874_v25 = vand.u32 4294901760, %v10051_v59 }
 0x32b   :  { %5728 = vmatpush.msrb.mxu1 %v9949_v52  ;;  %5838 = vmatpush.msrb.mxu3 %v9954_v23  ;;  %v10872_v52 = vld [vmem:[#allocation17_spill] sm:$0xff] }
 0x32c   :  { %5692 = vmatpush.msrb.mxu0 %v10039_v41  ;;  %5785 = vmatpush.msrb.mxu2 %v10870_v18  ;;  %v3479_v61 = vadd.f32 %v10872_v52, %v3442_v10 }
 0x32d   :  { %5730 = vmatpush.msrb.mxu1 %v9954_v23  ;;  %5840 = vmatpush.msrb.mxu3 %v9966_v58 }
 0x32e   :  { %5695 = vmatpush.msrb.mxu0 %v10051_v59  ;;  %5789 = vmatpush.msrb.mxu2 %v10871_v51  ;;  %v10880_v59 = vld [vmem:[#allocation28_spill] sm:$0xff] }
 0x32f   :  { %5732 = vmatpush.msrb.mxu1 %v9966_v58  ;;  %5842 = vmatpush.msrb.mxu3 %v9983_v31  ;;  %v10875_v58 = vld [vmem:[#allocation33_spill] sm:$0xff] }
 0x330   :  { %5698 = vmatpush.msrb.mxu0 %v10063_v47  ;;  %5793 = vmatpush.msrb.mxu2 %v10873_v13  ;;  %v3520_v23 = vadd.f32 %v10875_v58, %v3479_v61  ;;  %v4542_v47 = vpop.f32.mrf.mxu0 }
 0x331   :  { %5734 = vmatpush.msrb.mxu1 %v9983_v31  ;;  %5844 = vmatpush.msrb.mxu3 %v9999_v8 }
 0x332   :  { %5701 = vmatpush.msrb.mxu0 %v10076_v36  ;;  %5797 = vmatpush.msrb.mxu2 %v10874_v25 }
 0x333   :  { %5736 = vmatpush.msrb.mxu1 %v9999_v8  ;;  %5846 = vmatpush.msrb.mxu3 %v10012_v16  ;;  %v10876_v8 = vld [vmem:[#allocation24_spill] sm:$0xff] }
 0x334   :  { %5704 = vmatpush.msrb.mxu0 %v10089_v43  ;;  %5801 = vmatpush.msrb.mxu2 %v5624_v35  ;;  %v3621_v31 = vadd.f32 %v10876_v8, %v3520_v23  ;;  %v10882_v43 = vld [vmem:[#allocation21_spill] sm:$0xff] }
 0x335   :  { %5738 = vmatpush.msrb.mxu1 %v10012_v16  ;;  %5848 = vmatpush.msrb.mxu3 %v10028_v28  ;;  %v10877_v16 = vld [vmem:[#allocation27_spill] sm:$0xff] }
 0x336   :  { %5707 = vmatpush.msrb.mxu0 %v10102_v56  ;;  %5805 = vmatpush.msrb.mxu2 %v5630_v6  ;;  %v3675_v42 = vadd.f32 %v10877_v16, %v3621_v31  ;;  %v4697_v6 = vpop.f32.mrf.mxu2 }
 0x337   :  { %5740 = vmatpush.msrb.mxu1 %v10028_v28  ;;  %5850 = vmatpush.msrb.mxu3 %v10041_v30  ;;  %v10878_v28 = vld [vmem:[#allocation22_spill] sm:$0xff] }
 0x338   :  { %5710 = vmatpush.msrb.mxu0 %v10118_v15  ;;  %5809 = vmatpush.msrb.mxu2 %v5636_v3  ;;  %v3714_v41 = vadd.f32 %v10878_v28, %v3675_v42  ;;  %v4736_v3 = vpop.f32.mrf.mxu3  ;;  %v4805_v15 = vpop.f32.mrf.mxu0 }
 0x339   :  { %5742 = vmatpush.msrb.mxu1 %v10041_v30  ;;  %5852 = vmatpush.msrb.mxu3 %v10053_v21  ;;  %v10879_v30 = vld [vmem:[#allocation20_spill] sm:$0xff] }
 0x33a   :  { %5713 = vmatpush.msrb.mxu0 %v10131_v44  ;;  %5813 = vmatpush.msrb.mxu2 %v5642_v7 }
 0x33b   :  { %5744 = vmatpush.msrb.mxu1 %v10053_v21  ;;  %5854 = vmatpush.msrb.mxu3 %v10065_v49  ;;  %v3783_v21 = vadd.f32 %v10880_v59, %v3714_v41 }
 0x33c   :  { %5716 = vmatpush.msrb.mxu0 %v10142_v9  ;;  %5817 = vmatpush.msrb.mxu2 %v5648_v2 }
 0x33d   :  { %5746 = vmatpush.msrb.mxu1 %v10065_v49  ;;  %5856 = vmatpush.msrb.mxu3 %v10078_v22  ;;  %v10881_v49 = vld [vmem:[#allocation31_spill] sm:$0xff] }
 0x33e   :  { %5719 = vmatmul.f32.vlgmr.msrb.gmra.mxu0 %v10879_v30  ;;  %5821 = vmatpush.msrb.mxu2 %v5654_v38  ;;  %v3820_v36 = vadd.f32 %v10881_v49, %v3783_v21  ;;  %v4883_v9 = vpop.f32.mrf.mxu2 }
 0x33f   :  { %5748 = vmatpush.msrb.mxu1 %v10078_v22  ;;  %5858 = vmatpush.msrb.mxu3 %v10094_v53  ;;  %v4643_v22 = vpop.f32.mrf.mxu1 }
 0x340   :  { %5825 = vmatpush.msrb.mxu2 %v5660_v34  ;;  %v4543_v35 = vadd.f32 %v4542_v47, %v3820_v36  ;;  %v4984_v38 = vpop.f32.mrf.mxu3 }
 0x341   :  { %5750 = vmatpush.msrb.mxu1 %v10094_v53  ;;  %5860 = vmatpush.msrb.mxu3 %v10107_v27 }
 0x342   :  { %5827 = vmatmul.f32.vlgmr.msrb.gmra.mxu2 %v10862_v46  ;;  %v4644_v53 = vadd.f32 %v4643_v22, %v4543_v35 }
 0x343   :  { %5752 = vmatpush.msrb.mxu1 %v10107_v27  ;;  %5862 = vmatpush.msrb.mxu3 %v10120_v37 }
 0x344   :  { %5864 = vmatmul.f32.vlgmr.msrb.gmra.mxu3 %v10862_v46  ;;  %v4698_v56 = vadd.f32 %v4697_v6, %v4644_v53 }
 0x345   :  { %5754 = vmatpush.msrb.mxu1 %v10120_v37 }
 0x346   :  { %5758 = vmatmul.f32.vlgmr.msrb.gmra.mxu1 %v10882_v43  ;;  %v4737_v7 = vadd.f32 %v4736_v3, %v4698_v56 }
 0x347   :  { %v4842_v44 = vpop.f32.mrf.mxu1 }
 0x348   :  { %v4806_v27 = vadd.f32 %v4805_v15, %v4737_v7 }
 0x34a   :  { %v4843_v2 = vadd.f32 %v4842_v44, %v4806_v27 }
 0x34c   :  { %v4884_v14 = vadd.f32 %v4883_v9, %v4843_v2 }
 0x34e   :  { %v4985_v11 = vadd.f32 %v4984_v38, %v4884_v14 }
 0x355   :  { %v5038_v19 = vpop.f32.mrf.mxu0 }
 0x356   :  { %v5039_v26 = vadd.f32 %v5038_v19, %v4985_v11 }
 0x35f   :  { %v5077_v37 = vpop.f32.mrf.mxu1  ;;  %v5146_v34 = vpop.f32.mrf.mxu2 }
 0x360   :  { %v5078_v0 = vadd.f32 %v5077_v37, %v5039_v26 }
 0x362   :  { %v5147_v45 = vadd.f32 %v5146_v34, %v5078_v0  ;;  %v5183_v40 = vpop.f32.mrf.mxu3 }
 0x364   :  { %v5184_v1 = vadd.f32 %v5183_v40, %v5147_v45 }
 0x366   :  { %v5944_v29 = vmul.f32 -1.442695, %v5184_v1 }
 0x368   :  { %5961 = vpow2.f32 %v5944_v29 }
 0x36e   :  { %v5962_v33 = vpop.eup %5961 }
 0x36f   :  { %v5874_v48 = vadd.f32 1.0, %v5962_v33 }
 0x371   :  { %5963 = vrcp.f32 %v5874_v48  ;;  %v5887_v50 = vand.u32 2147483648, %v5874_v48  ;;  %v5885_v20 = vand.u32 2147483647, %v5874_v48  ;;  %vm5881_vm9 = vweird.f32 %v5874_v48 }
 0x373   :  { %v5888_v63 = vor.u32 1.1754944e-38, %v5887_v50  ;;  %vm5886_vm11 = vcmp.eq.f32.partialorder %v5885_v20, 8.507059e+37 }
 0x377   :  { %v5964_v32 = vpop.eup %5963  ;;  %v5224_v24 = vpop.f32.mrf.mxu0 }
 0x378   :  { %v5877_v17 = vmul.f32 %v5964_v32, %v5874_v48  ;;  %vm5882_vm8 = vweird.f32 %v5964_v32  ;;  %v5225_v39 = vadd.f32 %v5224_v24, %v10883_v5 }
 0x379   :  { %vm5883_vm10 = vmor %vm5881_vm9, %vm5882_vm8 }
 0x37a   :  { %v5878_v62 = vsub.f32 1.0, %v5877_v17 }
 0x37c   :  { %v5879_v4 = vmul.f32 %v5964_v32, %v5878_v62 }
 0x37e   :  { %v5880_v46 = vadd.f32 %v5964_v32, %v5879_v4 }
 0x380   :  { %v5884_v60 = vsel %vm5883_vm10, %v5964_v32, %v5880_v46 }
 0x381   :  { %v5889_v57 = vsel %vm5886_vm11, %v5888_v63, %v5884_v60  ;;  %v5325_v12 = vpop.f32.mrf.mxu1  ;;  %v5379_v55 = vpop.f32.mrf.mxu2 }
 0x382   :  { %5906 = vst [vmem:[#allocation9] sm:$0xff] %v5889_v57  ;;  %v5326_v54 = vadd.f32 %v5325_v12, %v5225_v39 }
 0x384   :  { %v5380_v10 = vadd.f32 %v5379_v55, %v5326_v54  ;;  %v5418_v18 = vpop.f32.mrf.mxu3 }
 0x386   :  { %v5419_v52 = vadd.f32 %v5418_v18, %v5380_v10 }
 0x399   :  { %v5487_v51 = vpop.f32.mrf.mxu0 }
 0x39a   :  { %v5488_v13 = vadd.f32 %v5487_v51, %v5419_v52 }
 0x3a3   :  { %v5524_v61 = vpop.f32.mrf.mxu1  ;;  %v5565_v58 = vpop.f32.mrf.mxu2 }
 0x3a4   :  { %v5525_v25 = vadd.f32 %v5524_v61, %v5488_v13 }
 0x3a6   :  { %v5566_v23 = vadd.f32 %v5565_v58, %v5525_v25  ;;  %v5666_v8 = vpop.f32.mrf.mxu3 }
 0x3a8   :  { %v5667_v16 = vadd.f32 %v5666_v8, %v5566_v23 }
 0x3bb   :  { %v5720_v31 = vpop.f32.mrf.mxu0 }
 0x3bc   :  { %v5721_v42 = vadd.f32 %v5720_v31, %v5667_v16 }
 0x3c3   :  { %v5759_v28 = vpop.f32.mrf.mxu1 }
 0x3c4   :  { %v5760_v41 = vadd.f32 %v5759_v28, %v5721_v42 }
 0x3c5   :  { %v5828_v30 = vpop.f32.mrf.mxu2 }
 0x3c6   :  { %v5829_v59 = vadd.f32 %v5828_v30, %v5760_v41 }
 0x3c7   :  { %v5865_v21 = vpop.f32.mrf.mxu3 }
 0x3c8   :  { %v5866_v47 = vadd.f32 %v5865_v21, %v5829_v59 }
 0x3ca   :  { %v5945_v49 = vmul.f32 -1.442695, %v5866_v47 }
 0x3cc   :  { %5965 = vpow2.f32 %v5945_v49 }
 0x3d2   :  { %v5966_v36 = vpop.eup %5965 }
 0x3d3   :  { %v5875_v22 = vadd.f32 1.0, %v5966_v36 }
 0x3d5   :  { %5967 = vrcp.f32 %v5875_v22  ;;  %v5902_v6 = vand.u32 2147483648, %v5875_v22  ;;  %v5900_v3 = vand.u32 2147483647, %v5875_v22  ;;  %vm5896_vm13 = vweird.f32 %v5875_v22 }
 0x3d7   :  { %v5903_v7 = vor.u32 1.1754944e-38, %v5902_v6  ;;  %vm5901_vm15 = vcmp.eq.f32.partialorder %v5900_v3, 8.507059e+37 }
 0x3db   :  { %v5968_v35 = vpop.eup %5967 }
 0x3dc   :  { %v5892_v43 = vmul.f32 %v5968_v35, %v5875_v22  ;;  %vm5897_vm12 = vweird.f32 %v5968_v35 }
 0x3dd   :  { %vm5898_vm14 = vmor %vm5896_vm13, %vm5897_vm12 }
 0x3de   :  { %v5893_v53 = vsub.f32 1.0, %v5892_v43 }
 0x3e0   :  { %v5894_v56 = vmul.f32 %v5968_v35, %v5893_v53 }
 0x3e2   :  { %v5895_v15 = vadd.f32 %v5968_v35, %v5894_v56 }
 0x3e4   :  { %v5899_v44 = vsel %vm5898_vm14, %v5968_v35, %v5895_v15 }
 0x3e5   :  { %v5904_v27 = vsel %vm5901_vm15, %v5903_v7, %v5899_v44 }
 0x3e6   :  { %5907 = vst [vmem:[#allocation9 + $0x8] sm:$0xff] %v5904_v27 }
 0x3e7   :  { %5929 = dma.vmem_to_hbm [thread:$0]  %s5925_s8, 256, %s5927_s11, [#allocation10]  }
 0x3e8   :  { %6101 = dma.done.wait [#allocation4], 256  }
 0x3e9   :  { %6102 = vsyncadd [#allocation4], 4294967040 }
 0x3ea   :  { %6103 = dma.done.wait [#allocation10], 256  }
 0x3eb   :  { %6104 = vsyncadd [#allocation10], 4294967040 }
 0x3ec   :  { %5938 = vsyncpa [#allocation3], 1 }
 0x3ed   :  { %5939 = vsyncpa [#allocation6], 1 }
 0x3ee   :  { %5940 = vsyncpa [#allocation4], 1 }
 0x3ef   :  { %5941 = vsyncpa [#allocation10], 1 }

</bundles_post_ra>
